<compile_context>
chip_gen: v7x
topology: tpu7x:2x2x1
jax: 0.10.0
libtpu: 0.0.40
codegen_flags: <defaults>
</compile_context>

<pallas_src>
import functools

import jax
import jax.numpy as jnp
from jax.experimental import pallas as pl
from jax.experimental.pallas import tpu as pltpu


# --------------------------------------------------------------------------
# Kernel 1: fused conv (stride folded away via space-to-depth) + bias + ReLU
#           + 2x2/stride-1 max-pool.  One image per grid step.
# --------------------------------------------------------------------------
def _conv_relu_pool_kernel(x_ref, w_ref, b_ref, o_ref, acc_ref, *, kh, kw, oh, ow):
    # x_ref:   (Hin, Win, Cin)  bf16, space-to-depth layout (effective stride 1)
    # w_ref:   (kh*kw*Cin, Cout) bf16 (pre-flattened to match in-kernel patch order)
    # b_ref:   (1, Cout) f32
    # acc_ref: VMEM scratch (oh, ow, Cout) f32 -- pre-pool conv output
    # o_ref:   (oh-1, ow-1, Cout) bf16 -- pooled output
    w = w_ref[...]
    b = b_ref[...]
    for i in range(oh):                       # one conv-output row at a time
        pieces = []
        for ki in range(kh):
            row = x_ref[i + ki]               # (Win, Cin), unit-stride load
            for kj in range(kw):
                pieces.append(row[kj:kj + ow, :])          # (ow, Cin)
        patch = jnp.concatenate(pieces, axis=-1)           # (ow, kh*kw*Cin) bf16
        y = jnp.dot(patch, w, preferred_element_type=jnp.float32)   # MXU, f32 acc
        acc_ref[i] = jnp.maximum(y + b, 0.0)               # bias + ReLU on VPU (f32)
    z = acc_ref[...]                                       # (oh, ow, Cout) f32
    p = jnp.maximum(jnp.maximum(z[:-1, :-1, :], z[:-1, 1:, :]),
                    jnp.maximum(z[1:, :-1, :], z[1:, 1:, :]))
    o_ref[...] = p.astype(o_ref.dtype)


def conv_relu_pool(x_s2d, w_flat, b, *, kh, kw, oh, ow):
    B, Hin, Win, Cin = x_s2d.shape
    K, Cout = w_flat.shape
    assert K == kh * kw * Cin
    kernel = functools.partial(_conv_relu_pool_kernel, kh=kh, kw=kw, oh=oh, ow=ow)
    flops = 2 * B * oh * ow * K * Cout
    bytes_accessed = (x_s2d.size * x_s2d.dtype.itemsize
                      + w_flat.size * w_flat.dtype.itemsize
                      + B * (oh - 1) * (ow - 1) * Cout * 2)
    return pl.pallas_call(
        kernel,
        out_shape=jax.ShapeDtypeStruct((B, oh - 1, ow - 1, Cout), jnp.bfloat16),
        grid=(B,),
        in_specs=[
            pl.BlockSpec((None, Hin, Win, Cin), lambda bb: (bb, 0, 0, 0)),
            pl.BlockSpec((K, Cout), lambda bb: (0, 0)),
            pl.BlockSpec((1, Cout), lambda bb: (0, 0)),
        ],
        out_specs=pl.BlockSpec((None, oh - 1, ow - 1, Cout), lambda bb: (bb, 0, 0, 0)),
        scratch_shapes=[pltpu.VMEM((oh, ow, Cout), jnp.float32)],
        compiler_params=pltpu.CompilerParams(dimension_semantics=("parallel",)),
        cost_estimate=pl.CostEstimate(flops=flops, transcendentals=0,
                                      bytes_accessed=bytes_accessed),
    )(x_s2d, w_flat, b)


# --------------------------------------------------------------------------
# Kernel 2: fused fc1 + ReLU + fc2 (intermediate (tm,32) stays in registers/VMEM)
# --------------------------------------------------------------------------
def _mlp_kernel(x_ref, w1_ref, b1_ref, w2_ref, b2_ref, o_ref):
    h = jnp.dot(x_ref[...], w1_ref[...], preferred_element_type=jnp.float32)
    h = jnp.maximum(h + b1_ref[...], 0.0)                        # f32 epilogue
    y = jnp.dot(h.astype(w2_ref.dtype), w2_ref[...],
                preferred_element_type=jnp.float32)
    o_ref[...] = (y + b2_ref[...]).astype(o_ref.dtype)


def mlp_head(x, w1, b1, w2, b2):
    B, K1 = x.shape
    _, N1 = w1.shape
    _, N2 = w2.shape
    tm = B if B <= 256 else 256                  # row-tile; full array for tiny B
    grid = (pl.cdiv(B, tm),)
    flops = 2 * B * (K1 * N1 + N1 * N2)
    bytes_accessed = (x.size * x.dtype.itemsize
                      + w1.size * w1.dtype.itemsize
                      + w2.size * w2.dtype.itemsize + B * N2 * 4)
    return pl.pallas_call(
        _mlp_kernel,
        out_shape=jax.ShapeDtypeStruct((B, N2), jnp.float32),
        grid=grid,
        in_specs=[
            pl.BlockSpec((tm, K1), lambda m: (m, 0)),
            pl.BlockSpec((K1, N1), lambda m: (0, 0)),
            pl.BlockSpec((1, N1), lambda m: (0, 0)),
            pl.BlockSpec((N1, N2), lambda m: (0, 0)),
            pl.BlockSpec((1, N2), lambda m: (0, 0)),
        ],
        out_specs=pl.BlockSpec((tm, N2), lambda m: (m, 0)),
        compiler_params=pltpu.CompilerParams(dimension_semantics=("parallel",)),
        cost_estimate=pl.CostEstimate(flops=flops, transcendentals=0,
                                      bytes_accessed=bytes_accessed),
    )(x, w1, b1, w2, b2)


# ------------------------------ JAX glue ----------------------------------
def _space_to_depth(x_nhwc, factor=2):
    """(B,H,W,C) -> (B,H/f,W/f,f*f*C); channel index = (si*f+sj)*C + c."""
    B, H, W, C = x_nhwc.shape
    x = x_nhwc.reshape(B, H // factor, factor, W // factor, factor, C)
    x = jnp.transpose(x, (0, 1, 3, 2, 4, 5))
    return x.reshape(B, H // factor, W // factor, factor * factor * C)


def init_params(key):
    """Deterministic synthetic parameters in PyTorch conventions."""
    ks = jax.random.split(key, 8)

    def u(k, shape, fan_in):
        bound = 1.0 / jnp.sqrt(jnp.float32(fan_in))
        return jax.random.uniform(k, shape, jnp.float32, -bound, bound)

    return {
        "conv1_w": u(ks[0], (16, 1, 8, 8), 1 * 8 * 8),     # (Cout,Cin,KH,KW)
        "conv1_b": u(ks[1], (16,), 1 * 8 * 8),
        "conv2_w": u(ks[2], (32, 16, 4, 4), 16 * 4 * 4),
        "conv2_b": u(ks[3], (32,), 16 * 4 * 4),
        "fc1_w": u(ks[4], (512, 32), 512),                 # (in,out), in = CHW flatten
        "fc1_b": u(ks[5], (32,), 512),
        "fc2_w": u(ks[6], (32, 10), 32),
        "fc2_b": u(ks[7], (10,), 32),
    }


def prepare_params(tp):
    """One-time reordering of PyTorch-convention weights into kernel layout
    (space-to-depth conv flatten, HWC flatten for fc1, bf16 MXU operands)."""
    p = {}
    # conv1 (16,1,8,8): kernel feature order = (ki2, kj2, si, sj), ki = 2*ki2+si.
    w1 = tp["conv1_w"].reshape(16, 4, 2, 4, 2)               # (Cout, ki2, si, kj2, sj)
    w1 = jnp.transpose(w1, (1, 3, 2, 4, 0)).reshape(64, 16)  # (ki2,kj2,si,sj, Cout)
    p["conv1_w"] = w1.astype(jnp.bfloat16)
    p["conv1_b"] = tp["conv1_b"].reshape(1, 16).astype(jnp.float32)
    # conv2 (32,16,4,4): kernel feature order = (ki2, kj2, si, sj, cin).
    w2 = tp["conv2_w"].reshape(32, 16, 2, 2, 2, 2)           # (Cout, Cin, ki2, si, kj2, sj)
    w2 = jnp.transpose(w2, (2, 4, 3, 5, 1, 0)).reshape(256, 32)
    p["conv2_w"] = w2.astype(jnp.bfloat16)
    p["conv2_b"] = tp["conv2_b"].reshape(1, 32).astype(jnp.float32)
    # fc1: permute input features from torch CHW flatten to our HWC flatten.
    f1 = tp["fc1_w"].reshape(32, 4, 4, 32)                   # (c, h, w, out)
    f1 = jnp.transpose(f1, (1, 2, 0, 3)).reshape(512, 32)    # (h, w, c, out)
    p["fc1_w"] = f1.astype(jnp.bfloat16)
    p["fc1_b"] = tp["fc1_b"].reshape(1, 32).astype(jnp.float32)
    p["fc2_w"] = tp["fc2_w"].astype(jnp.bfloat16)
    p["fc2_b"] = tp["fc2_b"].reshape(1, 10).astype(jnp.float32)
    return p


@jax.jit
def mnist_net_forward(kp, x):
    """x: (B, 1, 28, 28) float32 NCHW -> logits (B, 10) float32."""
    B = x.shape[0]
    # conv1 (k8, s2, p3): fold padding + stride into space-to-depth so the
    # in-kernel im2col only needs unit-stride slices (no patch matrix in HBM).
    x = x.reshape(B, 28, 28, 1)                              # Cin == 1
    x = jnp.pad(x, ((0, 0), (3, 5), (3, 5), (0, 0)))         # 34 used, 36 for s2d
    x = _space_to_depth(x).astype(jnp.bfloat16)              # (B, 18, 18, 4)
    h = conv_relu_pool(x, kp["conv1_w"], kp["conv1_b"],
                       kh=4, kw=4, oh=14, ow=14)             # (B, 13, 13, 16) bf16
    # conv2 (k4, s2): same stride folding (extra pad row/col is never read).
    h = jnp.pad(h, ((0, 0), (0, 1), (0, 1), (0, 0)))         # (B, 14, 14, 16)
    h = _space_to_depth(h)                                   # (B, 7, 7, 64)
    h = conv_relu_pool(h, kp["conv2_w"], kp["conv2_b"],
                       kh=2, kw=2, oh=5, ow=5)               # (B, 4, 4, 32) bf16
    # contiguous HWC flatten (lane-dense 512 = 4*128); fc1 rows were permuted to match.
    h = h.reshape(B, 512)
    return mlp_head(h, kp["fc1_w"], kp["fc1_b"], kp["fc2_w"], kp["fc2_b"])  # (B, 10)


if __name__ == "__main__":
    key = jax.random.PRNGKey(0)
    pkey, xkey = jax.random.split(key)
    params = prepare_params(init_params(pkey))
    x = jax.random.normal(xkey, (2, 1, 28, 28), jnp.float32)

    out = mnist_net_forward(params, x)
    jax.block_until_ready(out)
    assert out.shape == (2, 10), out.shape
    print("KERNEL_OK")
</pallas_src>

<mosaic_0001>
module attributes {stable_mosaic.version = 11 : i64} {
  func.func @_conv_relu_pool_kernel(%arg0: i32, %arg1: memref<1x18x18x4xbf16, #tpu.memory_space<vmem>>, %arg2: memref<64x16xbf16, #tpu.memory_space<vmem>>, %arg3: memref<1x16xf32, #tpu.memory_space<vmem>>, %arg4: memref<1x13x13x16xbf16, #tpu.memory_space<vmem>>, %arg5: memref<14x14x16xf32, #tpu.memory_space<vmem>>) attributes {dimension_semantics = [#tpu.dimension_semantics<parallel>], iteration_bounds = array<i64: 2>, scalar_prefetch = 0 : i64, scratch_operands = 1 : i64, tpu.core_type = #tpu.core_type<tc>, window_params = [{transform_indices = @transform_0, window_bounds = array<i64: 1, 18, 18, 4>}, {pipeline_mode = #tpu.pipeline_mode<synchronous>, transform_indices = @transform_1, window_bounds = array<i64: 64, 16>}, {pipeline_mode = #tpu.pipeline_mode<synchronous>, transform_indices = @transform_2, window_bounds = array<i64: 1, 16>}, {transform_indices = @transform_3, window_bounds = array<i64: 1, 13, 13, 16>}]} {
    %c0 = arith.constant 0 : index
    %c0_0 = arith.constant 0 : index
    %0 = vector.load %arg2[%c0, %c0_0] : memref<64x16xbf16, #tpu.memory_space<vmem>>, vector<64x16xbf16>
    %c0_1 = arith.constant 0 : index
    %c0_2 = arith.constant 0 : index
    %1 = vector.load %arg3[%c0_1, %c0_2] : memref<1x16xf32, #tpu.memory_space<vmem>>, vector<1x16xf32>
    %c0_3 = arith.constant 0 : index
    %c0_4 = arith.constant 0 : index
    %c0_5 = arith.constant 0 : index
    %c0_6 = arith.constant 0 : index
    %2 = vector.load %arg1[%c0_3, %c0_4, %c0_5, %c0_6] : memref<1x18x18x4xbf16, #tpu.memory_space<vmem>>, vector<1x1x18x4xbf16>
    %3 = vector.shape_cast %2 : vector<1x1x18x4xbf16> to vector<18x4xbf16>
    %4 = vector.extract_strided_slice %3 {offsets = [0, 0], sizes = [14, 4], strides = [1, 1]} : vector<18x4xbf16> to vector<14x4xbf16>
    %5 = vector.extract_strided_slice %3 {offsets = [1, 0], sizes = [14, 4], strides = [1, 1]} : vector<18x4xbf16> to vector<14x4xbf16>
    %6 = vector.extract_strided_slice %3 {offsets = [2, 0], sizes = [14, 4], strides = [1, 1]} : vector<18x4xbf16> to vector<14x4xbf16>
    %7 = vector.extract_strided_slice %3 {offsets = [3, 0], sizes = [14, 4], strides = [1, 1]} : vector<18x4xbf16> to vector<14x4xbf16>
    %c0_7 = arith.constant 0 : index
    %c1 = arith.constant 1 : index
    %c0_8 = arith.constant 0 : index
    %c0_9 = arith.constant 0 : index
    %8 = vector.load %arg1[%c0_7, %c1, %c0_8, %c0_9] : memref<1x18x18x4xbf16, #tpu.memory_space<vmem>>, vector<1x1x18x4xbf16>
    %9 = vector.shape_cast %8 : vector<1x1x18x4xbf16> to vector<18x4xbf16>
    %10 = vector.extract_strided_slice %9 {offsets = [0, 0], sizes = [14, 4], strides = [1, 1]} : vector<18x4xbf16> to vector<14x4xbf16>
    %11 = vector.extract_strided_slice %9 {offsets = [1, 0], sizes = [14, 4], strides = [1, 1]} : vector<18x4xbf16> to vector<14x4xbf16>
    %12 = vector.extract_strided_slice %9 {offsets = [2, 0], sizes = [14, 4], strides = [1, 1]} : vector<18x4xbf16> to vector<14x4xbf16>
    %13 = vector.extract_strided_slice %9 {offsets = [3, 0], sizes = [14, 4], strides = [1, 1]} : vector<18x4xbf16> to vector<14x4xbf16>
    %c0_10 = arith.constant 0 : index
    %c2 = arith.constant 2 : index
    %c0_11 = arith.constant 0 : index
    %c0_12 = arith.constant 0 : index
    %14 = vector.load %arg1[%c0_10, %c2, %c0_11, %c0_12] : memref<1x18x18x4xbf16, #tpu.memory_space<vmem>>, vector<1x1x18x4xbf16>
    %15 = vector.shape_cast %14 : vector<1x1x18x4xbf16> to vector<18x4xbf16>
    %16 = vector.extract_strided_slice %15 {offsets = [0, 0], sizes = [14, 4], strides = [1, 1]} : vector<18x4xbf16> to vector<14x4xbf16>
    %17 = vector.extract_strided_slice %15 {offsets = [1, 0], sizes = [14, 4], strides = [1, 1]} : vector<18x4xbf16> to vector<14x4xbf16>
    %18 = vector.extract_strided_slice %15 {offsets = [2, 0], sizes = [14, 4], strides = [1, 1]} : vector<18x4xbf16> to vector<14x4xbf16>
    %19 = vector.extract_strided_slice %15 {offsets = [3, 0], sizes = [14, 4], strides = [1, 1]} : vector<18x4xbf16> to vector<14x4xbf16>
    %c0_13 = arith.constant 0 : index
    %c3 = arith.constant 3 : index
    %c0_14 = arith.constant 0 : index
    %c0_15 = arith.constant 0 : index
    %20 = vector.load %arg1[%c0_13, %c3, %c0_14, %c0_15] : memref<1x18x18x4xbf16, #tpu.memory_space<vmem>>, vector<1x1x18x4xbf16>
    %21 = vector.shape_cast %20 : vector<1x1x18x4xbf16> to vector<18x4xbf16>
    %22 = vector.extract_strided_slice %21 {offsets = [0, 0], sizes = [14, 4], strides = [1, 1]} : vector<18x4xbf16> to vector<14x4xbf16>
    %23 = vector.extract_strided_slice %21 {offsets = [1, 0], sizes = [14, 4], strides = [1, 1]} : vector<18x4xbf16> to vector<14x4xbf16>
    %24 = vector.extract_strided_slice %21 {offsets = [2, 0], sizes = [14, 4], strides = [1, 1]} : vector<18x4xbf16> to vector<14x4xbf16>
    %25 = vector.extract_strided_slice %21 {offsets = [3, 0], sizes = [14, 4], strides = [1, 1]} : vector<18x4xbf16> to vector<14x4xbf16>
    %26 = tpu.concatenate %4, %5, %6, %7, %10, %11, %12, %13, %16, %17, %18, %19, %22, %23, %24, %25 in 1 : vector<14x4xbf16>, vector<14x4xbf16>, vector<14x4xbf16>, vector<14x4xbf16>, vector<14x4xbf16>, vector<14x4xbf16>, vector<14x4xbf16>, vector<14x4xbf16>, vector<14x4xbf16>, vector<14x4xbf16>, vector<14x4xbf16>, vector<14x4xbf16>, vector<14x4xbf16>, vector<14x4xbf16>, vector<14x4xbf16>, vector<14x4xbf16> -> vector<14x64xbf16>
    %cst = arith.constant dense<0.000000e+00> : vector<14x16xf32>
    %27 = tpu.matmul %26, %0, %cst {dimension_numbers = #tpu.dot_dimension_numbers<[1], [0], [0], [1], [0, 0, 1, 1], [], []>} : vector<14x64xbf16>, vector<64x16xbf16>, vector<14x16xf32> -> vector<14x16xf32>
    %28 = vector.broadcast %1 : vector<1x16xf32> to vector<14x16xf32>
    %29 = arith.addf %27, %28 : vector<14x16xf32>
    %cst_16 = arith.constant 0.000000e+00 : f32
    %30 = vector.broadcast %cst_16 : f32 to vector<14x16xf32>
    %31 = arith.maximumf %29, %30 : vector<14x16xf32>
    %c0_17 = arith.constant 0 : index
    %c0_18 = arith.constant 0 : index
    %c0_19 = arith.constant 0 : index
    %32 = vector.load %arg5[%c0_17, %c0_18, %c0_19] : memref<14x14x16xf32, #tpu.memory_space<vmem>>, vector<1x14x16xf32>
    %33 = vector.shape_cast %32 : vector<1x14x16xf32> to vector<14x16xf32>
    %34 = vector.shape_cast %31 : vector<14x16xf32> to vector<1x14x16xf32>
    tpu.vector_store %arg5[%c0_17, %c0_18, %c0_19], %34 {strides = array<i32>} : memref<14x14x16xf32, #tpu.memory_space<vmem>>, vector<1x14x16xf32>,
    %c0_20 = arith.constant 0 : index
    %c1_21 = arith.constant 1 : index
    %c0_22 = arith.constant 0 : index
    %c0_23 = arith.constant 0 : index
    %35 = vector.load %arg1[%c0_20, %c1_21, %c0_22, %c0_23] : memref<1x18x18x4xbf16, #tpu.memory_space<vmem>>, vector<1x1x18x4xbf16>
    %36 = vector.shape_cast %35 : vector<1x1x18x4xbf16> to vector<18x4xbf16>
    %37 = vector.extract_strided_slice %36 {offsets = [0, 0], sizes = [14, 4], strides = [1, 1]} : vector<18x4xbf16> to vector<14x4xbf16>
    %38 = vector.extract_strided_slice %36 {offsets = [1, 0], sizes = [14, 4], strides = [1, 1]} : vector<18x4xbf16> to vector<14x4xbf16>
    %39 = vector.extract_strided_slice %36 {offsets = [2, 0], sizes = [14, 4], strides = [1, 1]} : vector<18x4xbf16> to vector<14x4xbf16>
    %40 = vector.extract_strided_slice %36 {offsets = [3, 0], sizes = [14, 4], strides = [1, 1]} : vector<18x4xbf16> to vector<14x4xbf16>
    %c0_24 = arith.constant 0 : index
    %c2_25 = arith.constant 2 : index
    %c0_26 = arith.constant 0 : index
    %c0_27 = arith.constant 0 : index
    %41 = vector.load %arg1[%c0_24, %c2_25, %c0_26, %c0_27] : memref<1x18x18x4xbf16, #tpu.memory_space<vmem>>, vector<1x1x18x4xbf16>
    %42 = vector.shape_cast %41 : vector<1x1x18x4xbf16> to vector<18x4xbf16>
    %43 = vector.extract_strided_slice %42 {offsets = [0, 0], sizes = [14, 4], strides = [1, 1]} : vector<18x4xbf16> to vector<14x4xbf16>
    %44 = vector.extract_strided_slice %42 {offsets = [1, 0], sizes = [14, 4], strides = [1, 1]} : vector<18x4xbf16> to vector<14x4xbf16>
    %45 = vector.extract_strided_slice %42 {offsets = [2, 0], sizes = [14, 4], strides = [1, 1]} : vector<18x4xbf16> to vector<14x4xbf16>
    %46 = vector.extract_strided_slice %42 {offsets = [3, 0], sizes = [14, 4], strides = [1, 1]} : vector<18x4xbf16> to vector<14x4xbf16>
    %c0_28 = arith.constant 0 : index
    %c3_29 = arith.constant 3 : index
    %c0_30 = arith.constant 0 : index
    %c0_31 = arith.constant 0 : index
    %47 = vector.load %arg1[%c0_28, %c3_29, %c0_30, %c0_31] : memref<1x18x18x4xbf16, #tpu.memory_space<vmem>>, vector<1x1x18x4xbf16>
    %48 = vector.shape_cast %47 : vector<1x1x18x4xbf16> to vector<18x4xbf16>
    %49 = vector.extract_strided_slice %48 {offsets = [0, 0], sizes = [14, 4], strides = [1, 1]} : vector<18x4xbf16> to vector<14x4xbf16>
    %50 = vector.extract_strided_slice %48 {offsets = [1, 0], sizes = [14, 4], strides = [1, 1]} : vector<18x4xbf16> to vector<14x4xbf16>
    %51 = vector.extract_strided_slice %48 {offsets = [2, 0], sizes = [14, 4], strides = [1, 1]} : vector<18x4xbf16> to vector<14x4xbf16>
    %52 = vector.extract_strided_slice %48 {offsets = [3, 0], sizes = [14, 4], strides = [1, 1]} : vector<18x4xbf16> to vector<14x4xbf16>
    %c0_32 = arith.constant 0 : index
    %c4 = arith.constant 4 : index
    %c0_33 = arith.constant 0 : index
    %c0_34 = arith.constant 0 : index
    %53 = vector.load %arg1[%c0_32, %c4, %c0_33, %c0_34] : memref<1x18x18x4xbf16, #tpu.memory_space<vmem>>, vector<1x1x18x4xbf16>
    %54 = vector.shape_cast %53 : vector<1x1x18x4xbf16> to vector<18x4xbf16>
    %55 = vector.extract_strided_slice %54 {offsets = [0, 0], sizes = [14, 4], strides = [1, 1]} : vector<18x4xbf16> to vector<14x4xbf16>
    %56 = vector.extract_strided_slice %54 {offsets = [1, 0], sizes = [14, 4], strides = [1, 1]} : vector<18x4xbf16> to vector<14x4xbf16>
    %57 = vector.extract_strided_slice %54 {offsets = [2, 0], sizes = [14, 4], strides = [1, 1]} : vector<18x4xbf16> to vector<14x4xbf16>
    %58 = vector.extract_strided_slice %54 {offsets = [3, 0], sizes = [14, 4], strides = [1, 1]} : vector<18x4xbf16> to vector<14x4xbf16>
    %59 = tpu.concatenate %37, %38, %39, %40, %43, %44, %45, %46, %49, %50, %51, %52, %55, %56, %57, %58 in 1 : vector<14x4xbf16>, vector<14x4xbf16>, vector<14x4xbf16>, vector<14x4xbf16>, vector<14x4xbf16>, vector<14x4xbf16>, vector<14x4xbf16>, vector<14x4xbf16>, vector<14x4xbf16>, vector<14x4xbf16>, vector<14x4xbf16>, vector<14x4xbf16>, vector<14x4xbf16>, vector<14x4xbf16>, vector<14x4xbf16>, vector<14x4xbf16> -> vector<14x64xbf16>
    %cst_35 = arith.constant dense<0.000000e+00> : vector<14x16xf32>
    %60 = tpu.matmul %59, %0, %cst_35 {dimension_numbers = #tpu.dot_dimension_numbers<[1], [0], [0], [1], [0, 0, 1, 1], [], []>} : vector<14x64xbf16>, vector<64x16xbf16>, vector<14x16xf32> -> vector<14x16xf32>
    %61 = vector.broadcast %1 : vector<1x16xf32> to vector<14x16xf32>
    %62 = arith.addf %60, %61 : vector<14x16xf32>
    %cst_36 = arith.constant 0.000000e+00 : f32
    %63 = vector.broadcast %cst_36 : f32 to vector<14x16xf32>
    %64 = arith.maximumf %62, %63 : vector<14x16xf32>
    %c1_37 = arith.constant 1 : index
    %c0_38 = arith.constant 0 : index
    %c0_39 = arith.constant 0 : index
    %65 = vector.load %arg5[%c1_37, %c0_38, %c0_39] : memref<14x14x16xf32, #tpu.memory_space<vmem>>, vector<1x14x16xf32>
    %66 = vector.shape_cast %65 : vector<1x14x16xf32> to vector<14x16xf32>
    %67 = vector.shape_cast %64 : vector<14x16xf32> to vector<1x14x16xf32>
    tpu.vector_store %arg5[%c1_37, %c0_38, %c0_39], %67 {strides = array<i32>} : memref<14x14x16xf32, #tpu.memory_space<vmem>>, vector<1x14x16xf32>,
    %c0_40 = arith.constant 0 : index
    %c2_41 = arith.constant 2 : index
    %c0_42 = arith.constant 0 : index
    %c0_43 = arith.constant 0 : index
    %68 = vector.load %arg1[%c0_40, %c2_41, %c0_42, %c0_43] : memref<1x18x18x4xbf16, #tpu.memory_space<vmem>>, vector<1x1x18x4xbf16>
    %69 = vector.shape_cast %68 : vector<1x1x18x4xbf16> to vector<18x4xbf16>
    %70 = vector.extract_strided_slice %69 {offsets = [0, 0], sizes = [14, 4], strides = [1, 1]} : vector<18x4xbf16> to vector<14x4xbf16>
    %71 = vector.extract_strided_slice %69 {offsets = [1, 0], sizes = [14, 4], strides = [1, 1]} : vector<18x4xbf16> to vector<14x4xbf16>
    %72 = vector.extract_strided_slice %69 {offsets = [2, 0], sizes = [14, 4], strides = [1, 1]} : vector<18x4xbf16> to vector<14x4xbf16>
    %73 = vector.extract_strided_slice %69 {offsets = [3, 0], sizes = [14, 4], strides = [1, 1]} : vector<18x4xbf16> to vector<14x4xbf16>
    %c0_44 = arith.constant 0 : index
    %c3_45 = arith.constant 3 : index
    %c0_46 = arith.constant 0 : index
    %c0_47 = arith.constant 0 : index
    %74 = vector.load %arg1[%c0_44, %c3_45, %c0_46, %c0_47] : memref<1x18x18x4xbf16, #tpu.memory_space<vmem>>, vector<1x1x18x4xbf16>
    %75 = vector.shape_cast %74 : vector<1x1x18x4xbf16> to vector<18x4xbf16>
    %76 = vector.extract_strided_slice %75 {offsets = [0, 0], sizes = [14, 4], strides = [1, 1]} : vector<18x4xbf16> to vector<14x4xbf16>
    %77 = vector.extract_strided_slice %75 {offsets = [1, 0], sizes = [14, 4], strides = [1, 1]} : vector<18x4xbf16> to vector<14x4xbf16>
    %78 = vector.extract_strided_slice %75 {offsets = [2, 0], sizes = [14, 4], strides = [1, 1]} : vector<18x4xbf16> to vector<14x4xbf16>
    %79 = vector.extract_strided_slice %75 {offsets = [3, 0], sizes = [14, 4], strides = [1, 1]} : vector<18x4xbf16> to vector<14x4xbf16>
    %c0_48 = arith.constant 0 : index
    %c4_49 = arith.constant 4 : index
    %c0_50 = arith.constant 0 : index
    %c0_51 = arith.constant 0 : index
    %80 = vector.load %arg1[%c0_48, %c4_49, %c0_50, %c0_51] : memref<1x18x18x4xbf16, #tpu.memory_space<vmem>>, vector<1x1x18x4xbf16>
    %81 = vector.shape_cast %80 : vector<1x1x18x4xbf16> to vector<18x4xbf16>
    %82 = vector.extract_strided_slice %81 {offsets = [0, 0], sizes = [14, 4], strides = [1, 1]} : vector<18x4xbf16> to vector<14x4xbf16>
    %83 = vector.extract_strided_slice %81 {offsets = [1, 0], sizes = [14, 4], strides = [1, 1]} : vector<18x4xbf16> to vector<14x4xbf16>
    %84 = vector.extract_strided_slice %81 {offsets = [2, 0], sizes = [14, 4], strides = [1, 1]} : vector<18x4xbf16> to vector<14x4xbf16>
    %85 = vector.extract_strided_slice %81 {offsets = [3, 0], sizes = [14, 4], strides = [1, 1]} : vector<18x4xbf16> to vector<14x4xbf16>
    %c0_52 = arith.constant 0 : index
    %c5 = arith.constant 5 : index
    %c0_53 = arith.constant 0 : index
    %c0_54 = arith.constant 0 : index
    %86 = vector.load %arg1[%c0_52, %c5, %c0_53, %c0_54] : memref<1x18x18x4xbf16, #tpu.memory_space<vmem>>, vector<1x1x18x4xbf16>
    %87 = vector.shape_cast %86 : vector<1x1x18x4xbf16> to vector<18x4xbf16>
    %88 = vector.extract_strided_slice %87 {offsets = [0, 0], sizes = [14, 4], strides = [1, 1]} : vector<18x4xbf16> to vector<14x4xbf16>
    %89 = vector.extract_strided_slice %87 {offsets = [1, 0], sizes = [14, 4], strides = [1, 1]} : vector<18x4xbf16> to vector<14x4xbf16>
    %90 = vector.extract_strided_slice %87 {offsets = [2, 0], sizes = [14, 4], strides = [1, 1]} : vector<18x4xbf16> to vector<14x4xbf16>
    %91 = vector.extract_strided_slice %87 {offsets = [3, 0], sizes = [14, 4], strides = [1, 1]} : vector<18x4xbf16> to vector<14x4xbf16>
    %92 = tpu.concatenate %70, %71, %72, %73, %76, %77, %78, %79, %82, %83, %84, %85, %88, %89, %90, %91 in 1 : vector<14x4xbf16>, vector<14x4xbf16>, vector<14x4xbf16>, vector<14x4xbf16>, vector<14x4xbf16>, vector<14x4xbf16>, vector<14x4xbf16>, vector<14x4xbf16>, vector<14x4xbf16>, vector<14x4xbf16>, vector<14x4xbf16>, vector<14x4xbf16>, vector<14x4xbf16>, vector<14x4xbf16>, vector<14x4xbf16>, vector<14x4xbf16> -> vector<14x64xbf16>
    %cst_55 = arith.constant dense<0.000000e+00> : vector<14x16xf32>
    %93 = tpu.matmul %92, %0, %cst_55 {dimension_numbers = #tpu.dot_dimension_numbers<[1], [0], [0], [1], [0, 0, 1, 1], [], []>} : vector<14x64xbf16>, vector<64x16xbf16>, vector<14x16xf32> -> vector<14x16xf32>
    %94 = vector.broadcast %1 : vector<1x16xf32> to vector<14x16xf32>
    %95 = arith.addf %93, %94 : vector<14x16xf32>
    %cst_56 = arith.constant 0.000000e+00 : f32
    %96 = vector.broadcast %cst_56 : f32 to vector<14x16xf32>
    %97 = arith.maximumf %95, %96 : vector<14x16xf32>
    %c2_57 = arith.constant 2 : index
    %c0_58 = arith.constant 0 : index
    %c0_59 = arith.constant 0 : index
    %98 = vector.load %arg5[%c2_57, %c0_58, %c0_59] : memref<14x14x16xf32, #tpu.memory_space<vmem>>, vector<1x14x16xf32>
    %99 = vector.shape_cast %98 : vector<1x14x16xf32> to vector<14x16xf32>
    %100 = vector.shape_cast %97 : vector<14x16xf32> to vector<1x14x16xf32>
    tpu.vector_store %arg5[%c2_57, %c0_58, %c0_59], %100 {strides = array<i32>} : memref<14x14x16xf32, #tpu.memory_space<vmem>>, vector<1x14x16xf32>,
    %c0_60 = arith.constant 0 : index
    %c3_61 = arith.constant 3 : index
    %c0_62 = arith.constant 0 : index
    %c0_63 = arith.constant 0 : index
    %101 = vector.load %arg1[%c0_60, %c3_61, %c0_62, %c0_63] : memref<1x18x18x4xbf16, #tpu.memory_space<vmem>>, vector<1x1x18x4xbf16>
    %102 = vector.shape_cast %101 : vector<1x1x18x4xbf16> to vector<18x4xbf16>
    %103 = vector.extract_strided_slice %102 {offsets = [0, 0], sizes = [14, 4], strides = [1, 1]} : vector<18x4xbf16> to vector<14x4xbf16>
    %104 = vector.extract_strided_slice %102 {offsets = [1, 0], sizes = [14, 4], strides = [1, 1]} : vector<18x4xbf16> to vector<14x4xbf16>
    %105 = vector.extract_strided_slice %102 {offsets = [2, 0], sizes = [14, 4], strides = [1, 1]} : vector<18x4xbf16> to vector<14x4xbf16>
    %106 = vector.extract_strided_slice %102 {offsets = [3, 0], sizes = [14, 4], strides = [1, 1]} : vector<18x4xbf16> to vector<14x4xbf16>
    %c0_64 = arith.constant 0 : index
    %c4_65 = arith.constant 4 : index
    %c0_66 = arith.constant 0 : index
    %c0_67 = arith.constant 0 : index
    %107 = vector.load %arg1[%c0_64, %c4_65, %c0_66, %c0_67] : memref<1x18x18x4xbf16, #tpu.memory_space<vmem>>, vector<1x1x18x4xbf16>
    %108 = vector.shape_cast %107 : vector<1x1x18x4xbf16> to vector<18x4xbf16>
    %109 = vector.extract_strided_slice %108 {offsets = [0, 0], sizes = [14, 4], strides = [1, 1]} : vector<18x4xbf16> to vector<14x4xbf16>
    %110 = vector.extract_strided_slice %108 {offsets = [1, 0], sizes = [14, 4], strides = [1, 1]} : vector<18x4xbf16> to vector<14x4xbf16>
    %111 = vector.extract_strided_slice %108 {offsets = [2, 0], sizes = [14, 4], strides = [1, 1]} : vector<18x4xbf16> to vector<14x4xbf16>
    %112 = vector.extract_strided_slice %108 {offsets = [3, 0], sizes = [14, 4], strides = [1, 1]} : vector<18x4xbf16> to vector<14x4xbf16>
    %c0_68 = arith.constant 0 : index
    %c5_69 = arith.constant 5 : index
    %c0_70 = arith.constant 0 : index
    %c0_71 = arith.constant 0 : index
    %113 = vector.load %arg1[%c0_68, %c5_69, %c0_70, %c0_71] : memref<1x18x18x4xbf16, #tpu.memory_space<vmem>>, vector<1x1x18x4xbf16>
    %114 = vector.shape_cast %113 : vector<1x1x18x4xbf16> to vector<18x4xbf16>
    %115 = vector.extract_strided_slice %114 {offsets = [0, 0], sizes = [14, 4], strides = [1, 1]} : vector<18x4xbf16> to vector<14x4xbf16>
    %116 = vector.extract_strided_slice %114 {offsets = [1, 0], sizes = [14, 4], strides = [1, 1]} : vector<18x4xbf16> to vector<14x4xbf16>
    %117 = vector.extract_strided_slice %114 {offsets = [2, 0], sizes = [14, 4], strides = [1, 1]} : vector<18x4xbf16> to vector<14x4xbf16>
    %118 = vector.extract_strided_slice %114 {offsets = [3, 0], sizes = [14, 4], strides = [1, 1]} : vector<18x4xbf16> to vector<14x4xbf16>
    %c0_72 = arith.constant 0 : index
    %c6 = arith.constant 6 : index
    %c0_73 = arith.constant 0 : index
    %c0_74 = arith.constant 0 : index
    %119 = vector.load %arg1[%c0_72, %c6, %c0_73, %c0_74] : memref<1x18x18x4xbf16, #tpu.memory_space<vmem>>, vector<1x1x18x4xbf16>
    %120 = vector.shape_cast %119 : vector<1x1x18x4xbf16> to vector<18x4xbf16>
    %121 = vector.extract_strided_slice %120 {offsets = [0, 0], sizes = [14, 4], strides = [1, 1]} : vector<18x4xbf16> to vector<14x4xbf16>
    %122 = vector.extract_strided_slice %120 {offsets = [1, 0], sizes = [14, 4], strides = [1, 1]} : vector<18x4xbf16> to vector<14x4xbf16>
    %123 = vector.extract_strided_slice %120 {offsets = [2, 0], sizes = [14, 4], strides = [1, 1]} : vector<18x4xbf16> to vector<14x4xbf16>
    %124 = vector.extract_strided_slice %120 {offsets = [3, 0], sizes = [14, 4], strides = [1, 1]} : vector<18x4xbf16> to vector<14x4xbf16>
    %125 = tpu.concatenate %103, %104, %105, %106, %109, %110, %111, %112, %115, %116, %117, %118, %121, %122, %123, %124 in 1 : vector<14x4xbf16>, vector<14x4xbf16>, vector<14x4xbf16>, vector<14x4xbf16>, vector<14x4xbf16>, vector<14x4xbf16>, vector<14x4xbf16>, vector<14x4xbf16>, vector<14x4xbf16>, vector<14x4xbf16>, vector<14x4xbf16>, vector<14x4xbf16>, vector<14x4xbf16>, vector<14x4xbf16>, vector<14x4xbf16>, vector<14x4xbf16> -> vector<14x64xbf16>
    %cst_75 = arith.constant dense<0.000000e+00> : vector<14x16xf32>
    %126 = tpu.matmul %125, %0, %cst_75 {dimension_numbers = #tpu.dot_dimension_numbers<[1], [0], [0], [1], [0, 0, 1, 1], [], []>} : vector<14x64xbf16>, vector<64x16xbf16>, vector<14x16xf32> -> vector<14x16xf32>
    %127 = vector.broadcast %1 : vector<1x16xf32> to vector<14x16xf32>
    %128 = arith.addf %126, %127 : vector<14x16xf32>
    %cst_76 = arith.constant 0.000000e+00 : f32
    %129 = vector.broadcast %cst_76 : f32 to vector<14x16xf32>
    %130 = arith.maximumf %128, %129 : vector<14x16xf32>
    %c3_77 = arith.constant 3 : index
    %c0_78 = arith.constant 0 : index
    %c0_79 = arith.constant 0 : index
    %131 = vector.load %arg5[%c3_77, %c0_78, %c0_79] : memref<14x14x16xf32, #tpu.memory_space<vmem>>, vector<1x14x16xf32>
    %132 = vector.shape_cast %131 : vector<1x14x16xf32> to vector<14x16xf32>
    %133 = vector.shape_cast %130 : vector<14x16xf32> to vector<1x14x16xf32>
    tpu.vector_store %arg5[%c3_77, %c0_78, %c0_79], %133 {strides = array<i32>} : memref<14x14x16xf32, #tpu.memory_space<vmem>>, vector<1x14x16xf32>,
    %c0_80 = arith.constant 0 : index
    %c4_81 = arith.constant 4 : index
    %c0_82 = arith.constant 0 : index
    %c0_83 = arith.constant 0 : index
    %134 = vector.load %arg1[%c0_80, %c4_81, %c0_82, %c0_83] : memref<1x18x18x4xbf16, #tpu.memory_space<vmem>>, vector<1x1x18x4xbf16>
    %135 = vector.shape_cast %134 : vector<1x1x18x4xbf16> to vector<18x4xbf16>
    %136 = vector.extract_strided_slice %135 {offsets = [0, 0], sizes = [14, 4], strides = [1, 1]} : vector<18x4xbf16> to vector<14x4xbf16>
    %137 = vector.extract_strided_slice %135 {offsets = [1, 0], sizes = [14, 4], strides = [1, 1]} : vector<18x4xbf16> to vector<14x4xbf16>
    %138 = vector.extract_strided_slice %135 {offsets = [2, 0], sizes = [14, 4], strides = [1, 1]} : vector<18x4xbf16> to vector<14x4xbf16>
    %139 = vector.extract_strided_slice %135 {offsets = [3, 0], sizes = [14, 4], strides = [1, 1]} : vector<18x4xbf16> to vector<14x4xbf16>
    %c0_84 = arith.constant 0 : index
    %c5_85 = arith.constant 5 : index
    %c0_86 = arith.constant 0 : index
    %c0_87 = arith.constant 0 : index
    %140 = vector.load %arg1[%c0_84, %c5_85, %c0_86, %c0_87] : memref<1x18x18x4xbf16, #tpu.memory_space<vmem>>, vector<1x1x18x4xbf16>
    %141 = vector.shape_cast %140 : vector<1x1x18x4xbf16> to vector<18x4xbf16>
    %142 = vector.extract_strided_slice %141 {offsets = [0, 0], sizes = [14, 4], strides = [1, 1]} : vector<18x4xbf16> to vector<14x4xbf16>
    %143 = vector.extract_strided_slice %141 {offsets = [1, 0], sizes = [14, 4], strides = [1, 1]} : vector<18x4xbf16> to vector<14x4xbf16>
    %144 = vector.extract_strided_slice %141 {offsets = [2, 0], sizes = [14, 4], strides = [1, 1]} : vector<18x4xbf16> to vector<14x4xbf16>
    %145 = vector.extract_strided_slice %141 {offsets = [3, 0], sizes = [14, 4], strides = [1, 1]} : vector<18x4xbf16> to vector<14x4xbf16>
    %c0_88 = arith.constant 0 : index
    %c6_89 = arith.constant 6 : index
    %c0_90 = arith.constant 0 : index
    %c0_91 = arith.constant 0 : index
    %146 = vector.load %arg1[%c0_88, %c6_89, %c0_90, %c0_91] : memref<1x18x18x4xbf16, #tpu.memory_space<vmem>>, vector<1x1x18x4xbf16>
    %147 = vector.shape_cast %146 : vector<1x1x18x4xbf16> to vector<18x4xbf16>
    %148 = vector.extract_strided_slice %147 {offsets = [0, 0], sizes = [14, 4], strides = [1, 1]} : vector<18x4xbf16> to vector<14x4xbf16>
    %149 = vector.extract_strided_slice %147 {offsets = [1, 0], sizes = [14, 4], strides = [1, 1]} : vector<18x4xbf16> to vector<14x4xbf16>
    %150 = vector.extract_strided_slice %147 {offsets = [2, 0], sizes = [14, 4], strides = [1, 1]} : vector<18x4xbf16> to vector<14x4xbf16>
    %151 = vector.extract_strided_slice %147 {offsets = [3, 0], sizes = [14, 4], strides = [1, 1]} : vector<18x4xbf16> to vector<14x4xbf16>
    %c0_92 = arith.constant 0 : index
    %c7 = arith.constant 7 : index
    %c0_93 = arith.constant 0 : index
    %c0_94 = arith.constant 0 : index
    %152 = vector.load %arg1[%c0_92, %c7, %c0_93, %c0_94] : memref<1x18x18x4xbf16, #tpu.memory_space<vmem>>, vector<1x1x18x4xbf16>
    %153 = vector.shape_cast %152 : vector<1x1x18x4xbf16> to vector<18x4xbf16>
    %154 = vector.extract_strided_slice %153 {offsets = [0, 0], sizes = [14, 4], strides = [1, 1]} : vector<18x4xbf16> to vector<14x4xbf16>
    %155 = vector.extract_strided_slice %153 {offsets = [1, 0], sizes = [14, 4], strides = [1, 1]} : vector<18x4xbf16> to vector<14x4xbf16>
    %156 = vector.extract_strided_slice %153 {offsets = [2, 0], sizes = [14, 4], strides = [1, 1]} : vector<18x4xbf16> to vector<14x4xbf16>
    %157 = vector.extract_strided_slice %153 {offsets = [3, 0], sizes = [14, 4], strides = [1, 1]} : vector<18x4xbf16> to vector<14x4xbf16>
    %158 = tpu.concatenate %136, %137, %138, %139, %142, %143, %144, %145, %148, %149, %150, %151, %154, %155, %156, %157 in 1 : vector<14x4xbf16>, vector<14x4xbf16>, vector<14x4xbf16>, vector<14x4xbf16>, vector<14x4xbf16>, vector<14x4xbf16>, vector<14x4xbf16>, vector<14x4xbf16>, vector<14x4xbf16>, vector<14x4xbf16>, vector<14x4xbf16>, vector<14x4xbf16>, vector<14x4xbf16>, vector<14x4xbf16>, vector<14x4xbf16>, vector<14x4xbf16> -> vector<14x64xbf16>
    %cst_95 = arith.constant dense<0.000000e+00> : vector<14x16xf32>
    %159 = tpu.matmul %158, %0, %cst_95 {dimension_numbers = #tpu.dot_dimension_numbers<[1], [0], [0], [1], [0, 0, 1, 1], [], []>} : vector<14x64xbf16>, vector<64x16xbf16>, vector<14x16xf32> -> vector<14x16xf32>
    %160 = vector.broadcast %1 : vector<1x16xf32> to vector<14x16xf32>
    %161 = arith.addf %159, %160 : vector<14x16xf32>
    %cst_96 = arith.constant 0.000000e+00 : f32
    %162 = vector.broadcast %cst_96 : f32 to vector<14x16xf32>
    %163 = arith.maximumf %161, %162 : vector<14x16xf32>
    %c4_97 = arith.constant 4 : index
    %c0_98 = arith.constant 0 : index
    %c0_99 = arith.constant 0 : index
    %164 = vector.load %arg5[%c4_97, %c0_98, %c0_99] : memref<14x14x16xf32, #tpu.memory_space<vmem>>, vector<1x14x16xf32>
    %165 = vector.shape_cast %164 : vector<1x14x16xf32> to vector<14x16xf32>
    %166 = vector.shape_cast %163 : vector<14x16xf32> to vector<1x14x16xf32>
    tpu.vector_store %arg5[%c4_97, %c0_98, %c0_99], %166 {strides = array<i32>} : memref<14x14x16xf32, #tpu.memory_space<vmem>>, vector<1x14x16xf32>,
    %c0_100 = arith.constant 0 : index
    %c5_101 = arith.constant 5 : index
    %c0_102 = arith.constant 0 : index
    %c0_103 = arith.constant 0 : index
    %167 = vector.load %arg1[%c0_100, %c5_101, %c0_102, %c0_103] : memref<1x18x18x4xbf16, #tpu.memory_space<vmem>>, vector<1x1x18x4xbf16>
    %168 = vector.shape_cast %167 : vector<1x1x18x4xbf16> to vector<18x4xbf16>
    %169 = vector.extract_strided_slice %168 {offsets = [0, 0], sizes = [14, 4], strides = [1, 1]} : vector<18x4xbf16> to vector<14x4xbf16>
    %170 = vector.extract_strided_slice %168 {offsets = [1, 0], sizes = [14, 4], strides = [1, 1]} : vector<18x4xbf16> to vector<14x4xbf16>
    %171 = vector.extract_strided_slice %168 {offsets = [2, 0], sizes = [14, 4], strides = [1, 1]} : vector<18x4xbf16> to vector<14x4xbf16>
    %172 = vector.extract_strided_slice %168 {offsets = [3, 0], sizes = [14, 4], strides = [1, 1]} : vector<18x4xbf16> to vector<14x4xbf16>
    %c0_104 = arith.constant 0 : index
    %c6_105 = arith.constant 6 : index
    %c0_106 = arith.constant 0 : index
    %c0_107 = arith.constant 0 : index
    %173 = vector.load %arg1[%c0_104, %c6_105, %c0_106, %c0_107] : memref<1x18x18x4xbf16, #tpu.memory_space<vmem>>, vector<1x1x18x4xbf16>
    %174 = vector.shape_cast %173 : vector<1x1x18x4xbf16> to vector<18x4xbf16>
    %175 = vector.extract_strided_slice %174 {offsets = [0, 0], sizes = [14, 4], strides = [1, 1]} : vector<18x4xbf16> to vector<14x4xbf16>
    %176 = vector.extract_strided_slice %174 {offsets = [1, 0], sizes = [14, 4], strides = [1, 1]} : vector<18x4xbf16> to vector<14x4xbf16>
    %177 = vector.extract_strided_slice %174 {offsets = [2, 0], sizes = [14, 4], strides = [1, 1]} : vector<18x4xbf16> to vector<14x4xbf16>
    %178 = vector.extract_strided_slice %174 {offsets = [3, 0], sizes = [14, 4], strides = [1, 1]} : vector<18x4xbf16> to vector<14x4xbf16>
    %c0_108 = arith.constant 0 : index
    %c7_109 = arith.constant 7 : index
    %c0_110 = arith.constant 0 : index
    %c0_111 = arith.constant 0 : index
    %179 = vector.load %arg1[%c0_108, %c7_109, %c0_110, %c0_111] : memref<1x18x18x4xbf16, #tpu.memory_space<vmem>>, vector<1x1x18x4xbf16>
    %180 = vector.shape_cast %179 : vector<1x1x18x4xbf16> to vector<18x4xbf16>
    %181 = vector.extract_strided_slice %180 {offsets = [0, 0], sizes = [14, 4], strides = [1, 1]} : vector<18x4xbf16> to vector<14x4xbf16>
    %182 = vector.extract_strided_slice %180 {offsets = [1, 0], sizes = [14, 4], strides = [1, 1]} : vector<18x4xbf16> to vector<14x4xbf16>
    %183 = vector.extract_strided_slice %180 {offsets = [2, 0], sizes = [14, 4], strides = [1, 1]} : vector<18x4xbf16> to vector<14x4xbf16>
    %184 = vector.extract_strided_slice %180 {offsets = [3, 0], sizes = [14, 4], strides = [1, 1]} : vector<18x4xbf16> to vector<14x4xbf16>
    %c0_112 = arith.constant 0 : index
    %c8 = arith.constant 8 : index
    %c0_113 = arith.constant 0 : index
    %c0_114 = arith.constant 0 : index
    %185 = vector.load %arg1[%c0_112, %c8, %c0_113, %c0_114] : memref<1x18x18x4xbf16, #tpu.memory_space<vmem>>, vector<1x1x18x4xbf16>
    %186 = vector.shape_cast %185 : vector<1x1x18x4xbf16> to vector<18x4xbf16>
    %187 = vector.extract_strided_slice %186 {offsets = [0, 0], sizes = [14, 4], strides = [1, 1]} : vector<18x4xbf16> to vector<14x4xbf16>
    %188 = vector.extract_strided_slice %186 {offsets = [1, 0], sizes = [14, 4], strides = [1, 1]} : vector<18x4xbf16> to vector<14x4xbf16>
    %189 = vector.extract_strided_slice %186 {offsets = [2, 0], sizes = [14, 4], strides = [1, 1]} : vector<18x4xbf16> to vector<14x4xbf16>
    %190 = vector.extract_strided_slice %186 {offsets = [3, 0], sizes = [14, 4], strides = [1, 1]} : vector<18x4xbf16> to vector<14x4xbf16>
    %191 = tpu.concatenate %169, %170, %171, %172, %175, %176, %177, %178, %181, %182, %183, %184, %187, %188, %189, %190 in 1 : vector<14x4xbf16>, vector<14x4xbf16>, vector<14x4xbf16>, vector<14x4xbf16>, vector<14x4xbf16>, vector<14x4xbf16>, vector<14x4xbf16>, vector<14x4xbf16>, vector<14x4xbf16>, vector<14x4xbf16>, vector<14x4xbf16>, vector<14x4xbf16>, vector<14x4xbf16>, vector<14x4xbf16>, vector<14x4xbf16>, vector<14x4xbf16> -> vector<14x64xbf16>
    %cst_115 = arith.constant dense<0.000000e+00> : vector<14x16xf32>
    %192 = tpu.matmul %191, %0, %cst_115 {dimension_numbers = #tpu.dot_dimension_numbers<[1], [0], [0], [1], [0, 0, 1, 1], [], []>} : vector<14x64xbf16>, vector<64x16xbf16>, vector<14x16xf32> -> vector<14x16xf32>
    %193 = vector.broadcast %1 : vector<1x16xf32> to vector<14x16xf32>
    %194 = arith.addf %192, %193 : vector<14x16xf32>
    %cst_116 = arith.constant 0.000000e+00 : f32
    %195 = vector.broadcast %cst_116 : f32 to vector<14x16xf32>
    %196 = arith.maximumf %194, %195 : vector<14x16xf32>
    %c5_117 = arith.constant 5 : index
    %c0_118 = arith.constant 0 : index
    %c0_119 = arith.constant 0 : index
    %197 = vector.load %arg5[%c5_117, %c0_118, %c0_119] : memref<14x14x16xf32, #tpu.memory_space<vmem>>, vector<1x14x16xf32>
    %198 = vector.shape_cast %197 : vector<1x14x16xf32> to vector<14x16xf32>
    %199 = vector.shape_cast %196 : vector<14x16xf32> to vector<1x14x16xf32>
    tpu.vector_store %arg5[%c5_117, %c0_118, %c0_119], %199 {strides = array<i32>} : memref<14x14x16xf32, #tpu.memory_space<vmem>>, vector<1x14x16xf32>,
    %c0_120 = arith.constant 0 : index
    %c6_121 = arith.constant 6 : index
    %c0_122 = arith.constant 0 : index
    %c0_123 = arith.constant 0 : index
    %200 = vector.load %arg1[%c0_120, %c6_121, %c0_122, %c0_123] : memref<1x18x18x4xbf16, #tpu.memory_space<vmem>>, vector<1x1x18x4xbf16>
    %201 = vector.shape_cast %200 : vector<1x1x18x4xbf16> to vector<18x4xbf16>
    %202 = vector.extract_strided_slice %201 {offsets = [0, 0], sizes = [14, 4], strides = [1, 1]} : vector<18x4xbf16> to vector<14x4xbf16>
    %203 = vector.extract_strided_slice %201 {offsets = [1, 0], sizes = [14, 4], strides = [1, 1]} : vector<18x4xbf16> to vector<14x4xbf16>
    %204 = vector.extract_strided_slice %201 {offsets = [2, 0], sizes = [14, 4], strides = [1, 1]} : vector<18x4xbf16> to vector<14x4xbf16>
    %205 = vector.extract_strided_slice %201 {offsets = [3, 0], sizes = [14, 4], strides = [1, 1]} : vector<18x4xbf16> to vector<14x4xbf16>
    %c0_124 = arith.constant 0 : index
    %c7_125 = arith.constant 7 : index
    %c0_126 = arith.constant 0 : index
    %c0_127 = arith.constant 0 : index
    %206 = vector.load %arg1[%c0_124, %c7_125, %c0_126, %c0_127] : memref<1x18x18x4xbf16, #tpu.memory_space<vmem>>, vector<1x1x18x4xbf16>
    %207 = vector.shape_cast %206 : vector<1x1x18x4xbf16> to vector<18x4xbf16>
    %208 = vector.extract_strided_slice %207 {offsets = [0, 0], sizes = [14, 4], strides = [1, 1]} : vector<18x4xbf16> to vector<14x4xbf16>
    %209 = vector.extract_strided_slice %207 {offsets = [1, 0], sizes = [14, 4], strides = [1, 1]} : vector<18x4xbf16> to vector<14x4xbf16>
    %210 = vector.extract_strided_slice %207 {offsets = [2, 0], sizes = [14, 4], strides = [1, 1]} : vector<18x4xbf16> to vector<14x4xbf16>
    %211 = vector.extract_strided_slice %207 {offsets = [3, 0], sizes = [14, 4], strides = [1, 1]} : vector<18x4xbf16> to vector<14x4xbf16>
    %c0_128 = arith.constant 0 : index
    %c8_129 = arith.constant 8 : index
    %c0_130 = arith.constant 0 : index
    %c0_131 = arith.constant 0 : index
    %212 = vector.load %arg1[%c0_128, %c8_129, %c0_130, %c0_131] : memref<1x18x18x4xbf16, #tpu.memory_space<vmem>>, vector<1x1x18x4xbf16>
    %213 = vector.shape_cast %212 : vector<1x1x18x4xbf16> to vector<18x4xbf16>
    %214 = vector.extract_strided_slice %213 {offsets = [0, 0], sizes = [14, 4], strides = [1, 1]} : vector<18x4xbf16> to vector<14x4xbf16>
    %215 = vector.extract_strided_slice %213 {offsets = [1, 0], sizes = [14, 4], strides = [1, 1]} : vector<18x4xbf16> to vector<14x4xbf16>
    %216 = vector.extract_strided_slice %213 {offsets = [2, 0], sizes = [14, 4], strides = [1, 1]} : vector<18x4xbf16> to vector<14x4xbf16>
    %217 = vector.extract_strided_slice %213 {offsets = [3, 0], sizes = [14, 4], strides = [1, 1]} : vector<18x4xbf16> to vector<14x4xbf16>
    %c0_132 = arith.constant 0 : index
    %c9 = arith.constant 9 : index
    %c0_133 = arith.constant 0 : index
    %c0_134 = arith.constant 0 : index
    %218 = vector.load %arg1[%c0_132, %c9, %c0_133, %c0_134] : memref<1x18x18x4xbf16, #tpu.memory_space<vmem>>, vector<1x1x18x4xbf16>
    %219 = vector.shape_cast %218 : vector<1x1x18x4xbf16> to vector<18x4xbf16>
    %220 = vector.extract_strided_slice %219 {offsets = [0, 0], sizes = [14, 4], strides = [1, 1]} : vector<18x4xbf16> to vector<14x4xbf16>
    %221 = vector.extract_strided_slice %219 {offsets = [1, 0], sizes = [14, 4], strides = [1, 1]} : vector<18x4xbf16> to vector<14x4xbf16>
    %222 = vector.extract_strided_slice %219 {offsets = [2, 0], sizes = [14, 4], strides = [1, 1]} : vector<18x4xbf16> to vector<14x4xbf16>
    %223 = vector.extract_strided_slice %219 {offsets = [3, 0], sizes = [14, 4], strides = [1, 1]} : vector<18x4xbf16> to vector<14x4xbf16>
    %224 = tpu.concatenate %202, %203, %204, %205, %208, %209, %210, %211, %214, %215, %216, %217, %220, %221, %222, %223 in 1 : vector<14x4xbf16>, vector<14x4xbf16>, vector<14x4xbf16>, vector<14x4xbf16>, vector<14x4xbf16>, vector<14x4xbf16>, vector<14x4xbf16>, vector<14x4xbf16>, vector<14x4xbf16>, vector<14x4xbf16>, vector<14x4xbf16>, vector<14x4xbf16>, vector<14x4xbf16>, vector<14x4xbf16>, vector<14x4xbf16>, vector<14x4xbf16> -> vector<14x64xbf16>
    %cst_135 = arith.constant dense<0.000000e+00> : vector<14x16xf32>
    %225 = tpu.matmul %224, %0, %cst_135 {dimension_numbers = #tpu.dot_dimension_numbers<[1], [0], [0], [1], [0, 0, 1, 1], [], []>} : vector<14x64xbf16>, vector<64x16xbf16>, vector<14x16xf32> -> vector<14x16xf32>
    %226 = vector.broadcast %1 : vector<1x16xf32> to vector<14x16xf32>
    %227 = arith.addf %225, %226 : vector<14x16xf32>
    %cst_136 = arith.constant 0.000000e+00 : f32
    %228 = vector.broadcast %cst_136 : f32 to vector<14x16xf32>
    %229 = arith.maximumf %227, %228 : vector<14x16xf32>
    %c6_137 = arith.constant 6 : index
    %c0_138 = arith.constant 0 : index
    %c0_139 = arith.constant 0 : index
    %230 = vector.load %arg5[%c6_137, %c0_138, %c0_139] : memref<14x14x16xf32, #tpu.memory_space<vmem>>, vector<1x14x16xf32>
    %231 = vector.shape_cast %230 : vector<1x14x16xf32> to vector<14x16xf32>
    %232 = vector.shape_cast %229 : vector<14x16xf32> to vector<1x14x16xf32>
    tpu.vector_store %arg5[%c6_137, %c0_138, %c0_139], %232 {strides = array<i32>} : memref<14x14x16xf32, #tpu.memory_space<vmem>>, vector<1x14x16xf32>,
    %c0_140 = arith.constant 0 : index
    %c7_141 = arith.constant 7 : index
    %c0_142 = arith.constant 0 : index
    %c0_143 = arith.constant 0 : index
    %233 = vector.load %arg1[%c0_140, %c7_141, %c0_142, %c0_143] : memref<1x18x18x4xbf16, #tpu.memory_space<vmem>>, vector<1x1x18x4xbf16>
    %234 = vector.shape_cast %233 : vector<1x1x18x4xbf16> to vector<18x4xbf16>
    %235 = vector.extract_strided_slice %234 {offsets = [0, 0], sizes = [14, 4], strides = [1, 1]} : vector<18x4xbf16> to vector<14x4xbf16>
    %236 = vector.extract_strided_slice %234 {offsets = [1, 0], sizes = [14, 4], strides = [1, 1]} : vector<18x4xbf16> to vector<14x4xbf16>
    %237 = vector.extract_strided_slice %234 {offsets = [2, 0], sizes = [14, 4], strides = [1, 1]} : vector<18x4xbf16> to vector<14x4xbf16>
    %238 = vector.extract_strided_slice %234 {offsets = [3, 0], sizes = [14, 4], strides = [1, 1]} : vector<18x4xbf16> to vector<14x4xbf16>
    %c0_144 = arith.constant 0 : index
    %c8_145 = arith.constant 8 : index
    %c0_146 = arith.constant 0 : index
    %c0_147 = arith.constant 0 : index
    %239 = vector.load %arg1[%c0_144, %c8_145, %c0_146, %c0_147] : memref<1x18x18x4xbf16, #tpu.memory_space<vmem>>, vector<1x1x18x4xbf16>
    %240 = vector.shape_cast %239 : vector<1x1x18x4xbf16> to vector<18x4xbf16>
    %241 = vector.extract_strided_slice %240 {offsets = [0, 0], sizes = [14, 4], strides = [1, 1]} : vector<18x4xbf16> to vector<14x4xbf16>
    %242 = vector.extract_strided_slice %240 {offsets = [1, 0], sizes = [14, 4], strides = [1, 1]} : vector<18x4xbf16> to vector<14x4xbf16>
    %243 = vector.extract_strided_slice %240 {offsets = [2, 0], sizes = [14, 4], strides = [1, 1]} : vector<18x4xbf16> to vector<14x4xbf16>
    %244 = vector.extract_strided_slice %240 {offsets = [3, 0], sizes = [14, 4], strides = [1, 1]} : vector<18x4xbf16> to vector<14x4xbf16>
    %c0_148 = arith.constant 0 : index
    %c9_149 = arith.constant 9 : index
    %c0_150 = arith.constant 0 : index
    %c0_151 = arith.constant 0 : index
    %245 = vector.load %arg1[%c0_148, %c9_149, %c0_150, %c0_151] : memref<1x18x18x4xbf16, #tpu.memory_space<vmem>>, vector<1x1x18x4xbf16>
    %246 = vector.shape_cast %245 : vector<1x1x18x4xbf16> to vector<18x4xbf16>
    %247 = vector.extract_strided_slice %246 {offsets = [0, 0], sizes = [14, 4], strides = [1, 1]} : vector<18x4xbf16> to vector<14x4xbf16>
    %248 = vector.extract_strided_slice %246 {offsets = [1, 0], sizes = [14, 4], strides = [1, 1]} : vector<18x4xbf16> to vector<14x4xbf16>
    %249 = vector.extract_strided_slice %246 {offsets = [2, 0], sizes = [14, 4], strides = [1, 1]} : vector<18x4xbf16> to vector<14x4xbf16>
    %250 = vector.extract_strided_slice %246 {offsets = [3, 0], sizes = [14, 4], strides = [1, 1]} : vector<18x4xbf16> to vector<14x4xbf16>
    %c0_152 = arith.constant 0 : index
    %c10 = arith.constant 10 : index
    %c0_153 = arith.constant 0 : index
    %c0_154 = arith.constant 0 : index
    %251 = vector.load %arg1[%c0_152, %c10, %c0_153, %c0_154] : memref<1x18x18x4xbf16, #tpu.memory_space<vmem>>, vector<1x1x18x4xbf16>
    %252 = vector.shape_cast %251 : vector<1x1x18x4xbf16> to vector<18x4xbf16>
    %253 = vector.extract_strided_slice %252 {offsets = [0, 0], sizes = [14, 4], strides = [1, 1]} : vector<18x4xbf16> to vector<14x4xbf16>
    %254 = vector.extract_strided_slice %252 {offsets = [1, 0], sizes = [14, 4], strides = [1, 1]} : vector<18x4xbf16> to vector<14x4xbf16>
    %255 = vector.extract_strided_slice %252 {offsets = [2, 0], sizes = [14, 4], strides = [1, 1]} : vector<18x4xbf16> to vector<14x4xbf16>
    %256 = vector.extract_strided_slice %252 {offsets = [3, 0], sizes = [14, 4], strides = [1, 1]} : vector<18x4xbf16> to vector<14x4xbf16>
    %257 = tpu.concatenate %235, %236, %237, %238, %241, %242, %243, %244, %247, %248, %249, %250, %253, %254, %255, %256 in 1 : vector<14x4xbf16>, vector<14x4xbf16>, vector<14x4xbf16>, vector<14x4xbf16>, vector<14x4xbf16>, vector<14x4xbf16>, vector<14x4xbf16>, vector<14x4xbf16>, vector<14x4xbf16>, vector<14x4xbf16>, vector<14x4xbf16>, vector<14x4xbf16>, vector<14x4xbf16>, vector<14x4xbf16>, vector<14x4xbf16>, vector<14x4xbf16> -> vector<14x64xbf16>
    %cst_155 = arith.constant dense<0.000000e+00> : vector<14x16xf32>
    %258 = tpu.matmul %257, %0, %cst_155 {dimension_numbers = #tpu.dot_dimension_numbers<[1], [0], [0], [1], [0, 0, 1, 1], [], []>} : vector<14x64xbf16>, vector<64x16xbf16>, vector<14x16xf32> -> vector<14x16xf32>
    %259 = vector.broadcast %1 : vector<1x16xf32> to vector<14x16xf32>
    %260 = arith.addf %258, %259 : vector<14x16xf32>
    %cst_156 = arith.constant 0.000000e+00 : f32
    %261 = vector.broadcast %cst_156 : f32 to vector<14x16xf32>
    %262 = arith.maximumf %260, %261 : vector<14x16xf32>
    %c7_157 = arith.constant 7 : index
    %c0_158 = arith.constant 0 : index
    %c0_159 = arith.constant 0 : index
    %263 = vector.load %arg5[%c7_157, %c0_158, %c0_159] : memref<14x14x16xf32, #tpu.memory_space<vmem>>, vector<1x14x16xf32>
    %264 = vector.shape_cast %263 : vector<1x14x16xf32> to vector<14x16xf32>
    %265 = vector.shape_cast %262 : vector<14x16xf32> to vector<1x14x16xf32>
    tpu.vector_store %arg5[%c7_157, %c0_158, %c0_159], %265 {strides = array<i32>} : memref<14x14x16xf32, #tpu.memory_space<vmem>>, vector<1x14x16xf32>,
    %c0_160 = arith.constant 0 : index
    %c8_161 = arith.constant 8 : index
    %c0_162 = arith.constant 0 : index
    %c0_163 = arith.constant 0 : index
    %266 = vector.load %arg1[%c0_160, %c8_161, %c0_162, %c0_163] : memref<1x18x18x4xbf16, #tpu.memory_space<vmem>>, vector<1x1x18x4xbf16>
    %267 = vector.shape_cast %266 : vector<1x1x18x4xbf16> to vector<18x4xbf16>
    %268 = vector.extract_strided_slice %267 {offsets = [0, 0], sizes = [14, 4], strides = [1, 1]} : vector<18x4xbf16> to vector<14x4xbf16>
    %269 = vector.extract_strided_slice %267 {offsets = [1, 0], sizes = [14, 4], strides = [1, 1]} : vector<18x4xbf16> to vector<14x4xbf16>
    %270 = vector.extract_strided_slice %267 {offsets = [2, 0], sizes = [14, 4], strides = [1, 1]} : vector<18x4xbf16> to vector<14x4xbf16>
    %271 = vector.extract_strided_slice %267 {offsets = [3, 0], sizes = [14, 4], strides = [1, 1]} : vector<18x4xbf16> to vector<14x4xbf16>
    %c0_164 = arith.constant 0 : index
    %c9_165 = arith.constant 9 : index
    %c0_166 = arith.constant 0 : index
    %c0_167 = arith.constant 0 : index
    %272 = vector.load %arg1[%c0_164, %c9_165, %c0_166, %c0_167] : memref<1x18x18x4xbf16, #tpu.memory_space<vmem>>, vector<1x1x18x4xbf16>
    %273 = vector.shape_cast %272 : vector<1x1x18x4xbf16> to vector<18x4xbf16>
    %274 = vector.extract_strided_slice %273 {offsets = [0, 0], sizes = [14, 4], strides = [1, 1]} : vector<18x4xbf16> to vector<14x4xbf16>
    %275 = vector.extract_strided_slice %273 {offsets = [1, 0], sizes = [14, 4], strides = [1, 1]} : vector<18x4xbf16> to vector<14x4xbf16>
    %276 = vector.extract_strided_slice %273 {offsets = [2, 0], sizes = [14, 4], strides = [1, 1]} : vector<18x4xbf16> to vector<14x4xbf16>
    %277 = vector.extract_strided_slice %273 {offsets = [3, 0], sizes = [14, 4], strides = [1, 1]} : vector<18x4xbf16> to vector<14x4xbf16>
    %c0_168 = arith.constant 0 : index
    %c10_169 = arith.constant 10 : index
    %c0_170 = arith.constant 0 : index
    %c0_171 = arith.constant 0 : index
    %278 = vector.load %arg1[%c0_168, %c10_169, %c0_170, %c0_171] : memref<1x18x18x4xbf16, #tpu.memory_space<vmem>>, vector<1x1x18x4xbf16>
    %279 = vector.shape_cast %278 : vector<1x1x18x4xbf16> to vector<18x4xbf16>
    %280 = vector.extract_strided_slice %279 {offsets = [0, 0], sizes = [14, 4], strides = [1, 1]} : vector<18x4xbf16> to vector<14x4xbf16>
    %281 = vector.extract_strided_slice %279 {offsets = [1, 0], sizes = [14, 4], strides = [1, 1]} : vector<18x4xbf16> to vector<14x4xbf16>
    %282 = vector.extract_strided_slice %279 {offsets = [2, 0], sizes = [14, 4], strides = [1, 1]} : vector<18x4xbf16> to vector<14x4xbf16>
    %283 = vector.extract_strided_slice %279 {offsets = [3, 0], sizes = [14, 4], strides = [1, 1]} : vector<18x4xbf16> to vector<14x4xbf16>
    %c0_172 = arith.constant 0 : index
    %c11 = arith.constant 11 : index
    %c0_173 = arith.constant 0 : index
    %c0_174 = arith.constant 0 : index
    %284 = vector.load %arg1[%c0_172, %c11, %c0_173, %c0_174] : memref<1x18x18x4xbf16, #tpu.memory_space<vmem>>, vector<1x1x18x4xbf16>
    %285 = vector.shape_cast %284 : vector<1x1x18x4xbf16> to vector<18x4xbf16>
    %286 = vector.extract_strided_slice %285 {offsets = [0, 0], sizes = [14, 4], strides = [1, 1]} : vector<18x4xbf16> to vector<14x4xbf16>
    %287 = vector.extract_strided_slice %285 {offsets = [1, 0], sizes = [14, 4], strides = [1, 1]} : vector<18x4xbf16> to vector<14x4xbf16>
    %288 = vector.extract_strided_slice %285 {offsets = [2, 0], sizes = [14, 4], strides = [1, 1]} : vector<18x4xbf16> to vector<14x4xbf16>
    %289 = vector.extract_strided_slice %285 {offsets = [3, 0], sizes = [14, 4], strides = [1, 1]} : vector<18x4xbf16> to vector<14x4xbf16>
    %290 = tpu.concatenate %268, %269, %270, %271, %274, %275, %276, %277, %280, %281, %282, %283, %286, %287, %288, %289 in 1 : vector<14x4xbf16>, vector<14x4xbf16>, vector<14x4xbf16>, vector<14x4xbf16>, vector<14x4xbf16>, vector<14x4xbf16>, vector<14x4xbf16>, vector<14x4xbf16>, vector<14x4xbf16>, vector<14x4xbf16>, vector<14x4xbf16>, vector<14x4xbf16>, vector<14x4xbf16>, vector<14x4xbf16>, vector<14x4xbf16>, vector<14x4xbf16> -> vector<14x64xbf16>
    %cst_175 = arith.constant dense<0.000000e+00> : vector<14x16xf32>
    %291 = tpu.matmul %290, %0, %cst_175 {dimension_numbers = #tpu.dot_dimension_numbers<[1], [0], [0], [1], [0, 0, 1, 1], [], []>} : vector<14x64xbf16>, vector<64x16xbf16>, vector<14x16xf32> -> vector<14x16xf32>
    %292 = vector.broadcast %1 : vector<1x16xf32> to vector<14x16xf32>
    %293 = arith.addf %291, %292 : vector<14x16xf32>
    %cst_176 = arith.constant 0.000000e+00 : f32
    %294 = vector.broadcast %cst_176 : f32 to vector<14x16xf32>
    %295 = arith.maximumf %293, %294 : vector<14x16xf32>
    %c8_177 = arith.constant 8 : index
    %c0_178 = arith.constant 0 : index
    %c0_179 = arith.constant 0 : index
    %296 = vector.load %arg5[%c8_177, %c0_178, %c0_179] : memref<14x14x16xf32, #tpu.memory_space<vmem>>, vector<1x14x16xf32>
    %297 = vector.shape_cast %296 : vector<1x14x16xf32> to vector<14x16xf32>
    %298 = vector.shape_cast %295 : vector<14x16xf32> to vector<1x14x16xf32>
    tpu.vector_store %arg5[%c8_177, %c0_178, %c0_179], %298 {strides = array<i32>} : memref<14x14x16xf32, #tpu.memory_space<vmem>>, vector<1x14x16xf32>,
    %c0_180 = arith.constant 0 : index
    %c9_181 = arith.constant 9 : index
    %c0_182 = arith.constant 0 : index
    %c0_183 = arith.constant 0 : index
    %299 = vector.load %arg1[%c0_180, %c9_181, %c0_182, %c0_183] : memref<1x18x18x4xbf16, #tpu.memory_space<vmem>>, vector<1x1x18x4xbf16>
    %300 = vector.shape_cast %299 : vector<1x1x18x4xbf16> to vector<18x4xbf16>
    %301 = vector.extract_strided_slice %300 {offsets = [0, 0], sizes = [14, 4], strides = [1, 1]} : vector<18x4xbf16> to vector<14x4xbf16>
    %302 = vector.extract_strided_slice %300 {offsets = [1, 0], sizes = [14, 4], strides = [1, 1]} : vector<18x4xbf16> to vector<14x4xbf16>
    %303 = vector.extract_strided_slice %300 {offsets = [2, 0], sizes = [14, 4], strides = [1, 1]} : vector<18x4xbf16> to vector<14x4xbf16>
    %304 = vector.extract_strided_slice %300 {offsets = [3, 0], sizes = [14, 4], strides = [1, 1]} : vector<18x4xbf16> to vector<14x4xbf16>
    %c0_184 = arith.constant 0 : index
    %c10_185 = arith.constant 10 : index
    %c0_186 = arith.constant 0 : index
    %c0_187 = arith.constant 0 : index
    %305 = vector.load %arg1[%c0_184, %c10_185, %c0_186, %c0_187] : memref<1x18x18x4xbf16, #tpu.memory_space<vmem>>, vector<1x1x18x4xbf16>
    %306 = vector.shape_cast %305 : vector<1x1x18x4xbf16> to vector<18x4xbf16>
    %307 = vector.extract_strided_slice %306 {offsets = [0, 0], sizes = [14, 4], strides = [1, 1]} : vector<18x4xbf16> to vector<14x4xbf16>
    %308 = vector.extract_strided_slice %306 {offsets = [1, 0], sizes = [14, 4], strides = [1, 1]} : vector<18x4xbf16> to vector<14x4xbf16>
    %309 = vector.extract_strided_slice %306 {offsets = [2, 0], sizes = [14, 4], strides = [1, 1]} : vector<18x4xbf16> to vector<14x4xbf16>
    %310 = vector.extract_strided_slice %306 {offsets = [3, 0], sizes = [14, 4], strides = [1, 1]} : vector<18x4xbf16> to vector<14x4xbf16>
    %c0_188 = arith.constant 0 : index
    %c11_189 = arith.constant 11 : index
    %c0_190 = arith.constant 0 : index
    %c0_191 = arith.constant 0 : index
    %311 = vector.load %arg1[%c0_188, %c11_189, %c0_190, %c0_191] : memref<1x18x18x4xbf16, #tpu.memory_space<vmem>>, vector<1x1x18x4xbf16>
    %312 = vector.shape_cast %311 : vector<1x1x18x4xbf16> to vector<18x4xbf16>
    %313 = vector.extract_strided_slice %312 {offsets = [0, 0], sizes = [14, 4], strides = [1, 1]} : vector<18x4xbf16> to vector<14x4xbf16>
    %314 = vector.extract_strided_slice %312 {offsets = [1, 0], sizes = [14, 4], strides = [1, 1]} : vector<18x4xbf16> to vector<14x4xbf16>
    %315 = vector.extract_strided_slice %312 {offsets = [2, 0], sizes = [14, 4], strides = [1, 1]} : vector<18x4xbf16> to vector<14x4xbf16>
    %316 = vector.extract_strided_slice %312 {offsets = [3, 0], sizes = [14, 4], strides = [1, 1]} : vector<18x4xbf16> to vector<14x4xbf16>
    %c0_192 = arith.constant 0 : index
    %c12 = arith.constant 12 : index
    %c0_193 = arith.constant 0 : index
    %c0_194 = arith.constant 0 : index
    %317 = vector.load %arg1[%c0_192, %c12, %c0_193, %c0_194] : memref<1x18x18x4xbf16, #tpu.memory_space<vmem>>, vector<1x1x18x4xbf16>
    %318 = vector.shape_cast %317 : vector<1x1x18x4xbf16> to vector<18x4xbf16>
    %319 = vector.extract_strided_slice %318 {offsets = [0, 0], sizes = [14, 4], strides = [1, 1]} : vector<18x4xbf16> to vector<14x4xbf16>
    %320 = vector.extract_strided_slice %318 {offsets = [1, 0], sizes = [14, 4], strides = [1, 1]} : vector<18x4xbf16> to vector<14x4xbf16>
    %321 = vector.extract_strided_slice %318 {offsets = [2, 0], sizes = [14, 4], strides = [1, 1]} : vector<18x4xbf16> to vector<14x4xbf16>
    %322 = vector.extract_strided_slice %318 {offsets = [3, 0], sizes = [14, 4], strides = [1, 1]} : vector<18x4xbf16> to vector<14x4xbf16>
    %323 = tpu.concatenate %301, %302, %303, %304, %307, %308, %309, %310, %313, %314, %315, %316, %319, %320, %321, %322 in 1 : vector<14x4xbf16>, vector<14x4xbf16>, vector<14x4xbf16>, vector<14x4xbf16>, vector<14x4xbf16>, vector<14x4xbf16>, vector<14x4xbf16>, vector<14x4xbf16>, vector<14x4xbf16>, vector<14x4xbf16>, vector<14x4xbf16>, vector<14x4xbf16>, vector<14x4xbf16>, vector<14x4xbf16>, vector<14x4xbf16>, vector<14x4xbf16> -> vector<14x64xbf16>
    %cst_195 = arith.constant dense<0.000000e+00> : vector<14x16xf32>
    %324 = tpu.matmul %323, %0, %cst_195 {dimension_numbers = #tpu.dot_dimension_numbers<[1], [0], [0], [1], [0, 0, 1, 1], [], []>} : vector<14x64xbf16>, vector<64x16xbf16>, vector<14x16xf32> -> vector<14x16xf32>
    %325 = vector.broadcast %1 : vector<1x16xf32> to vector<14x16xf32>
    %326 = arith.addf %324, %325 : vector<14x16xf32>
    %cst_196 = arith.constant 0.000000e+00 : f32
    %327 = vector.broadcast %cst_196 : f32 to vector<14x16xf32>
    %328 = arith.maximumf %326, %327 : vector<14x16xf32>
    %c9_197 = arith.constant 9 : index
    %c0_198 = arith.constant 0 : index
    %c0_199 = arith.constant 0 : index
    %329 = vector.load %arg5[%c9_197, %c0_198, %c0_199] : memref<14x14x16xf32, #tpu.memory_space<vmem>>, vector<1x14x16xf32>
    %330 = vector.shape_cast %329 : vector<1x14x16xf32> to vector<14x16xf32>
    %331 = vector.shape_cast %328 : vector<14x16xf32> to vector<1x14x16xf32>
    tpu.vector_store %arg5[%c9_197, %c0_198, %c0_199], %331 {strides = array<i32>} : memref<14x14x16xf32, #tpu.memory_space<vmem>>, vector<1x14x16xf32>,
    %c0_200 = arith.constant 0 : index
    %c10_201 = arith.constant 10 : index
    %c0_202 = arith.constant 0 : index
    %c0_203 = arith.constant 0 : index
    %332 = vector.load %arg1[%c0_200, %c10_201, %c0_202, %c0_203] : memref<1x18x18x4xbf16, #tpu.memory_space<vmem>>, vector<1x1x18x4xbf16>
    %333 = vector.shape_cast %332 : vector<1x1x18x4xbf16> to vector<18x4xbf16>
    %334 = vector.extract_strided_slice %333 {offsets = [0, 0], sizes = [14, 4], strides = [1, 1]} : vector<18x4xbf16> to vector<14x4xbf16>
    %335 = vector.extract_strided_slice %333 {offsets = [1, 0], sizes = [14, 4], strides = [1, 1]} : vector<18x4xbf16> to vector<14x4xbf16>
    %336 = vector.extract_strided_slice %333 {offsets = [2, 0], sizes = [14, 4], strides = [1, 1]} : vector<18x4xbf16> to vector<14x4xbf16>
    %337 = vector.extract_strided_slice %333 {offsets = [3, 0], sizes = [14, 4], strides = [1, 1]} : vector<18x4xbf16> to vector<14x4xbf16>
    %c0_204 = arith.constant 0 : index
    %c11_205 = arith.constant 11 : index
    %c0_206 = arith.constant 0 : index
    %c0_207 = arith.constant 0 : index
    %338 = vector.load %arg1[%c0_204, %c11_205, %c0_206, %c0_207] : memref<1x18x18x4xbf16, #tpu.memory_space<vmem>>, vector<1x1x18x4xbf16>
    %339 = vector.shape_cast %338 : vector<1x1x18x4xbf16> to vector<18x4xbf16>
    %340 = vector.extract_strided_slice %339 {offsets = [0, 0], sizes = [14, 4], strides = [1, 1]} : vector<18x4xbf16> to vector<14x4xbf16>
    %341 = vector.extract_strided_slice %339 {offsets = [1, 0], sizes = [14, 4], strides = [1, 1]} : vector<18x4xbf16> to vector<14x4xbf16>
    %342 = vector.extract_strided_slice %339 {offsets = [2, 0], sizes = [14, 4], strides = [1, 1]} : vector<18x4xbf16> to vector<14x4xbf16>
    %343 = vector.extract_strided_slice %339 {offsets = [3, 0], sizes = [14, 4], strides = [1, 1]} : vector<18x4xbf16> to vector<14x4xbf16>
    %c0_208 = arith.constant 0 : index
    %c12_209 = arith.constant 12 : index
    %c0_210 = arith.constant 0 : index
    %c0_211 = arith.constant 0 : index
    %344 = vector.load %arg1[%c0_208, %c12_209, %c0_210, %c0_211] : memref<1x18x18x4xbf16, #tpu.memory_space<vmem>>, vector<1x1x18x4xbf16>
    %345 = vector.shape_cast %344 : vector<1x1x18x4xbf16> to vector<18x4xbf16>
    %346 = vector.extract_strided_slice %345 {offsets = [0, 0], sizes = [14, 4], strides = [1, 1]} : vector<18x4xbf16> to vector<14x4xbf16>
    %347 = vector.extract_strided_slice %345 {offsets = [1, 0], sizes = [14, 4], strides = [1, 1]} : vector<18x4xbf16> to vector<14x4xbf16>
    %348 = vector.extract_strided_slice %345 {offsets = [2, 0], sizes = [14, 4], strides = [1, 1]} : vector<18x4xbf16> to vector<14x4xbf16>
    %349 = vector.extract_strided_slice %345 {offsets = [3, 0], sizes = [14, 4], strides = [1, 1]} : vector<18x4xbf16> to vector<14x4xbf16>
    %c0_212 = arith.constant 0 : index
    %c13 = arith.constant 13 : index
    %c0_213 = arith.constant 0 : index
    %c0_214 = arith.constant 0 : index
    %350 = vector.load %arg1[%c0_212, %c13, %c0_213, %c0_214] : memref<1x18x18x4xbf16, #tpu.memory_space<vmem>>, vector<1x1x18x4xbf16>
    %351 = vector.shape_cast %350 : vector<1x1x18x4xbf16> to vector<18x4xbf16>
    %352 = vector.extract_strided_slice %351 {offsets = [0, 0], sizes = [14, 4], strides = [1, 1]} : vector<18x4xbf16> to vector<14x4xbf16>
    %353 = vector.extract_strided_slice %351 {offsets = [1, 0], sizes = [14, 4], strides = [1, 1]} : vector<18x4xbf16> to vector<14x4xbf16>
    %354 = vector.extract_strided_slice %351 {offsets = [2, 0], sizes = [14, 4], strides = [1, 1]} : vector<18x4xbf16> to vector<14x4xbf16>
    %355 = vector.extract_strided_slice %351 {offsets = [3, 0], sizes = [14, 4], strides = [1, 1]} : vector<18x4xbf16> to vector<14x4xbf16>
    %356 = tpu.concatenate %334, %335, %336, %337, %340, %341, %342, %343, %346, %347, %348, %349, %352, %353, %354, %355 in 1 : vector<14x4xbf16>, vector<14x4xbf16>, vector<14x4xbf16>, vector<14x4xbf16>, vector<14x4xbf16>, vector<14x4xbf16>, vector<14x4xbf16>, vector<14x4xbf16>, vector<14x4xbf16>, vector<14x4xbf16>, vector<14x4xbf16>, vector<14x4xbf16>, vector<14x4xbf16>, vector<14x4xbf16>, vector<14x4xbf16>, vector<14x4xbf16> -> vector<14x64xbf16>
    %cst_215 = arith.constant dense<0.000000e+00> : vector<14x16xf32>
    %357 = tpu.matmul %356, %0, %cst_215 {dimension_numbers = #tpu.dot_dimension_numbers<[1], [0], [0], [1], [0, 0, 1, 1], [], []>} : vector<14x64xbf16>, vector<64x16xbf16>, vector<14x16xf32> -> vector<14x16xf32>
    %358 = vector.broadcast %1 : vector<1x16xf32> to vector<14x16xf32>
    %359 = arith.addf %357, %358 : vector<14x16xf32>
    %cst_216 = arith.constant 0.000000e+00 : f32
    %360 = vector.broadcast %cst_216 : f32 to vector<14x16xf32>
    %361 = arith.maximumf %359, %360 : vector<14x16xf32>
    %c10_217 = arith.constant 10 : index
    %c0_218 = arith.constant 0 : index
    %c0_219 = arith.constant 0 : index
    %362 = vector.load %arg5[%c10_217, %c0_218, %c0_219] : memref<14x14x16xf32, #tpu.memory_space<vmem>>, vector<1x14x16xf32>
    %363 = vector.shape_cast %362 : vector<1x14x16xf32> to vector<14x16xf32>
    %364 = vector.shape_cast %361 : vector<14x16xf32> to vector<1x14x16xf32>
    tpu.vector_store %arg5[%c10_217, %c0_218, %c0_219], %364 {strides = array<i32>} : memref<14x14x16xf32, #tpu.memory_space<vmem>>, vector<1x14x16xf32>,
    %c0_220 = arith.constant 0 : index
    %c11_221 = arith.constant 11 : index
    %c0_222 = arith.constant 0 : index
    %c0_223 = arith.constant 0 : index
    %365 = vector.load %arg1[%c0_220, %c11_221, %c0_222, %c0_223] : memref<1x18x18x4xbf16, #tpu.memory_space<vmem>>, vector<1x1x18x4xbf16>
    %366 = vector.shape_cast %365 : vector<1x1x18x4xbf16> to vector<18x4xbf16>
    %367 = vector.extract_strided_slice %366 {offsets = [0, 0], sizes = [14, 4], strides = [1, 1]} : vector<18x4xbf16> to vector<14x4xbf16>
    %368 = vector.extract_strided_slice %366 {offsets = [1, 0], sizes = [14, 4], strides = [1, 1]} : vector<18x4xbf16> to vector<14x4xbf16>
    %369 = vector.extract_strided_slice %366 {offsets = [2, 0], sizes = [14, 4], strides = [1, 1]} : vector<18x4xbf16> to vector<14x4xbf16>
    %370 = vector.extract_strided_slice %366 {offsets = [3, 0], sizes = [14, 4], strides = [1, 1]} : vector<18x4xbf16> to vector<14x4xbf16>
    %c0_224 = arith.constant 0 : index
    %c12_225 = arith.constant 12 : index
    %c0_226 = arith.constant 0 : index
    %c0_227 = arith.constant 0 : index
    %371 = vector.load %arg1[%c0_224, %c12_225, %c0_226, %c0_227] : memref<1x18x18x4xbf16, #tpu.memory_space<vmem>>, vector<1x1x18x4xbf16>
    %372 = vector.shape_cast %371 : vector<1x1x18x4xbf16> to vector<18x4xbf16>
    %373 = vector.extract_strided_slice %372 {offsets = [0, 0], sizes = [14, 4], strides = [1, 1]} : vector<18x4xbf16> to vector<14x4xbf16>
    %374 = vector.extract_strided_slice %372 {offsets = [1, 0], sizes = [14, 4], strides = [1, 1]} : vector<18x4xbf16> to vector<14x4xbf16>
    %375 = vector.extract_strided_slice %372 {offsets = [2, 0], sizes = [14, 4], strides = [1, 1]} : vector<18x4xbf16> to vector<14x4xbf16>
    %376 = vector.extract_strided_slice %372 {offsets = [3, 0], sizes = [14, 4], strides = [1, 1]} : vector<18x4xbf16> to vector<14x4xbf16>
    %c0_228 = arith.constant 0 : index
    %c13_229 = arith.constant 13 : index
    %c0_230 = arith.constant 0 : index
    %c0_231 = arith.constant 0 : index
    %377 = vector.load %arg1[%c0_228, %c13_229, %c0_230, %c0_231] : memref<1x18x18x4xbf16, #tpu.memory_space<vmem>>, vector<1x1x18x4xbf16>
    %378 = vector.shape_cast %377 : vector<1x1x18x4xbf16> to vector<18x4xbf16>
    %379 = vector.extract_strided_slice %378 {offsets = [0, 0], sizes = [14, 4], strides = [1, 1]} : vector<18x4xbf16> to vector<14x4xbf16>
    %380 = vector.extract_strided_slice %378 {offsets = [1, 0], sizes = [14, 4], strides = [1, 1]} : vector<18x4xbf16> to vector<14x4xbf16>
    %381 = vector.extract_strided_slice %378 {offsets = [2, 0], sizes = [14, 4], strides = [1, 1]} : vector<18x4xbf16> to vector<14x4xbf16>
    %382 = vector.extract_strided_slice %378 {offsets = [3, 0], sizes = [14, 4], strides = [1, 1]} : vector<18x4xbf16> to vector<14x4xbf16>
    %c0_232 = arith.constant 0 : index
    %c14 = arith.constant 14 : index
    %c0_233 = arith.constant 0 : index
    %c0_234 = arith.constant 0 : index
    %383 = vector.load %arg1[%c0_232, %c14, %c0_233, %c0_234] : memref<1x18x18x4xbf16, #tpu.memory_space<vmem>>, vector<1x1x18x4xbf16>
    %384 = vector.shape_cast %383 : vector<1x1x18x4xbf16> to vector<18x4xbf16>
    %385 = vector.extract_strided_slice %384 {offsets = [0, 0], sizes = [14, 4], strides = [1, 1]} : vector<18x4xbf16> to vector<14x4xbf16>
    %386 = vector.extract_strided_slice %384 {offsets = [1, 0], sizes = [14, 4], strides = [1, 1]} : vector<18x4xbf16> to vector<14x4xbf16>
    %387 = vector.extract_strided_slice %384 {offsets = [2, 0], sizes = [14, 4], strides = [1, 1]} : vector<18x4xbf16> to vector<14x4xbf16>
    %388 = vector.extract_strided_slice %384 {offsets = [3, 0], sizes = [14, 4], strides = [1, 1]} : vector<18x4xbf16> to vector<14x4xbf16>
    %389 = tpu.concatenate %367, %368, %369, %370, %373, %374, %375, %376, %379, %380, %381, %382, %385, %386, %387, %388 in 1 : vector<14x4xbf16>, vector<14x4xbf16>, vector<14x4xbf16>, vector<14x4xbf16>, vector<14x4xbf16>, vector<14x4xbf16>, vector<14x4xbf16>, vector<14x4xbf16>, vector<14x4xbf16>, vector<14x4xbf16>, vector<14x4xbf16>, vector<14x4xbf16>, vector<14x4xbf16>, vector<14x4xbf16>, vector<14x4xbf16>, vector<14x4xbf16> -> vector<14x64xbf16>
    %cst_235 = arith.constant dense<0.000000e+00> : vector<14x16xf32>
    %390 = tpu.matmul %389, %0, %cst_235 {dimension_numbers = #tpu.dot_dimension_numbers<[1], [0], [0], [1], [0, 0, 1, 1], [], []>} : vector<14x64xbf16>, vector<64x16xbf16>, vector<14x16xf32> -> vector<14x16xf32>
    %391 = vector.broadcast %1 : vector<1x16xf32> to vector<14x16xf32>
    %392 = arith.addf %390, %391 : vector<14x16xf32>
    %cst_236 = arith.constant 0.000000e+00 : f32
    %393 = vector.broadcast %cst_236 : f32 to vector<14x16xf32>
    %394 = arith.maximumf %392, %393 : vector<14x16xf32>
    %c11_237 = arith.constant 11 : index
    %c0_238 = arith.constant 0 : index
    %c0_239 = arith.constant 0 : index
    %395 = vector.load %arg5[%c11_237, %c0_238, %c0_239] : memref<14x14x16xf32, #tpu.memory_space<vmem>>, vector<1x14x16xf32>
    %396 = vector.shape_cast %395 : vector<1x14x16xf32> to vector<14x16xf32>
    %397 = vector.shape_cast %394 : vector<14x16xf32> to vector<1x14x16xf32>
    tpu.vector_store %arg5[%c11_237, %c0_238, %c0_239], %397 {strides = array<i32>} : memref<14x14x16xf32, #tpu.memory_space<vmem>>, vector<1x14x16xf32>,
    %c0_240 = arith.constant 0 : index
    %c12_241 = arith.constant 12 : index
    %c0_242 = arith.constant 0 : index
    %c0_243 = arith.constant 0 : index
    %398 = vector.load %arg1[%c0_240, %c12_241, %c0_242, %c0_243] : memref<1x18x18x4xbf16, #tpu.memory_space<vmem>>, vector<1x1x18x4xbf16>
    %399 = vector.shape_cast %398 : vector<1x1x18x4xbf16> to vector<18x4xbf16>
    %400 = vector.extract_strided_slice %399 {offsets = [0, 0], sizes = [14, 4], strides = [1, 1]} : vector<18x4xbf16> to vector<14x4xbf16>
    %401 = vector.extract_strided_slice %399 {offsets = [1, 0], sizes = [14, 4], strides = [1, 1]} : vector<18x4xbf16> to vector<14x4xbf16>
    %402 = vector.extract_strided_slice %399 {offsets = [2, 0], sizes = [14, 4], strides = [1, 1]} : vector<18x4xbf16> to vector<14x4xbf16>
    %403 = vector.extract_strided_slice %399 {offsets = [3, 0], sizes = [14, 4], strides = [1, 1]} : vector<18x4xbf16> to vector<14x4xbf16>
    %c0_244 = arith.constant 0 : index
    %c13_245 = arith.constant 13 : index
    %c0_246 = arith.constant 0 : index
    %c0_247 = arith.constant 0 : index
    %404 = vector.load %arg1[%c0_244, %c13_245, %c0_246, %c0_247] : memref<1x18x18x4xbf16, #tpu.memory_space<vmem>>, vector<1x1x18x4xbf16>
    %405 = vector.shape_cast %404 : vector<1x1x18x4xbf16> to vector<18x4xbf16>
    %406 = vector.extract_strided_slice %405 {offsets = [0, 0], sizes = [14, 4], strides = [1, 1]} : vector<18x4xbf16> to vector<14x4xbf16>
    %407 = vector.extract_strided_slice %405 {offsets = [1, 0], sizes = [14, 4], strides = [1, 1]} : vector<18x4xbf16> to vector<14x4xbf16>
    %408 = vector.extract_strided_slice %405 {offsets = [2, 0], sizes = [14, 4], strides = [1, 1]} : vector<18x4xbf16> to vector<14x4xbf16>
    %409 = vector.extract_strided_slice %405 {offsets = [3, 0], sizes = [14, 4], strides = [1, 1]} : vector<18x4xbf16> to vector<14x4xbf16>
    %c0_248 = arith.constant 0 : index
    %c14_249 = arith.constant 14 : index
    %c0_250 = arith.constant 0 : index
    %c0_251 = arith.constant 0 : index
    %410 = vector.load %arg1[%c0_248, %c14_249, %c0_250, %c0_251] : memref<1x18x18x4xbf16, #tpu.memory_space<vmem>>, vector<1x1x18x4xbf16>
    %411 = vector.shape_cast %410 : vector<1x1x18x4xbf16> to vector<18x4xbf16>
    %412 = vector.extract_strided_slice %411 {offsets = [0, 0], sizes = [14, 4], strides = [1, 1]} : vector<18x4xbf16> to vector<14x4xbf16>
    %413 = vector.extract_strided_slice %411 {offsets = [1, 0], sizes = [14, 4], strides = [1, 1]} : vector<18x4xbf16> to vector<14x4xbf16>
    %414 = vector.extract_strided_slice %411 {offsets = [2, 0], sizes = [14, 4], strides = [1, 1]} : vector<18x4xbf16> to vector<14x4xbf16>
    %415 = vector.extract_strided_slice %411 {offsets = [3, 0], sizes = [14, 4], strides = [1, 1]} : vector<18x4xbf16> to vector<14x4xbf16>
    %c0_252 = arith.constant 0 : index
    %c15 = arith.constant 15 : index
    %c0_253 = arith.constant 0 : index
    %c0_254 = arith.constant 0 : index
    %416 = vector.load %arg1[%c0_252, %c15, %c0_253, %c0_254] : memref<1x18x18x4xbf16, #tpu.memory_space<vmem>>, vector<1x1x18x4xbf16>
    %417 = vector.shape_cast %416 : vector<1x1x18x4xbf16> to vector<18x4xbf16>
    %418 = vector.extract_strided_slice %417 {offsets = [0, 0], sizes = [14, 4], strides = [1, 1]} : vector<18x4xbf16> to vector<14x4xbf16>
    %419 = vector.extract_strided_slice %417 {offsets = [1, 0], sizes = [14, 4], strides = [1, 1]} : vector<18x4xbf16> to vector<14x4xbf16>
    %420 = vector.extract_strided_slice %417 {offsets = [2, 0], sizes = [14, 4], strides = [1, 1]} : vector<18x4xbf16> to vector<14x4xbf16>
    %421 = vector.extract_strided_slice %417 {offsets = [3, 0], sizes = [14, 4], strides = [1, 1]} : vector<18x4xbf16> to vector<14x4xbf16>
    %422 = tpu.concatenate %400, %401, %402, %403, %406, %407, %408, %409, %412, %413, %414, %415, %418, %419, %420, %421 in 1 : vector<14x4xbf16>, vector<14x4xbf16>, vector<14x4xbf16>, vector<14x4xbf16>, vector<14x4xbf16>, vector<14x4xbf16>, vector<14x4xbf16>, vector<14x4xbf16>, vector<14x4xbf16>, vector<14x4xbf16>, vector<14x4xbf16>, vector<14x4xbf16>, vector<14x4xbf16>, vector<14x4xbf16>, vector<14x4xbf16>, vector<14x4xbf16> -> vector<14x64xbf16>
    %cst_255 = arith.constant dense<0.000000e+00> : vector<14x16xf32>
    %423 = tpu.matmul %422, %0, %cst_255 {dimension_numbers = #tpu.dot_dimension_numbers<[1], [0], [0], [1], [0, 0, 1, 1], [], []>} : vector<14x64xbf16>, vector<64x16xbf16>, vector<14x16xf32> -> vector<14x16xf32>
    %424 = vector.broadcast %1 : vector<1x16xf32> to vector<14x16xf32>
    %425 = arith.addf %423, %424 : vector<14x16xf32>
    %cst_256 = arith.constant 0.000000e+00 : f32
    %426 = vector.broadcast %cst_256 : f32 to vector<14x16xf32>
    %427 = arith.maximumf %425, %426 : vector<14x16xf32>
    %c12_257 = arith.constant 12 : index
    %c0_258 = arith.constant 0 : index
    %c0_259 = arith.constant 0 : index
    %428 = vector.load %arg5[%c12_257, %c0_258, %c0_259] : memref<14x14x16xf32, #tpu.memory_space<vmem>>, vector<1x14x16xf32>
    %429 = vector.shape_cast %428 : vector<1x14x16xf32> to vector<14x16xf32>
    %430 = vector.shape_cast %427 : vector<14x16xf32> to vector<1x14x16xf32>
    tpu.vector_store %arg5[%c12_257, %c0_258, %c0_259], %430 {strides = array<i32>} : memref<14x14x16xf32, #tpu.memory_space<vmem>>, vector<1x14x16xf32>,
    %c0_260 = arith.constant 0 : index
    %c13_261 = arith.constant 13 : index
    %c0_262 = arith.constant 0 : index
    %c0_263 = arith.constant 0 : index
    %431 = vector.load %arg1[%c0_260, %c13_261, %c0_262, %c0_263] : memref<1x18x18x4xbf16, #tpu.memory_space<vmem>>, vector<1x1x18x4xbf16>
    %432 = vector.shape_cast %431 : vector<1x1x18x4xbf16> to vector<18x4xbf16>
    %433 = vector.extract_strided_slice %432 {offsets = [0, 0], sizes = [14, 4], strides = [1, 1]} : vector<18x4xbf16> to vector<14x4xbf16>
    %434 = vector.extract_strided_slice %432 {offsets = [1, 0], sizes = [14, 4], strides = [1, 1]} : vector<18x4xbf16> to vector<14x4xbf16>
    %435 = vector.extract_strided_slice %432 {offsets = [2, 0], sizes = [14, 4], strides = [1, 1]} : vector<18x4xbf16> to vector<14x4xbf16>
    %436 = vector.extract_strided_slice %432 {offsets = [3, 0], sizes = [14, 4], strides = [1, 1]} : vector<18x4xbf16> to vector<14x4xbf16>
    %c0_264 = arith.constant 0 : index
    %c14_265 = arith.constant 14 : index
    %c0_266 = arith.constant 0 : index
    %c0_267 = arith.constant 0 : index
    %437 = vector.load %arg1[%c0_264, %c14_265, %c0_266, %c0_267] : memref<1x18x18x4xbf16, #tpu.memory_space<vmem>>, vector<1x1x18x4xbf16>
    %438 = vector.shape_cast %437 : vector<1x1x18x4xbf16> to vector<18x4xbf16>
    %439 = vector.extract_strided_slice %438 {offsets = [0, 0], sizes = [14, 4], strides = [1, 1]} : vector<18x4xbf16> to vector<14x4xbf16>
    %440 = vector.extract_strided_slice %438 {offsets = [1, 0], sizes = [14, 4], strides = [1, 1]} : vector<18x4xbf16> to vector<14x4xbf16>
    %441 = vector.extract_strided_slice %438 {offsets = [2, 0], sizes = [14, 4], strides = [1, 1]} : vector<18x4xbf16> to vector<14x4xbf16>
    %442 = vector.extract_strided_slice %438 {offsets = [3, 0], sizes = [14, 4], strides = [1, 1]} : vector<18x4xbf16> to vector<14x4xbf16>
    %c0_268 = arith.constant 0 : index
    %c15_269 = arith.constant 15 : index
    %c0_270 = arith.constant 0 : index
    %c0_271 = arith.constant 0 : index
    %443 = vector.load %arg1[%c0_268, %c15_269, %c0_270, %c0_271] : memref<1x18x18x4xbf16, #tpu.memory_space<vmem>>, vector<1x1x18x4xbf16>
    %444 = vector.shape_cast %443 : vector<1x1x18x4xbf16> to vector<18x4xbf16>
    %445 = vector.extract_strided_slice %444 {offsets = [0, 0], sizes = [14, 4], strides = [1, 1]} : vector<18x4xbf16> to vector<14x4xbf16>
    %446 = vector.extract_strided_slice %444 {offsets = [1, 0], sizes = [14, 4], strides = [1, 1]} : vector<18x4xbf16> to vector<14x4xbf16>
    %447 = vector.extract_strided_slice %444 {offsets = [2, 0], sizes = [14, 4], strides = [1, 1]} : vector<18x4xbf16> to vector<14x4xbf16>
    %448 = vector.extract_strided_slice %444 {offsets = [3, 0], sizes = [14, 4], strides = [1, 1]} : vector<18x4xbf16> to vector<14x4xbf16>
    %c0_272 = arith.constant 0 : index
    %c16 = arith.constant 16 : index
    %c0_273 = arith.constant 0 : index
    %c0_274 = arith.constant 0 : index
    %449 = vector.load %arg1[%c0_272, %c16, %c0_273, %c0_274] : memref<1x18x18x4xbf16, #tpu.memory_space<vmem>>, vector<1x1x18x4xbf16>
    %450 = vector.shape_cast %449 : vector<1x1x18x4xbf16> to vector<18x4xbf16>
    %451 = vector.extract_strided_slice %450 {offsets = [0, 0], sizes = [14, 4], strides = [1, 1]} : vector<18x4xbf16> to vector<14x4xbf16>
    %452 = vector.extract_strided_slice %450 {offsets = [1, 0], sizes = [14, 4], strides = [1, 1]} : vector<18x4xbf16> to vector<14x4xbf16>
    %453 = vector.extract_strided_slice %450 {offsets = [2, 0], sizes = [14, 4], strides = [1, 1]} : vector<18x4xbf16> to vector<14x4xbf16>
    %454 = vector.extract_strided_slice %450 {offsets = [3, 0], sizes = [14, 4], strides = [1, 1]} : vector<18x4xbf16> to vector<14x4xbf16>
    %455 = tpu.concatenate %433, %434, %435, %436, %439, %440, %441, %442, %445, %446, %447, %448, %451, %452, %453, %454 in 1 : vector<14x4xbf16>, vector<14x4xbf16>, vector<14x4xbf16>, vector<14x4xbf16>, vector<14x4xbf16>, vector<14x4xbf16>, vector<14x4xbf16>, vector<14x4xbf16>, vector<14x4xbf16>, vector<14x4xbf16>, vector<14x4xbf16>, vector<14x4xbf16>, vector<14x4xbf16>, vector<14x4xbf16>, vector<14x4xbf16>, vector<14x4xbf16> -> vector<14x64xbf16>
    %cst_275 = arith.constant dense<0.000000e+00> : vector<14x16xf32>
    %456 = tpu.matmul %455, %0, %cst_275 {dimension_numbers = #tpu.dot_dimension_numbers<[1], [0], [0], [1], [0, 0, 1, 1], [], []>} : vector<14x64xbf16>, vector<64x16xbf16>, vector<14x16xf32> -> vector<14x16xf32>
    %457 = vector.broadcast %1 : vector<1x16xf32> to vector<14x16xf32>
    %458 = arith.addf %456, %457 : vector<14x16xf32>
    %cst_276 = arith.constant 0.000000e+00 : f32
    %459 = vector.broadcast %cst_276 : f32 to vector<14x16xf32>
    %460 = arith.maximumf %458, %459 : vector<14x16xf32>
    %c13_277 = arith.constant 13 : index
    %c0_278 = arith.constant 0 : index
    %c0_279 = arith.constant 0 : index
    %461 = vector.load %arg5[%c13_277, %c0_278, %c0_279] : memref<14x14x16xf32, #tpu.memory_space<vmem>>, vector<1x14x16xf32>
    %462 = vector.shape_cast %461 : vector<1x14x16xf32> to vector<14x16xf32>
    %463 = vector.shape_cast %460 : vector<14x16xf32> to vector<1x14x16xf32>
    tpu.vector_store %arg5[%c13_277, %c0_278, %c0_279], %463 {strides = array<i32>} : memref<14x14x16xf32, #tpu.memory_space<vmem>>, vector<1x14x16xf32>,
    %c0_280 = arith.constant 0 : index
    %c0_281 = arith.constant 0 : index
    %c0_282 = arith.constant 0 : index
    %464 = vector.load %arg5[%c0_280, %c0_281, %c0_282] : memref<14x14x16xf32, #tpu.memory_space<vmem>>, vector<14x14x16xf32>
    %465 = vector.extract_strided_slice %464 {offsets = [0, 0, 0], sizes = [13, 13, 16], strides = [1, 1, 1]} : vector<14x14x16xf32> to vector<13x13x16xf32>
    %466 = vector.extract_strided_slice %464 {offsets = [0, 1, 0], sizes = [13, 13, 16], strides = [1, 1, 1]} : vector<14x14x16xf32> to vector<13x13x16xf32>
    %467 = arith.maximumf %465, %466 : vector<13x13x16xf32>
    %468 = vector.extract_strided_slice %464 {offsets = [1, 0, 0], sizes = [13, 13, 16], strides = [1, 1, 1]} : vector<14x14x16xf32> to vector<13x13x16xf32>
    %469 = vector.extract_strided_slice %464 {offsets = [1, 1, 0], sizes = [13, 13, 16], strides = [1, 1, 1]} : vector<14x14x16xf32> to vector<13x13x16xf32>
    %470 = arith.maximumf %468, %469 : vector<13x13x16xf32>
    %471 = arith.maximumf %467, %470 : vector<13x13x16xf32>
    %472 = arith.truncf %471 : vector<13x13x16xf32> to vector<13x13x16xbf16>
    %c0_283 = arith.constant 0 : index
    %c0_284 = arith.constant 0 : index
    %c0_285 = arith.constant 0 : index
    %c0_286 = arith.constant 0 : index
    %473 = vector.load %arg4[%c0_283, %c0_284, %c0_285, %c0_286] : memref<1x13x13x16xbf16, #tpu.memory_space<vmem>>, vector<1x13x13x16xbf16>
    %474 = vector.shape_cast %473 : vector<1x13x13x16xbf16> to vector<13x13x16xbf16>
    %475 = vector.shape_cast %472 : vector<13x13x16xbf16> to vector<1x13x13x16xbf16>
    tpu.vector_store %arg4[%c0_283, %c0_284, %c0_285, %c0_286], %475 {strides = array<i32>} : memref<1x13x13x16xbf16, #tpu.memory_space<vmem>>, vector<1x13x13x16xbf16>,
    return
  }
  func.func @transform_0(%arg0: i32) -> (i32, i32, i32, i32) {
    %c0_i32 = arith.constant 0 : i32
    %c0_i32_0 = arith.constant 0 : i32
    %c0_i32_1 = arith.constant 0 : i32
    %c0_i32_2 = arith.constant 0 : i32
    return %arg0, %c0_i32, %c0_i32_0, %c0_i32_1 : i32, i32, i32, i32
  }
  func.func @transform_1(%arg0: i32) -> (i32, i32) {
    %c0_i32 = arith.constant 0 : i32
    %c0_i32_0 = arith.constant 0 : i32
    %c0_i32_1 = arith.constant 0 : i32
    return %c0_i32, %c0_i32_0 : i32, i32
  }
  func.func @transform_2(%arg0: i32) -> (i32, i32) {
    %c0_i32 = arith.constant 0 : i32
    %c0_i32_0 = arith.constant 0 : i32
    %c0_i32_1 = arith.constant 0 : i32
    return %c0_i32, %c0_i32_0 : i32, i32
  }
  func.func @transform_3(%arg0: i32) -> (i32, i32, i32, i32) {
    %c0_i32 = arith.constant 0 : i32
    %c0_i32_0 = arith.constant 0 : i32
    %c0_i32_1 = arith.constant 0 : i32
    %c0_i32_2 = arith.constant 0 : i32
    return %arg0, %c0_i32, %c0_i32_0, %c0_i32_1 : i32, i32, i32, i32
  }
}

module attributes {stable_mosaic.version = 11 : i64} {
  func.func @_conv_relu_pool_kernel(%arg0: i32, %arg1: memref<1x7x7x64xbf16, #tpu.memory_space<vmem>>, %arg2: memref<256x32xbf16, #tpu.memory_space<vmem>>, %arg3: memref<1x32xf32, #tpu.memory_space<vmem>>, %arg4: memref<1x4x4x32xbf16, #tpu.memory_space<vmem>>, %arg5: memref<5x5x32xf32, #tpu.memory_space<vmem>>) attributes {dimension_semantics = [#tpu.dimension_semantics<parallel>], iteration_bounds = array<i64: 2>, scalar_prefetch = 0 : i64, scratch_operands = 1 : i64, tpu.core_type = #tpu.core_type<tc>, window_params = [{transform_indices = @transform_0, window_bounds = array<i64: 1, 7, 7, 64>}, {pipeline_mode = #tpu.pipeline_mode<synchronous>, transform_indices = @transform_1, window_bounds = array<i64: 256, 32>}, {pipeline_mode = #tpu.pipeline_mode<synchronous>, transform_indices = @transform_2, window_bounds = array<i64: 1, 32>}, {transform_indices = @transform_3, window_bounds = array<i64: 1, 4, 4, 32>}]} {
    %c0 = arith.constant 0 : index
    %c0_0 = arith.constant 0 : index
    %0 = vector.load %arg2[%c0, %c0_0] : memref<256x32xbf16, #tpu.memory_space<vmem>>, vector<256x32xbf16>
    %c0_1 = arith.constant 0 : index
    %c0_2 = arith.constant 0 : index
    %1 = vector.load %arg3[%c0_1, %c0_2] : memref<1x32xf32, #tpu.memory_space<vmem>>, vector<1x32xf32>
    %c0_3 = arith.constant 0 : index
    %c0_4 = arith.constant 0 : index
    %c0_5 = arith.constant 0 : index
    %c0_6 = arith.constant 0 : index
    %2 = vector.load %arg1[%c0_3, %c0_4, %c0_5, %c0_6] : memref<1x7x7x64xbf16, #tpu.memory_space<vmem>>, vector<1x1x7x64xbf16>
    %3 = vector.shape_cast %2 : vector<1x1x7x64xbf16> to vector<7x64xbf16>
    %4 = vector.extract_strided_slice %3 {offsets = [0, 0], sizes = [5, 64], strides = [1, 1]} : vector<7x64xbf16> to vector<5x64xbf16>
    %5 = vector.extract_strided_slice %3 {offsets = [1, 0], sizes = [5, 64], strides = [1, 1]} : vector<7x64xbf16> to vector<5x64xbf16>
    %c0_7 = arith.constant 0 : index
    %c1 = arith.constant 1 : index
    %c0_8 = arith.constant 0 : index
    %c0_9 = arith.constant 0 : index
    %6 = vector.load %arg1[%c0_7, %c1, %c0_8, %c0_9] : memref<1x7x7x64xbf16, #tpu.memory_space<vmem>>, vector<1x1x7x64xbf16>
    %7 = vector.shape_cast %6 : vector<1x1x7x64xbf16> to vector<7x64xbf16>
    %8 = vector.extract_strided_slice %7 {offsets = [0, 0], sizes = [5, 64], strides = [1, 1]} : vector<7x64xbf16> to vector<5x64xbf16>
    %9 = vector.extract_strided_slice %7 {offsets = [1, 0], sizes = [5, 64], strides = [1, 1]} : vector<7x64xbf16> to vector<5x64xbf16>
    %10 = tpu.concatenate %4, %5, %8, %9 in 1 : vector<5x64xbf16>, vector<5x64xbf16>, vector<5x64xbf16>, vector<5x64xbf16> -> vector<5x256xbf16>
    %cst = arith.constant dense<0.000000e+00> : vector<5x32xf32>
    %11 = tpu.matmul %10, %0, %cst {dimension_numbers = #tpu.dot_dimension_numbers<[1], [0], [0], [1], [0, 0, 1, 1], [], []>} : vector<5x256xbf16>, vector<256x32xbf16>, vector<5x32xf32> -> vector<5x32xf32>
    %12 = vector.broadcast %1 : vector<1x32xf32> to vector<5x32xf32>
    %13 = arith.addf %11, %12 : vector<5x32xf32>
    %cst_10 = arith.constant 0.000000e+00 : f32
    %14 = vector.broadcast %cst_10 : f32 to vector<5x32xf32>
    %15 = arith.maximumf %13, %14 : vector<5x32xf32>
    %c0_11 = arith.constant 0 : index
    %c0_12 = arith.constant 0 : index
    %c0_13 = arith.constant 0 : index
    %16 = vector.load %arg5[%c0_11, %c0_12, %c0_13] : memref<5x5x32xf32, #tpu.memory_space<vmem>>, vector<1x5x32xf32>
    %17 = vector.shape_cast %16 : vector<1x5x32xf32> to vector<5x32xf32>
    %18 = vector.shape_cast %15 : vector<5x32xf32> to vector<1x5x32xf32>
    tpu.vector_store %arg5[%c0_11, %c0_12, %c0_13], %18 {strides = array<i32>} : memref<5x5x32xf32, #tpu.memory_space<vmem>>, vector<1x5x32xf32>,
    %c0_14 = arith.constant 0 : index
    %c1_15 = arith.constant 1 : index
    %c0_16 = arith.constant 0 : index
    %c0_17 = arith.constant 0 : index
    %19 = vector.load %arg1[%c0_14, %c1_15, %c0_16, %c0_17] : memref<1x7x7x64xbf16, #tpu.memory_space<vmem>>, vector<1x1x7x64xbf16>
    %20 = vector.shape_cast %19 : vector<1x1x7x64xbf16> to vector<7x64xbf16>
    %21 = vector.extract_strided_slice %20 {offsets = [0, 0], sizes = [5, 64], strides = [1, 1]} : vector<7x64xbf16> to vector<5x64xbf16>
    %22 = vector.extract_strided_slice %20 {offsets = [1, 0], sizes = [5, 64], strides = [1, 1]} : vector<7x64xbf16> to vector<5x64xbf16>
    %c0_18 = arith.constant 0 : index
    %c2 = arith.constant 2 : index
    %c0_19 = arith.constant 0 : index
    %c0_20 = arith.constant 0 : index
    %23 = vector.load %arg1[%c0_18, %c2, %c0_19, %c0_20] : memref<1x7x7x64xbf16, #tpu.memory_space<vmem>>, vector<1x1x7x64xbf16>
    %24 = vector.shape_cast %23 : vector<1x1x7x64xbf16> to vector<7x64xbf16>
    %25 = vector.extract_strided_slice %24 {offsets = [0, 0], sizes = [5, 64], strides = [1, 1]} : vector<7x64xbf16> to vector<5x64xbf16>
    %26 = vector.extract_strided_slice %24 {offsets = [1, 0], sizes = [5, 64], strides = [1, 1]} : vector<7x64xbf16> to vector<5x64xbf16>
    %27 = tpu.concatenate %21, %22, %25, %26 in 1 : vector<5x64xbf16>, vector<5x64xbf16>, vector<5x64xbf16>, vector<5x64xbf16> -> vector<5x256xbf16>
    %cst_21 = arith.constant dense<0.000000e+00> : vector<5x32xf32>
    %28 = tpu.matmul %27, %0, %cst_21 {dimension_numbers = #tpu.dot_dimension_numbers<[1], [0], [0], [1], [0, 0, 1, 1], [], []>} : vector<5x256xbf16>, vector<256x32xbf16>, vector<5x32xf32> -> vector<5x32xf32>
    %29 = vector.broadcast %1 : vector<1x32xf32> to vector<5x32xf32>
    %30 = arith.addf %28, %29 : vector<5x32xf32>
    %cst_22 = arith.constant 0.000000e+00 : f32
    %31 = vector.broadcast %cst_22 : f32 to vector<5x32xf32>
    %32 = arith.maximumf %30, %31 : vector<5x32xf32>
    %c1_23 = arith.constant 1 : index
    %c0_24 = arith.constant 0 : index
    %c0_25 = arith.constant 0 : index
    %33 = vector.load %arg5[%c1_23, %c0_24, %c0_25] : memref<5x5x32xf32, #tpu.memory_space<vmem>>, vector<1x5x32xf32>
    %34 = vector.shape_cast %33 : vector<1x5x32xf32> to vector<5x32xf32>
    %35 = vector.shape_cast %32 : vector<5x32xf32> to vector<1x5x32xf32>
    tpu.vector_store %arg5[%c1_23, %c0_24, %c0_25], %35 {strides = array<i32>} : memref<5x5x32xf32, #tpu.memory_space<vmem>>, vector<1x5x32xf32>,
    %c0_26 = arith.constant 0 : index
    %c2_27 = arith.constant 2 : index
    %c0_28 = arith.constant 0 : index
    %c0_29 = arith.constant 0 : index
    %36 = vector.load %arg1[%c0_26, %c2_27, %c0_28, %c0_29] : memref<1x7x7x64xbf16, #tpu.memory_space<vmem>>, vector<1x1x7x64xbf16>
    %37 = vector.shape_cast %36 : vector<1x1x7x64xbf16> to vector<7x64xbf16>
    %38 = vector.extract_strided_slice %37 {offsets = [0, 0], sizes = [5, 64], strides = [1, 1]} : vector<7x64xbf16> to vector<5x64xbf16>
    %39 = vector.extract_strided_slice %37 {offsets = [1, 0], sizes = [5, 64], strides = [1, 1]} : vector<7x64xbf16> to vector<5x64xbf16>
    %c0_30 = arith.constant 0 : index
    %c3 = arith.constant 3 : index
    %c0_31 = arith.constant 0 : index
    %c0_32 = arith.constant 0 : index
    %40 = vector.load %arg1[%c0_30, %c3, %c0_31, %c0_32] : memref<1x7x7x64xbf16, #tpu.memory_space<vmem>>, vector<1x1x7x64xbf16>
    %41 = vector.shape_cast %40 : vector<1x1x7x64xbf16> to vector<7x64xbf16>
    %42 = vector.extract_strided_slice %41 {offsets = [0, 0], sizes = [5, 64], strides = [1, 1]} : vector<7x64xbf16> to vector<5x64xbf16>
    %43 = vector.extract_strided_slice %41 {offsets = [1, 0], sizes = [5, 64], strides = [1, 1]} : vector<7x64xbf16> to vector<5x64xbf16>
    %44 = tpu.concatenate %38, %39, %42, %43 in 1 : vector<5x64xbf16>, vector<5x64xbf16>, vector<5x64xbf16>, vector<5x64xbf16> -> vector<5x256xbf16>
    %cst_33 = arith.constant dense<0.000000e+00> : vector<5x32xf32>
    %45 = tpu.matmul %44, %0, %cst_33 {dimension_numbers = #tpu.dot_dimension_numbers<[1], [0], [0], [1], [0, 0, 1, 1], [], []>} : vector<5x256xbf16>, vector<256x32xbf16>, vector<5x32xf32> -> vector<5x32xf32>
    %46 = vector.broadcast %1 : vector<1x32xf32> to vector<5x32xf32>
    %47 = arith.addf %45, %46 : vector<5x32xf32>
    %cst_34 = arith.constant 0.000000e+00 : f32
    %48 = vector.broadcast %cst_34 : f32 to vector<5x32xf32>
    %49 = arith.maximumf %47, %48 : vector<5x32xf32>
    %c2_35 = arith.constant 2 : index
    %c0_36 = arith.constant 0 : index
    %c0_37 = arith.constant 0 : index
    %50 = vector.load %arg5[%c2_35, %c0_36, %c0_37] : memref<5x5x32xf32, #tpu.memory_space<vmem>>, vector<1x5x32xf32>
    %51 = vector.shape_cast %50 : vector<1x5x32xf32> to vector<5x32xf32>
    %52 = vector.shape_cast %49 : vector<5x32xf32> to vector<1x5x32xf32>
    tpu.vector_store %arg5[%c2_35, %c0_36, %c0_37], %52 {strides = array<i32>} : memref<5x5x32xf32, #tpu.memory_space<vmem>>, vector<1x5x32xf32>,
    %c0_38 = arith.constant 0 : index
    %c3_39 = arith.constant 3 : index
    %c0_40 = arith.constant 0 : index
    %c0_41 = arith.constant 0 : index
    %53 = vector.load %arg1[%c0_38, %c3_39, %c0_40, %c0_41] : memref<1x7x7x64xbf16, #tpu.memory_space<vmem>>, vector<1x1x7x64xbf16>
    %54 = vector.shape_cast %53 : vector<1x1x7x64xbf16> to vector<7x64xbf16>
    %55 = vector.extract_strided_slice %54 {offsets = [0, 0], sizes = [5, 64], strides = [1, 1]} : vector<7x64xbf16> to vector<5x64xbf16>
    %56 = vector.extract_strided_slice %54 {offsets = [1, 0], sizes = [5, 64], strides = [1, 1]} : vector<7x64xbf16> to vector<5x64xbf16>
    %c0_42 = arith.constant 0 : index
    %c4 = arith.constant 4 : index
    %c0_43 = arith.constant 0 : index
    %c0_44 = arith.constant 0 : index
    %57 = vector.load %arg1[%c0_42, %c4, %c0_43, %c0_44] : memref<1x7x7x64xbf16, #tpu.memory_space<vmem>>, vector<1x1x7x64xbf16>
    %58 = vector.shape_cast %57 : vector<1x1x7x64xbf16> to vector<7x64xbf16>
    %59 = vector.extract_strided_slice %58 {offsets = [0, 0], sizes = [5, 64], strides = [1, 1]} : vector<7x64xbf16> to vector<5x64xbf16>
    %60 = vector.extract_strided_slice %58 {offsets = [1, 0], sizes = [5, 64], strides = [1, 1]} : vector<7x64xbf16> to vector<5x64xbf16>
    %61 = tpu.concatenate %55, %56, %59, %60 in 1 : vector<5x64xbf16>, vector<5x64xbf16>, vector<5x64xbf16>, vector<5x64xbf16> -> vector<5x256xbf16>
    %cst_45 = arith.constant dense<0.000000e+00> : vector<5x32xf32>
    %62 = tpu.matmul %61, %0, %cst_45 {dimension_numbers = #tpu.dot_dimension_numbers<[1], [0], [0], [1], [0, 0, 1, 1], [], []>} : vector<5x256xbf16>, vector<256x32xbf16>, vector<5x32xf32> -> vector<5x32xf32>
    %63 = vector.broadcast %1 : vector<1x32xf32> to vector<5x32xf32>
    %64 = arith.addf %62, %63 : vector<5x32xf32>
    %cst_46 = arith.constant 0.000000e+00 : f32
    %65 = vector.broadcast %cst_46 : f32 to vector<5x32xf32>
    %66 = arith.maximumf %64, %65 : vector<5x32xf32>
    %c3_47 = arith.constant 3 : index
    %c0_48 = arith.constant 0 : index
    %c0_49 = arith.constant 0 : index
    %67 = vector.load %arg5[%c3_47, %c0_48, %c0_49] : memref<5x5x32xf32, #tpu.memory_space<vmem>>, vector<1x5x32xf32>
    %68 = vector.shape_cast %67 : vector<1x5x32xf32> to vector<5x32xf32>
    %69 = vector.shape_cast %66 : vector<5x32xf32> to vector<1x5x32xf32>
    tpu.vector_store %arg5[%c3_47, %c0_48, %c0_49], %69 {strides = array<i32>} : memref<5x5x32xf32, #tpu.memory_space<vmem>>, vector<1x5x32xf32>,
    %c0_50 = arith.constant 0 : index
    %c4_51 = arith.constant 4 : index
    %c0_52 = arith.constant 0 : index
    %c0_53 = arith.constant 0 : index
    %70 = vector.load %arg1[%c0_50, %c4_51, %c0_52, %c0_53] : memref<1x7x7x64xbf16, #tpu.memory_space<vmem>>, vector<1x1x7x64xbf16>
    %71 = vector.shape_cast %70 : vector<1x1x7x64xbf16> to vector<7x64xbf16>
    %72 = vector.extract_strided_slice %71 {offsets = [0, 0], sizes = [5, 64], strides = [1, 1]} : vector<7x64xbf16> to vector<5x64xbf16>
    %73 = vector.extract_strided_slice %71 {offsets = [1, 0], sizes = [5, 64], strides = [1, 1]} : vector<7x64xbf16> to vector<5x64xbf16>
    %c0_54 = arith.constant 0 : index
    %c5 = arith.constant 5 : index
    %c0_55 = arith.constant 0 : index
    %c0_56 = arith.constant 0 : index
    %74 = vector.load %arg1[%c0_54, %c5, %c0_55, %c0_56] : memref<1x7x7x64xbf16, #tpu.memory_space<vmem>>, vector<1x1x7x64xbf16>
    %75 = vector.shape_cast %74 : vector<1x1x7x64xbf16> to vector<7x64xbf16>
    %76 = vector.extract_strided_slice %75 {offsets = [0, 0], sizes = [5, 64], strides = [1, 1]} : vector<7x64xbf16> to vector<5x64xbf16>
    %77 = vector.extract_strided_slice %75 {offsets = [1, 0], sizes = [5, 64], strides = [1, 1]} : vector<7x64xbf16> to vector<5x64xbf16>
    %78 = tpu.concatenate %72, %73, %76, %77 in 1 : vector<5x64xbf16>, vector<5x64xbf16>, vector<5x64xbf16>, vector<5x64xbf16> -> vector<5x256xbf16>
    %cst_57 = arith.constant dense<0.000000e+00> : vector<5x32xf32>
    %79 = tpu.matmul %78, %0, %cst_57 {dimension_numbers = #tpu.dot_dimension_numbers<[1], [0], [0], [1], [0, 0, 1, 1], [], []>} : vector<5x256xbf16>, vector<256x32xbf16>, vector<5x32xf32> -> vector<5x32xf32>
    %80 = vector.broadcast %1 : vector<1x32xf32> to vector<5x32xf32>
    %81 = arith.addf %79, %80 : vector<5x32xf32>
    %cst_58 = arith.constant 0.000000e+00 : f32
    %82 = vector.broadcast %cst_58 : f32 to vector<5x32xf32>
    %83 = arith.maximumf %81, %82 : vector<5x32xf32>
    %c4_59 = arith.constant 4 : index
    %c0_60 = arith.constant 0 : index
    %c0_61 = arith.constant 0 : index
    %84 = vector.load %arg5[%c4_59, %c0_60, %c0_61] : memref<5x5x32xf32, #tpu.memory_space<vmem>>, vector<1x5x32xf32>
    %85 = vector.shape_cast %84 : vector<1x5x32xf32> to vector<5x32xf32>
    %86 = vector.shape_cast %83 : vector<5x32xf32> to vector<1x5x32xf32>
    tpu.vector_store %arg5[%c4_59, %c0_60, %c0_61], %86 {strides = array<i32>} : memref<5x5x32xf32, #tpu.memory_space<vmem>>, vector<1x5x32xf32>,
    %c0_62 = arith.constant 0 : index
    %c0_63 = arith.constant 0 : index
    %c0_64 = arith.constant 0 : index
    %87 = vector.load %arg5[%c0_62, %c0_63, %c0_64] : memref<5x5x32xf32, #tpu.memory_space<vmem>>, vector<5x5x32xf32>
    %88 = vector.extract_strided_slice %87 {offsets = [0, 0, 0], sizes = [4, 4, 32], strides = [1, 1, 1]} : vector<5x5x32xf32> to vector<4x4x32xf32>
    %89 = vector.extract_strided_slice %87 {offsets = [0, 1, 0], sizes = [4, 4, 32], strides = [1, 1, 1]} : vector<5x5x32xf32> to vector<4x4x32xf32>
    %90 = arith.maximumf %88, %89 : vector<4x4x32xf32>
    %91 = vector.extract_strided_slice %87 {offsets = [1, 0, 0], sizes = [4, 4, 32], strides = [1, 1, 1]} : vector<5x5x32xf32> to vector<4x4x32xf32>
    %92 = vector.extract_strided_slice %87 {offsets = [1, 1, 0], sizes = [4, 4, 32], strides = [1, 1, 1]} : vector<5x5x32xf32> to vector<4x4x32xf32>
    %93 = arith.maximumf %91, %92 : vector<4x4x32xf32>
    %94 = arith.maximumf %90, %93 : vector<4x4x32xf32>
    %95 = arith.truncf %94 : vector<4x4x32xf32> to vector<4x4x32xbf16>
    %c0_65 = arith.constant 0 : index
    %c0_66 = arith.constant 0 : index
    %c0_67 = arith.constant 0 : index
    %c0_68 = arith.constant 0 : index
    %96 = vector.load %arg4[%c0_65, %c0_66, %c0_67, %c0_68] : memref<1x4x4x32xbf16, #tpu.memory_space<vmem>>, vector<1x4x4x32xbf16>
    %97 = vector.shape_cast %96 : vector<1x4x4x32xbf16> to vector<4x4x32xbf16>
    %98 = vector.shape_cast %95 : vector<4x4x32xbf16> to vector<1x4x4x32xbf16>
    tpu.vector_store %arg4[%c0_65, %c0_66, %c0_67, %c0_68], %98 {strides = array<i32>} : memref<1x4x4x32xbf16, #tpu.memory_space<vmem>>, vector<1x4x4x32xbf16>,
    return
  }
  func.func @transform_0(%arg0: i32) -> (i32, i32, i32, i32) {
    %c0_i32 = arith.constant 0 : i32
    %c0_i32_0 = arith.constant 0 : i32
    %c0_i32_1 = arith.constant 0 : i32
    %c0_i32_2 = arith.constant 0 : i32
    return %arg0, %c0_i32, %c0_i32_0, %c0_i32_1 : i32, i32, i32, i32
  }
  func.func @transform_1(%arg0: i32) -> (i32, i32) {
    %c0_i32 = arith.constant 0 : i32
    %c0_i32_0 = arith.constant 0 : i32
    %c0_i32_1 = arith.constant 0 : i32
    return %c0_i32, %c0_i32_0 : i32, i32
  }
  func.func @transform_2(%arg0: i32) -> (i32, i32) {
    %c0_i32 = arith.constant 0 : i32
    %c0_i32_0 = arith.constant 0 : i32
    %c0_i32_1 = arith.constant 0 : i32
    return %c0_i32, %c0_i32_0 : i32, i32
  }
  func.func @transform_3(%arg0: i32) -> (i32, i32, i32, i32) {
    %c0_i32 = arith.constant 0 : i32
    %c0_i32_0 = arith.constant 0 : i32
    %c0_i32_1 = arith.constant 0 : i32
    %c0_i32_2 = arith.constant 0 : i32
    return %arg0, %c0_i32, %c0_i32_0, %c0_i32_1 : i32, i32, i32, i32
  }
}

module attributes {stable_mosaic.version = 11 : i64} {
  func.func @_mlp_kernel(%arg0: i32, %arg1: memref<2x512xbf16, #tpu.memory_space<vmem>>, %arg2: memref<512x32xbf16, #tpu.memory_space<vmem>>, %arg3: memref<1x32xf32, #tpu.memory_space<vmem>>, %arg4: memref<32x10xbf16, #tpu.memory_space<vmem>>, %arg5: memref<1x10xf32, #tpu.memory_space<vmem>>, %arg6: memref<2x10xf32, #tpu.memory_space<vmem>>) attributes {dimension_semantics = [#tpu.dimension_semantics<parallel>], iteration_bounds = array<i64: 1>, scalar_prefetch = 0 : i64, scratch_operands = 0 : i64, tpu.core_type = #tpu.core_type<tc>, window_params = [{transform_indices = @transform_0, window_bounds = array<i64: 2, 512>}, {pipeline_mode = #tpu.pipeline_mode<synchronous>, transform_indices = @transform_1, window_bounds = array<i64: 512, 32>}, {pipeline_mode = #tpu.pipeline_mode<synchronous>, transform_indices = @transform_2, window_bounds = array<i64: 1, 32>}, {pipeline_mode = #tpu.pipeline_mode<synchronous>, transform_indices = @transform_3, window_bounds = array<i64: 32, 10>}, {pipeline_mode = #tpu.pipeline_mode<synchronous>, transform_indices = @transform_4, window_bounds = array<i64: 1, 10>}, {transform_indices = @transform_5, window_bounds = array<i64: 2, 10>}]} {
    %c0 = arith.constant 0 : index
    %c0_0 = arith.constant 0 : index
    %0 = vector.load %arg1[%c0, %c0_0] : memref<2x512xbf16, #tpu.memory_space<vmem>>, vector<2x512xbf16>
    %c0_1 = arith.constant 0 : index
    %c0_2 = arith.constant 0 : index
    %1 = vector.load %arg2[%c0_1, %c0_2] : memref<512x32xbf16, #tpu.memory_space<vmem>>, vector<512x32xbf16>
    %cst = arith.constant dense<0.000000e+00> : vector<2x32xf32>
    %2 = tpu.matmul %0, %1, %cst {dimension_numbers = #tpu.dot_dimension_numbers<[1], [0], [0], [1], [0, 0, 1, 1], [], []>} : vector<2x512xbf16>, vector<512x32xbf16>, vector<2x32xf32> -> vector<2x32xf32>
    %c0_3 = arith.constant 0 : index
    %c0_4 = arith.constant 0 : index
    %3 = vector.load %arg3[%c0_3, %c0_4] : memref<1x32xf32, #tpu.memory_space<vmem>>, vector<1x32xf32>
    %4 = vector.broadcast %3 : vector<1x32xf32> to vector<2x32xf32>
    %5 = arith.addf %2, %4 : vector<2x32xf32>
    %cst_5 = arith.constant 0.000000e+00 : f32
    %6 = vector.broadcast %cst_5 : f32 to vector<2x32xf32>
    %7 = arith.maximumf %5, %6 : vector<2x32xf32>
    %8 = arith.truncf %7 : vector<2x32xf32> to vector<2x32xbf16>
    %c0_6 = arith.constant 0 : index
    %c0_7 = arith.constant 0 : index
    %9 = vector.load %arg4[%c0_6, %c0_7] : memref<32x10xbf16, #tpu.memory_space<vmem>>, vector<32x10xbf16>
    %cst_8 = arith.constant dense<0.000000e+00> : vector<2x10xf32>
    %10 = tpu.matmul %8, %9, %cst_8 {dimension_numbers = #tpu.dot_dimension_numbers<[1], [0], [0], [1], [0, 0, 1, 1], [], []>} : vector<2x32xbf16>, vector<32x10xbf16>, vector<2x10xf32> -> vector<2x10xf32>
    %c0_9 = arith.constant 0 : index
    %c0_10 = arith.constant 0 : index
    %11 = vector.load %arg5[%c0_9, %c0_10] : memref<1x10xf32, #tpu.memory_space<vmem>>, vector<1x10xf32>
    %12 = vector.broadcast %11 : vector<1x10xf32> to vector<2x10xf32>
    %13 = arith.addf %10, %12 : vector<2x10xf32>
    %c0_11 = arith.constant 0 : index
    %c0_12 = arith.constant 0 : index
    %14 = vector.load %arg6[%c0_11, %c0_12] : memref<2x10xf32, #tpu.memory_space<vmem>>, vector<2x10xf32>
    tpu.vector_store %arg6[%c0_11, %c0_12], %13 {strides = array<i32>} : memref<2x10xf32, #tpu.memory_space<vmem>>, vector<2x10xf32>,
    return
  }
  func.func @transform_0(%arg0: i32) -> (i32, i32) {
    %c0_i32 = arith.constant 0 : i32
    %c0_i32_0 = arith.constant 0 : i32
    return %arg0, %c0_i32 : i32, i32
  }
  func.func @transform_1(%arg0: i32) -> (i32, i32) {
    %c0_i32 = arith.constant 0 : i32
    %c0_i32_0 = arith.constant 0 : i32
    %c0_i32_1 = arith.constant 0 : i32
    return %c0_i32, %c0_i32_0 : i32, i32
  }
  func.func @transform_2(%arg0: i32) -> (i32, i32) {
    %c0_i32 = arith.constant 0 : i32
    %c0_i32_0 = arith.constant 0 : i32
    %c0_i32_1 = arith.constant 0 : i32
    return %c0_i32, %c0_i32_0 : i32, i32
  }
  func.func @transform_3(%arg0: i32) -> (i32, i32) {
    %c0_i32 = arith.constant 0 : i32
    %c0_i32_0 = arith.constant 0 : i32
    %c0_i32_1 = arith.constant 0 : i32
    return %c0_i32, %c0_i32_0 : i32, i32
  }
  func.func @transform_4(%arg0: i32) -> (i32, i32) {
    %c0_i32 = arith.constant 0 : i32
    %c0_i32_0 = arith.constant 0 : i32
    %c0_i32_1 = arith.constant 0 : i32
    return %c0_i32, %c0_i32_0 : i32, i32
  }
  func.func @transform_5(%arg0: i32) -> (i32, i32) {
    %c0_i32 = arith.constant 0 : i32
    %c0_i32_0 = arith.constant 0 : i32
    return %arg0, %c0_i32 : i32, i32
  }
}

</mosaic_0001>

<bundles_post_ra>
// kernel: mnist_net_forward.4
= control target key start
LH: loop header
LB: loop body
LE: loop exit
PB: predicated region body
PF: predicated region fallthrough
CT: control target
= control target key end

     0   :  { %s1013_s12 = smov 0   ;;  %s1294_s0 = inlined_call_operand.vmem [shape: bf16[2,7,7,64], index: 0, kind: input, shape index: {}]   ;;  %s1295_s1 = inlined_call_operand.vmem [shape: bf16[256,32], index: 1, kind: input, shape index: {}]   ;;  %s1296_s2 = inlined_call_operand.vmem [shape: f32[1,32], index: 2, kind: input, shape index: {}]   ;;  %s1297_s3 = inlined_call_operand.vmem [shape: bf16[2,4,4,32], index: 3, kind: output, shape index: {}]  }
   0x1 LB: > { %s791_s13 = sadd.s32 4294967295, %s990_s12   ;;  %p795_p0 = scmp.ge.s32.totalorder %s990_s12, 1  ;;  %s990_s12 = sphi %s1013_s12, %s13_s12  }
   0x2   : > { %p137_p1 = scmp.lt.s32.totalorder %s990_s12, 3 }
   0x4   : > { %p138_p2 = pnand %p795_p0, %p137_p1 }
   0x5   : > { %p161_p3 = scmp.lt.s32.totalorder (!%p138_p2), %s791_s13, 1  ;;  %v1024_v0 = vld [vmem:[%s1295_s1 + $0x40] sm:$0xff] (!%p138_p2)   ;;  %v1037_v2 = vld [vmem:[%s1295_s1 + $0x48] sm:$0xff] (!%p138_p2)   ;;  %v1051_v4 = vld [vmem:[%s1295_s1 + $0x50] sm:$0xff] (!%p138_p2)   ;;  %s992_s9 = smov (!%p138_p2), 64   ;;  %vm232_vm0 = vcmask (!%p138_p2), 523264  }
   0x6   : > { %141 = sbr.rel (%p138_p2) target bundleno = 446 (0x1be), region = 32  ;;  %v1031_v1 = vld [vmem:[%s1295_s1] sm:$0xff] (!%p138_p2)   ;;  %838 = vmatprep.subr.bf16.mxu0 (!%p138_p2), %v1024_v0  ;;  %860 = vmatprep.subr.bf16.mxu1 (!%p138_p2), %v1024_v0  ;;  %v1045_v3 = vld [vmem:[%s1295_s1 + $0x8] sm:$0xff] (!%p138_p2)   ;;  %v1063_v5 = vld [vmem:[%s1295_s1 + $0x10] sm:$0xff] (!%p138_p2)   ;;  %vm384_vm1 = vcmask (!%p138_p2), 258048   ;;  %vm731_vm2 = vcmask (!%p138_p2), 254976  }
   0x7   : > { %839 = vmatpush3.bf16.msra.mxu0 (!%p138_p2), %v1031_v1  ;;  %861 = vmatpush3.bf16.msra.mxu1 (!%p138_p2), %v1031_v1  ;;  %v1111_v28 = vld [vmem:[%s1295_s1 + $0x58] sm:$0xff] (!%p138_p2)   ;;  %v1130_v40 = vld [vmem:[%s1295_s1 + $0x60] sm:$0xff] (!%p138_p2)   ;;  %v1150_v53 = vld [vmem:[%s1295_s1 + $0x68] sm:$0xff] (!%p138_p2)  }
   0x8   : > { %840 = vmatprep.subr.bf16.mxu0 (!%p138_p2), %v1037_v2  ;;  %862 = vmatprep.subr.bf16.mxu1 (!%p138_p2), %v1037_v2  ;;  %v1120_v33 = vld [vmem:[%s1295_s1 + $0x18] sm:$0xff] (!%p138_p2)   ;;  %v1141_v48 = vld [vmem:[%s1295_s1 + $0x20] sm:$0xff] (!%p138_p2)   ;;  %v1157_v58 = vld [vmem:[%s1295_s1 + $0x28] sm:$0xff] (!%p138_p2)  }
   0x9   : > { %v1164_v61 = vld [vmem:[%s1295_s1 + $0x70] sm:$0xff] (!%p138_p2)  }
   0xb   : > { %841 = vmatpush3.bf16.msra.mxu0 (!%p138_p2), %v1045_v3  ;;  %863 = vmatpush3.bf16.msra.mxu1 (!%p138_p2), %v1045_v3 }
   0xc   : > { %842 = vmatprep.subr.bf16.mxu0 (!%p138_p2), %v1051_v4  ;;  %864 = vmatprep.subr.bf16.mxu1 (!%p138_p2), %v1051_v4 }
   0xd   : > { %s1299_s13 = smov (!%p161_p3, %s791_s13), 1 }
   0xe   : > { %s948_s20 = smul.u32 28, %s1299_s13  ;;  %s837_s28 = sshll.u32 %s1299_s13, 3 }
   0xf   : > { %843 = vmatpush3.bf16.msra.mxu0 %v1063_v5  ;;  %865 = vmatpush3.bf16.msra.mxu1 %v1063_v5  ;;  %s1278_s4 = scalar_lea.vmem %s1297_s3, %s837_s28 }
  0x10   : > { %s1058_s27 = scalar_lea.vmem %s1294_s0, %s948_s20  ;;  %844 = vmatprep.subr.bf16.mxu0 %v1111_v28  ;;  %866 = vmatprep.subr.bf16.mxu1 %v1111_v28 }
  0x11   : > { %v1066_v6 = vld [vmem:[%s1058_s27 + $0x4] sm:$0xf]  ;;  %v1069_v7 = vld [vmem:[%s1058_s27] sm:$0xf]  ;;  %v1072_v8 = vld [vmem:[%s1058_s27 + $0x8] sm:$0xf] }
  0x12   : > { %v801_v9 = vcombine.low %v1066_v6, %v1066_v6  ;;  %v800_v10 = vcombine.low %v1069_v7, %v1069_v7  ;;  %v822_v11 = vcombine.low %v1072_v8, %v1072_v8  ;;  %v1081_v12 = vld [vmem:[%s1058_s27 + $0x4] sm:$0xf]  ;;  %v1084_v13 = vld [vmem:[%s1058_s27 + $0xc] sm:$0xf]  ;;  %v1087_v14 = vld [vmem:[%s1058_s27 + $0x8] sm:$0xf] }
  0x13   : > { %v821_v15 = vcombine.low %v1081_v12, %v1081_v12  ;;  %v826_v16 = vcombine.low %v1084_v13, %v1084_v13  ;;  %v825_v17 = vcombine.low %v1087_v14, %v1087_v14  ;;  %v1098_v18 = vld [vmem:[%s1058_s27 + $0x10] sm:$0xf]  ;;  %v1103_v22 = vld [vmem:[%s1058_s27 + $0xc] sm:$0xf]  ;;  %v1106_v27 = vld [vmem:[%s1058_s27 + $0x14] sm:$0xf]  ;;  %845 = vmatpush3.bf16.msra.mxu0 %v1120_v33  ;;  %867 = vmatpush3.bf16.msra.mxu1 %v1120_v33 }
  0x14   : > { %v224_v19 = vshrl.u32 %v801_v9, 16  ;;  %v226_v20 = vshll.u32 %v801_v9, 16  ;;  %v214_v21 = vshll.u32 %v800_v10, 16  ;;  %v212_v23 = vshrl.u32 %v800_v10, 16  ;;  %v1114_v32 = vld [vmem:[%s1058_s27 + $0x10] sm:$0xf]  ;;  %846 = vmatprep.subr.bf16.mxu0 %v1130_v40  ;;  %868 = vmatprep.subr.bf16.mxu1 %v1130_v40 }
  0x15   : > { %v405_v24 = vshrl.u32 %v822_v11, 16  ;;  %v407_v25 = vshll.u32 %v822_v11, 16  ;;  %v395_v26 = vshll.u32 %v821_v15, 16  ;;  %v485_v31 = vshll.u32 %v826_v16, 16 }
  0x16   : > { %v228_v29 = vrot.slane %v226_v20, 1  ;;  %v216_v30 = vrot.slane %v214_v21, 1  ;;  %v483_v35 = vshrl.u32 %v826_v16, 16  ;;  %v473_v36 = vshll.u32 %v825_v17, 16  ;;  %v1175_v16 = vld [vmem:[%s1295_s1 + $0x30] sm:$0xff]   ;;  %v1182_v21 = vld [vmem:[%s1295_s1 + $0x78] sm:$0xff]  }
  0x17   : > { %v409_v34 = vrot.slane %v407_v25, 1  ;;  %v487_v38 = vrot.slane %v485_v31, 1  ;;  %v830_v39 = vcombine.low %v1098_v18, %v1098_v18  ;;  %v393_v42 = vshrl.u32 %v821_v15, 16  ;;  %847 = vmatpush3.bf16.msra.mxu0 %v1141_v48  ;;  %869 = vmatpush3.bf16.msra.mxu1 %v1141_v48 }
  0x18   : > { %v229_v37 = vor.u32 %v228_v29, %v224_v19  ;;  %v397_v43 = vrot.slane %v395_v26, 1  ;;  %v829_v44 = vcombine.low %v1103_v22, %v1103_v22  ;;  %v217_v45 = vor.u32 %v216_v30, %v212_v23  ;;  %848 = vmatprep.subr.bf16.mxu0 %v1150_v53  ;;  %870 = vmatprep.subr.bf16.mxu1 %v1150_v53 }
  0x19   : > { %v410_v41 = vor.u32 %v409_v34, %v405_v24  ;;  %v563_v46 = vshll.u32 %v830_v39, 16  ;;  %v834_v47 = vcombine.low %v1106_v27, %v1106_v27  ;;  %v488_v49 = vor.u32 %v487_v38, %v483_v35  ;;  %v1191_v24 = vld [vmem:[%s1295_s1 + $0x38] sm:$0xff]  }
  0x1a   : > { %230 = vrot.lane.b32.xlu0 %v229_v37, %s992_s9  ;;  %v471_v50 = vshrl.u32 %v825_v17, 16  ;;  %v475_v51 = vrot.slane %v473_v36, 1  ;;  %v833_v52 = vcombine.low %v1114_v32, %v1114_v32  ;;  %v561_v55 = vshrl.u32 %v830_v39, 16 }
  0x1b   : > { %411 = vrot.lane.b32.xlu1 %v410_v41, %s992_s9  ;;  %v641_v54 = vshll.u32 %v834_v47, 16  ;;  %v565_v56 = vrot.slane %v563_v46, 1  ;;  %v551_v57 = vshll.u32 %v829_v44, 16  ;;  %v398_v59 = vor.u32 %v397_v43, %v393_v42  ;;  %849 = vmatpush3.bf16.msra.mxu0 %v1157_v58 }
  0x1c   : > { %v639_v60 = vshrl.u32 %v834_v47, 16  ;;  %v476_v62 = vor.u32 %v475_v51, %v471_v50  ;;  %v629_v9 = vshll.u32 %v833_v52, 16  ;;  %v549_v11 = vshrl.u32 %v829_v44, 16  ;;  %850 = vmatprep.subr.bf16.mxu0 %v1164_v61  ;;  %871 = vmatpush3.bf16.msra.mxu1 %v1157_v58 }
  0x1d   : > { %v643_v63 = vrot.slane %v641_v54, 1  ;;  %v566_v10 = vor.u32 %v565_v56, %v561_v55  ;;  %v553_v15 = vrot.slane %v551_v57, 1  ;;  %v627_v19 = vshrl.u32 %v833_v52, 16  ;;  %872 = vmatprep.subr.bf16.mxu1 %v1164_v61 }
  0x1e   : > { %218 = vrot.lane.b32.xlu0 %v217_v45, %s992_s9  ;;  %v631_v20 = vrot.slane %v629_v9, 1 }
  0x1f   : > { %489 = vrot.lane.b32.xlu1 %v488_v49, %s992_s9  ;;  %v644_v17 = vor.u32 %v643_v63, %v639_v60  ;;  %v554_v23 = vor.u32 %v553_v15, %v549_v11  ;;  %851 = vmatpush3.bf16.msra.mxu0 %v1175_v16 }
  0x20   : > { %v632_v25 = vor.u32 %v631_v20, %v627_v19  ;;  %852 = vmatprep.subr.bf16.mxu0 %v1182_v21  ;;  %873 = vmatpush3.bf16.msra.mxu1 %v1175_v16 }
  0x21   : > { %874 = vmatprep.subr.bf16.mxu1 %v1182_v21 }
  0x22   : > { %399 = vrot.lane.b32.xlu0 %v398_v59, %s992_s9 }
  0x23   : > { %477 = vrot.lane.b32.xlu1 %v476_v62, %s992_s9  ;;  %853 = vmatpush3.bf16.msra.mxu0 %v1191_v24 }
  0x24   : > { %882 = vmatprep.subr.bf16.mxu0 %v1024_v0  ;;  %875 = vmatpush3.bf16.msra.mxu1 %v1191_v24 }
  0x25   : > { %904 = vmatprep.subr.bf16.mxu1 %v1024_v0 }
  0x26   : > { %567 = vrot.lane.b32.xlu0 %v566_v10, %s992_s9 }
  0x27   : > { %645 = vrot.lane.b32.xlu1 %v644_v17, %s992_s9 }
  0x2a   : > { %555 = vrot.lane.b32.xlu0 %v554_v23, %s992_s9 }
  0x2b   : > { %633 = vrot.lane.b32.xlu1 %v632_v25, %s992_s9 }
  0x8c   : > { %v231_v26 = vpop.permute.xlu0 %230 }
  0x8d   : > { %v239_v29 = vsel %vm232_vm0, %v1066_v6, %v231_v26  ;;  %v412_v30 = vpop.permute.xlu1 %411 }
  0x8e   : > { %375 = vmatprep.mubr.bf16.mxu0 %v239_v29  ;;  %v419_v31 = vsel %vm232_vm0, %v1072_v8, %v412_v30 }
  0x8f   : > { %453 = vmatprep.mubr.bf16.mxu1 %v419_v31 }
  0x90   : > { %v219_v34 = vpop.permute.xlu0 %218 }
  0x91   : > { %v235_v35 = vsel %vm232_vm0, %v1069_v7, %v219_v34  ;;  %v490_v36 = vpop.permute.xlu1 %489 }
  0x92   : > { %376 = vmatmul.mubr.bf16.vlgmr.msra.gmra.mrb[0].mxu0 %v235_v35  ;;  %v497_v37 = vsel %vm232_vm0, %v1084_v13, %v490_v36 }
  0x93   : > { %883 = vmatpush3.bf16.msra.mxu0 %v1031_v1  ;;  %531 = vmatprep.mubr.bf16.mxu0 %v497_v37 }
  0x94   : > { %v400_v38 = vpop.permute.xlu0 %399  ;;  %884 = vmatprep.subr.bf16.mxu0 %v1037_v2 }
  0x95   : > { %v415_v6 = vsel %vm232_vm0, %v1081_v12, %v400_v38  ;;  %v478_v12 = vpop.permute.xlu1 %477 }
  0x96   : > { %454 = vmatmul.mubr.bf16.vlgmr.msra.gmra.mrb[0].mxu1 %v415_v6 }
  0x97   : > { %885 = vmatpush3.bf16.msra.mxu0 %v1045_v3  ;;  %905 = vmatpush3.bf16.msra.mxu1 %v1031_v1 }
  0x98   : > { %886 = vmatprep.subr.bf16.mxu0 %v1051_v4  ;;  %906 = vmatprep.subr.bf16.mxu1 %v1037_v2  ;;  %v568_v7 = vpop.permute.xlu0 %567 }
  0x99   : > { %v575_v8 = vsel %vm232_vm0, %v1098_v18, %v568_v7  ;;  %v646_v13 = vpop.permute.xlu1 %645  ;;  %v493_v18 = vsel %vm232_vm0, %v1087_v14, %v478_v12 }
  0x9a   : > { %609 = vmatprep.mubr.bf16.mxu1 %v575_v8  ;;  %v653_v41 = vsel %vm232_vm0, %v1106_v27, %v646_v13 }
  0x9b   : > { %887 = vmatpush3.bf16.msra.mxu0 %v1063_v5  ;;  %907 = vmatpush3.bf16.msra.mxu1 %v1045_v3 }
  0x9c   : > { %888 = vmatprep.subr.bf16.mxu0 %v1111_v28  ;;  %908 = vmatprep.subr.bf16.mxu1 %v1051_v4  ;;  %v556_v39 = vpop.permute.xlu0 %555 }
  0x9d   : > { %v571_v42 = vsel %vm232_vm0, %v1103_v22, %v556_v39 }
  0x9f   : > { %889 = vmatpush3.bf16.msra.mxu0 %v1120_v33  ;;  %909 = vmatpush3.bf16.msra.mxu1 %v1063_v5 }
  0xa0   : > { %890 = vmatprep.subr.bf16.mxu0 %v1130_v40  ;;  %910 = vmatprep.subr.bf16.mxu1 %v1111_v28 }
  0xa3   : > { %891 = vmatpush3.bf16.msra.mxu0 %v1141_v48  ;;  %911 = vmatpush3.bf16.msra.mxu1 %v1120_v33 }
  0xa4   : > { %892 = vmatprep.subr.bf16.mxu0 %v1150_v53  ;;  %912 = vmatprep.subr.bf16.mxu1 %v1130_v40 }
  0xa7   : > { %893 = vmatpush3.bf16.msra.mxu0 %v1157_v58  ;;  %913 = vmatpush3.bf16.msra.mxu1 %v1141_v48 }
  0xa8   : > { %894 = vmatprep.subr.bf16.mxu0 %v1164_v61  ;;  %914 = vmatprep.subr.bf16.mxu1 %v1150_v53 }
  0xab   : > { %895 = vmatpush3.bf16.msra.mxu0 %v1175_v16  ;;  %915 = vmatpush3.bf16.msra.mxu1 %v1157_v58 }
  0xac   : > { %896 = vmatprep.subr.bf16.mxu0 %v1182_v21  ;;  %916 = vmatprep.subr.bf16.mxu1 %v1164_v61 }
  0xaf   : > { %897 = vmatpush3.bf16.msra.mxu0 %v1191_v24  ;;  %917 = vmatpush3.bf16.msra.mxu1 %v1175_v16 }
  0xb0   : > { %918 = vmatprep.subr.bf16.mxu1 %v1182_v21  ;;  %926 = vmatprep.subr.bf16.mxu0 %v1024_v0  ;;  %v634_v0 = vpop.permute.xlu1 %633 }
  0xb2   : > { %532 = vmatmul.mubr.bf16.vlgmr.msra.gmra.mrb[4].mxu0 %v493_v18 }
  0xb3   : > { %919 = vmatpush3.bf16.msra.mxu1 %v1191_v24  ;;  %927 = vmatpush3.bf16.msra.mxu0 %v1031_v1  ;;  %v649_v1 = vsel %vm232_vm0, %v1114_v32, %v634_v0 }
  0xb4   : > { %928 = vmatprep.subr.bf16.mxu0 %v1037_v2  ;;  %687 = vmatprep.mubr.bf16.mxu0 %v653_v41 }
  0xb6   : > { %610 = vmatmul.mubr.bf16.vlgmr.msra.gmra.mrb[4].mxu1 %v571_v42 }
  0xb7   : > { %929 = vmatpush3.bf16.msra.mxu0 %v1045_v3  ;;  %v802_v3 = vld [vmem:[%s1296_s2] ss:$0 sm:$0xff] }
  0xb8   : > { %930 = vmatprep.subr.bf16.mxu0 %v1051_v4 }
  0xbb   : > { %931 = vmatpush3.bf16.msra.mxu0 %v1063_v5 }
  0xbc   : > { %932 = vmatprep.subr.bf16.mxu0 %v1111_v28 }
  0xbf   : > { %933 = vmatpush3.bf16.msra.mxu0 %v1120_v33 }
  0xc0   : > { %934 = vmatprep.subr.bf16.mxu0 %v1130_v40 }
  0xc3   : > { %935 = vmatpush3.bf16.msra.mxu0 %v1141_v48 }
  0xc4   : > { %936 = vmatprep.subr.bf16.mxu0 %v1150_v53 }
  0xc7   : > { %937 = vmatpush3.bf16.msra.mxu0 %v1157_v58 }
  0xc8   : > { %938 = vmatprep.subr.bf16.mxu0 %v1164_v61 }
  0xcb   : > { %939 = vmatpush3.bf16.msra.mxu0 %v1175_v16 }
  0xcc   : > { %940 = vmatprep.subr.bf16.mxu0 %v1182_v21 }
  0xcf   : > { %941 = vmatpush3.bf16.msra.mxu0 %v1191_v24 }
  0xd2   : > { %688 = vmatmul.mubr.bf16.vlgmr.msra.gmra.mrb[8].mxu0 %v649_v1 }
 0x165   : > { %v854_v2 = vpop.f32.mrb[0].mxu0 }
 0x166   : > { %v855_v4 = vpop.f32.mrb[1].mxu0 }
 0x167   : > { %v856_v5 = vadd.f32 %v855_v4, %v854_v2  ;;  %v857_v14 = vpop.f32.mrb[2].mxu0 }
 0x168   : > { %v858_v22 = vpop.f32.mrb[3].mxu0 }
 0x169   : > { %v378_v27 = vadd.f32 %v856_v5, %v802_v3  ;;  %v876_v28 = vpop.f32.mrb[0].mxu1 }
 0x16a   : > { %v877_v33 = vpop.f32.mrb[1].mxu1 }
 0x16b   : > { %v383_v40 = vmax.f32 %v378_v27, 0.0  ;;  %v878_v43 = vadd.f32 %v877_v33, %v876_v28  ;;  %v879_v44 = vpop.f32.mrb[2].mxu1 }
 0x16c   : > { %v880_v45 = vpop.f32.mrb[3].mxu1 }
 0x16d   : > { %385 = vst.msk [vmem:[#allocation2] sm:$0x1f] %vm384_vm1, %v383_v40  ;;  %v456_v32 = vadd.f32 %v878_v43, %v802_v3 }
 0x16f   : > { %v461_v46 = vmax.f32 %v456_v32, 0.0 }
 0x171   : > { %463 = vst.msk [vmem:[#allocation2 + $0x8] sm:$0x1f] %vm384_vm1, %v461_v46 }
 0x174   : > { %v698_v47 = vld [vmem:[#allocation2] sm:$0x1f] }
 0x175   : > { %v707_v48 = vrot.slane %v698_v47, 1 }
 0x177   : > { %v715_v51 = vmax.f32 %v698_v47, %v707_v48 }
 0x178   : > { %v699_v49 = vld [vmem:[#allocation2 + $0x8] sm:$0x1f] }
 0x179   : > { %v708_v50 = vrot.slane %v699_v49, 1 }
 0x17b   : > { %v716_v52 = vmax.f32 %v699_v49, %v708_v50 }
 0x17d   : > { %v723_v53 = vmax.f32 %v715_v51, %v716_v52 }
 0x17f   : > { %v727_v54 = vpack.c.bf16 %v723_v53, %v723_v53 }
 0x181   : > { %732 = vst.msk [vmem:[%s1278_s4] sm:$0x3] %vm731_vm2, %v727_v54 }
 0x185   : > { %v898_v55 = vpop.f32.mrb[4].mxu0 }
 0x186   : > { %v899_v56 = vpop.f32.mrb[5].mxu0 }
 0x187   : > { %v900_v57 = vadd.f32 %v899_v56, %v898_v55  ;;  %v901_v58 = vpop.f32.mrb[6].mxu0 }
 0x188   : > { %v902_v59 = vpop.f32.mrb[7].mxu0 }
 0x189   : > { %v534_v60 = vadd.f32 %v900_v57, %v802_v3  ;;  %v920_v61 = vpop.f32.mrb[4].mxu1 }
 0x18a   : > { %v921_v62 = vpop.f32.mrb[5].mxu1 }
 0x18b   : > { %v539_v63 = vmax.f32 %v534_v60, 0.0  ;;  %v922_v9 = vadd.f32 %v921_v62, %v920_v61  ;;  %v923_v10 = vpop.f32.mrb[6].mxu1 }
 0x18c   : > { %v924_v11 = vpop.f32.mrb[7].mxu1 }
 0x18d   : > { %541 = vst.msk [vmem:[#allocation2 + $0x10] sm:$0x1f] %vm384_vm1, %v539_v63  ;;  %v612_v15 = vadd.f32 %v922_v9, %v802_v3 }
 0x18f   : > { %v617_v16 = vmax.f32 %v612_v15, 0.0 }
 0x191   : > { %619 = vst.msk [vmem:[#allocation2 + $0x18] sm:$0x1f] %vm384_vm1, %v617_v16 }
 0x194   : > { %v700_v17 = vld [vmem:[#allocation2 + $0x10] sm:$0x1f] }
 0x195   : > { %v709_v19 = vrot.slane %v700_v17, 1 }
 0x197   : > { %v717_v20 = vmax.f32 %v700_v17, %v709_v19 }
 0x198   : > { %v701_v21 = vld [vmem:[#allocation2 + $0x18] sm:$0x1f] }
 0x199   : > { %v724_v23 = vmax.f32 %v716_v52, %v717_v20  ;;  %v710_v24 = vrot.slane %v701_v21, 1 }
 0x19b   : > { %v728_v25 = vpack.c.bf16 %v724_v23, %v724_v23  ;;  %v718_v26 = vmax.f32 %v701_v21, %v710_v24 }
 0x19d   : > { %733 = vst.msk [vmem:[%s1278_s4 + $0x2] sm:$0x3] %vm731_vm2, %v728_v25  ;;  %v725_v29 = vmax.f32 %v717_v20, %v718_v26 }
 0x19f   : > { %v729_v30 = vpack.c.bf16 %v725_v29, %v725_v29 }
 0x1a1   : > { %734 = vst.msk [vmem:[%s1278_s4 + $0x4] sm:$0x3] %vm731_vm2, %v729_v30 }
 0x1a5   : > { %v942_v31 = vpop.f32.mrb[8].mxu0 }
 0x1a6   : > { %v943_v34 = vpop.f32.mrb[9].mxu0 }
 0x1a7   : > { %v944_v35 = vadd.f32 %v943_v34, %v942_v31  ;;  %v945_v36 = vpop.f32.mrb[10].mxu0 }
 0x1a8   : > { %v946_v37 = vpop.f32.mrb[11].mxu0 }
 0x1a9   : > { %v690_v38 = vadd.f32 %v944_v35, %v802_v3 }
 0x1ab   : > { %v695_v6 = vmax.f32 %v690_v38, 0.0 }
 0x1ad   : > { %697 = vst.msk [vmem:[#allocation2 + $0x20] sm:$0x1f] %vm384_vm1, %v695_v6 }
 0x1b4   : > { %v702_v7 = vld [vmem:[#allocation2 + $0x20] sm:$0x1f] }
 0x1b5   : > { %v720_v8 = vrot.slane %v702_v7, 1 }
 0x1b7   : > { %v722_v12 = vmax.f32 %v702_v7, %v720_v8 }
 0x1b9   : > { %v726_v13 = vmax.f32 %v718_v26, %v722_v12 }
 0x1bb   : > { %v730_v18 = vpack.c.bf16 %v726_v13, %v726_v13 }
 0x1bd   : > { %735 = vst.msk [vmem:[%s1278_s4 + $0x6] sm:$0x3] %vm731_vm2, %v730_v18 }
 0x1be PF: > { %s13_s12 = sadd.s32 1, %s990_s12  }
 0x1bf   : > { %p10_p4 = scmp.ge.s32.totalorder %s13_s12, 4  }
 0x1c1   :  { %12 = sbr.rel (!%p10_p4) target bundleno = 1 (0x1), region = 71 }

// kernel: mnist_net_forward.5
= control target key start
LH: loop header
LB: loop body
LE: loop exit
PB: predicated region body
PF: predicated region fallthrough
CT: control target
= control target key end

     0   :  { %v106_v28 = vlaneseq  ;;  %v635_v35 = vmov 1966171168   ;;  %s792_s0 = inlined_call_operand.vmem [shape: bf16[2,512], index: 0, kind: input, shape index: {}]   ;;  %s793_s1 = inlined_call_operand.vmem [shape: bf16[512,32], index: 1, kind: input, shape index: {}]   ;;  %s794_s2 = inlined_call_operand.vmem [shape: f32[1,32], index: 2, kind: input, shape index: {}]   ;;  %s795_s3 = inlined_call_operand.vmem [shape: bf16[32,10], index: 3, kind: input, shape index: {}]   ;;  %s796_s4 = inlined_call_operand.vmem [shape: f32[1,10], index: 4, kind: input, shape index: {}]   ;;  %s797_s5 = inlined_call_operand.hbm [shape: f32[2,10], index: 5, kind: output, shape index: {}]  }
   0x1   :  { %v577_v0 = vld [vmem:[%s793_s1 + $0x40] sm:$0xff]   ;;  %v581_v4 = vld [vmem:[%s793_s1 + $0x48] sm:$0xff]   ;;  %v585_v8 = vld [vmem:[%s793_s1 + $0x50] sm:$0xff]   ;;  %v104_v36 = vunpack.c.l.s4 %v635_v35 }
   0x2   :  { %v578_v1 = vld [vmem:[%s793_s1 + $0xc0] sm:$0xff]   ;;  %518 = vmatprep.subr.bf16.mxu0 %v577_v0  ;;  %v582_v5 = vld [vmem:[%s793_s1 + $0xc8] sm:$0xff]   ;;  %v586_v9 = vld [vmem:[%s793_s1 + $0xd0] sm:$0xff]   ;;  %v107_v33 = vshrl.u32 %v106_v28, 7 }
   0x3   :  { %v579_v2 = vld [vmem:[%s793_s1] sm:$0xff]   ;;  %540 = vmatprep.subr.bf16.mxu1 %v578_v1  ;;  %v583_v6 = vld [vmem:[%s793_s1 + $0x8] sm:$0xff]   ;;  %v587_v10 = vld [vmem:[%s793_s1 + $0x10] sm:$0xff]  }
   0x4   :  { %v580_v3 = vld [vmem:[%s793_s1 + $0x80] sm:$0xff]   ;;  %519 = vmatpush3.bf16.msra.mxu0 %v579_v2  ;;  %v584_v7 = vld [vmem:[%s793_s1 + $0x88] sm:$0xff]   ;;  %v588_v11 = vld [vmem:[%s793_s1 + $0x90] sm:$0xff]  }
   0x5   :  { %541 = vmatpush3.bf16.msra.mxu1 %v580_v3  ;;  %520 = vmatprep.subr.bf16.mxu0 %v581_v4  ;;  %v589_v12 = vld [vmem:[%s793_s1 + $0x58] sm:$0xff]   ;;  %v593_v16 = vld [vmem:[%s793_s1 + $0x60] sm:$0xff]   ;;  %v597_v20 = vld [vmem:[%s793_s1 + $0x68] sm:$0xff]  }
   0x6   :  { %542 = vmatprep.subr.bf16.mxu1 %v582_v5  ;;  %v590_v13 = vld [vmem:[%s793_s1 + $0xd8] sm:$0xff]   ;;  %v594_v17 = vld [vmem:[%s793_s1 + $0xe0] sm:$0xff]   ;;  %v598_v21 = vld [vmem:[%s793_s1 + $0xe8] sm:$0xff]  }
   0x7   :  { %v591_v14 = vld [vmem:[%s793_s1 + $0x18] sm:$0xff]   ;;  %v595_v18 = vld [vmem:[%s793_s1 + $0x20] sm:$0xff]   ;;  %v599_v22 = vld [vmem:[%s793_s1 + $0x28] sm:$0xff]  }
   0x8   :  { %521 = vmatpush3.bf16.msra.mxu0 %v583_v6  ;;  %v592_v15 = vld [vmem:[%s793_s1 + $0x98] sm:$0xff]   ;;  %v596_v19 = vld [vmem:[%s793_s1 + $0xa0] sm:$0xff]   ;;  %v600_v23 = vld [vmem:[%s793_s1 + $0xa8] sm:$0xff]  }
   0x9   :  { %543 = vmatpush3.bf16.msra.mxu1 %v584_v7  ;;  %522 = vmatprep.subr.bf16.mxu0 %v585_v8  ;;  %v601_v24 = vld [vmem:[%s793_s1 + $0x70] sm:$0xff]   ;;  %v605_v29 = vld [vmem:[%s793_s1 + $0x78] sm:$0xff]   ;;  %v481_v34 = vld.sshfl [vmem:[%s792_s0] sm:$0x33 pattern:$0x75316420] }
   0xa   :  { %544 = vmatprep.subr.bf16.mxu1 %v586_v9  ;;  %v602_v25 = vld [vmem:[%s793_s1 + $0xf0] sm:$0xff]   ;;  %v606_v30 = vld [vmem:[%s793_s1 + $0xf8] sm:$0xff]  }
   0xb   :  { %v603_v26 = vld [vmem:[%s793_s1 + $0x30] sm:$0xff]   ;;  %v607_v31 = vld [vmem:[%s793_s1 + $0x38] sm:$0xff]  }
   0xc   :  { %523 = vmatpush3.bf16.msra.mxu0 %v587_v10  ;;  %v604_v27 = vld [vmem:[%s793_s1 + $0xb0] sm:$0xff]   ;;  %v608_v32 = vld [vmem:[%s793_s1 + $0xb8] sm:$0xff]  }
   0xd   :  { %545 = vmatpush3.bf16.msra.mxu1 %v588_v11  ;;  %524 = vmatprep.subr.bf16.mxu0 %v589_v12 }
   0xe   :  { %546 = vmatprep.subr.bf16.mxu1 %v590_v13 }
  0x10   :  { %525 = vmatpush3.bf16.msra.mxu0 %v591_v14 }
  0x11   :  { %547 = vmatpush3.bf16.msra.mxu1 %v592_v15  ;;  %526 = vmatprep.subr.bf16.mxu0 %v593_v16 }
  0x12   :  { %548 = vmatprep.subr.bf16.mxu1 %v594_v17 }
  0x14   :  { %527 = vmatpush3.bf16.msra.mxu0 %v595_v18 }
  0x15   :  { %549 = vmatpush3.bf16.msra.mxu1 %v596_v19  ;;  %528 = vmatprep.subr.bf16.mxu0 %v597_v20 }
  0x16   :  { %550 = vmatprep.subr.bf16.mxu1 %v598_v21 }
  0x18   :  { %529 = vmatpush3.bf16.msra.mxu0 %v599_v22 }
  0x19   :  { %551 = vmatpush3.bf16.msra.mxu1 %v600_v23  ;;  %530 = vmatprep.subr.bf16.mxu0 %v601_v24 }
  0x1a   :  { %552 = vmatprep.subr.bf16.mxu1 %v602_v25 }
  0x1c   :  { %531 = vmatpush3.bf16.msra.mxu0 %v603_v26 }
  0x1d   :  { %553 = vmatpush3.bf16.msra.mxu1 %v604_v27  ;;  %532 = vmatprep.subr.bf16.mxu0 %v605_v29 }
  0x1e   :  { %554 = vmatprep.subr.bf16.mxu1 %v606_v30 }
  0x20   :  { %533 = vmatpush3.bf16.msra.mxu0 %v607_v31 }
  0x21   :  { %555 = vmatpush3.bf16.msra.mxu1 %v608_v32 }
  0x22   :  { %10 = vsyncpa [#allocation3], 0  ;;  %v102_v37 = vcombine.high %v481_v34, %v481_v34  ;;  %v105_v38 = vunpack.c.0.s8 %v104_v36  ;;  %v609_v44 = vld [vmem:[%s795_s3] sm:$0xff]   ;;  %v636_v45 = vmov 0.0   ;;  %v610_v46 = vld [vmem:[%s795_s3 + $0x8] sm:$0xff]   ;;  %vm637_vm0 = vmmov 0  }
  0x23   :  { %565 = vmatprep.subr.bf16.mxu0 %v636_v45  ;;  %v480_v48 = vld [vmem:[%s794_s2] ss:$0 sm:$0xff]  ;;  %vm420_vm1 = vcmask 261120   ;;  %s638_s2 = smov [#allocation2]   ;;  %vm464_vm2 = vcmask 74752  }
  0x24   :  { %v108_v39 = vsub.s32 %v105_v38, %v107_v33  ;;  %v514_v62 = vld [vmem:[%s796_s4] ss:$0 sm:$0xff]  ;;  %s472_s14 = sshll.u32 %s638_s2, 4  ;;  %s473_s14 = int_to_ptr.vmem [resolvable:$true] %s472_s14 }
  0x25   :  { %s611_s15 = scalar_lea.vmem %s473_s14, 32  ;;  %p616_p1 = scmp.lt.s32.totalorder %s473_s14, %s473_s14 }
  0x26   :  { %v116_v40 = vrot.slane %v102_v37, %v108_v39  ;;  %v109_v41 = vrot.slane %v481_v34, %v108_v39  ;;  %p612_p0 = scmp.ne.s32.totalorder %s473_s14, %s611_s15  ;;  %p617_p2 = scmp.lt.s32.totalorder %s611_s15, %s611_s15 }
  0x28   :  { %347 = vmatprep.mubr.bf16.mxu0 %v116_v40  ;;  %v118_v42 = vcombine.high %v116_v40, %v116_v40  ;;  %v117_v43 = vcombine.high %v109_v41, %v109_v41  ;;  %p618_p3 = por %p617_p2, %p616_p1 }
  0x29   :  { %348 = vmatmul.mubr.bf16.vlgmr.msra.gmra.mrb[0].mxu0 %v109_v41 }
  0x2a   :  { %387 = vmatprep.mubr.bf16.mxu1 %v118_v42  ;;  %566 = vmatpush3.bf16.msra.mxu0 %v609_v44  ;;  %p619_p4 = pnand %p618_p3, %p612_p0 }
  0x2b   :  { %388 = vmatmul.mubr.bf16.vlgmr.msra.gmra.mrb[0].mxu1 %v117_v43  ;;  %567 = vmatprep.subr.bf16.mxu0 %v636_v45 }
  0x2c   :  { %569 = vmatprep.mubr.msk.bf16.mxu0 %vm637_vm0, %v636_v45 }
  0x2e   :  { %568 = vmatpush3.bf16.msra.mxu0 %v610_v46 }
  0xfc   :  { %v534_v47 = vpop.f32.mrb[0].mxu0 }
  0xfd   :  { %v535_v49 = vpop.f32.mrb[1].mxu0 }
  0xfe   :  { %v556_v50 = vpop.f32.mrb[0].mxu1  ;;  %v536_v51 = vadd.f32 %v535_v49, %v534_v47  ;;  %v537_v52 = vpop.f32.mrb[2].mxu0 }
  0xff   :  { %v557_v53 = vpop.f32.mrb[1].mxu1  ;;  %v538_v54 = vpop.f32.mrb[3].mxu0 }
 0x100   :  { %v350_v55 = vadd.f32 %v536_v51, %v480_v48  ;;  %v558_v56 = vadd.f32 %v557_v53, %v556_v50  ;;  %v559_v57 = vpop.f32.mrb[2].mxu1 }
 0x101   :  { %v560_v58 = vpop.f32.mrb[3].mxu1 }
 0x102   :  { %v390_v59 = vadd.f32 %v558_v56, %v350_v55 }
 0x104   :  { %v395_v60 = vmax.f32 %v390_v59, 0.0 }
 0x106   :  { %v396_v61 = vpack.c.bf16 %v395_v60, %v395_v60 }
 0x108   :  { %570 = vmatmul.mubr.msk.bf16.vlgmr.msra.gmra.mrb[4].mxu0 %vm420_vm1, %v396_v61 }
 0x1db   :  { %v458_v63 = vpop.f32.mrb[4].mxu0 }
 0x1dc   :  { %v459_v0 = vadd.f32 %v514_v62, %v458_v63  ;;  %v571_v1 = vpop.f32.mrb[5].mxu0 }
 0x1dd   :  { %v461_v2 = vpop.f32.mrb[6].mxu0 }
 0x1de   :  { %v572_v3 = vpop.f32.mrb[7].mxu0  ;;  %465 = vst.msk [vmem:[#allocation2] sm:$0x3] %vm464_vm2, %v459_v0 }
 0x1df   :  { %622 = shalt.err (!%p619_p4)
}
 0x1e0   :  { %s623_s4 = scalar_lea.hbm %s797_s5, 32 }
 0x1e1   :  { %p624_p5 = scmp.ne.s32.totalorder %s797_s5, %s623_s4  ;;  %p627_p6 = scmp.lt.u32.totalorder %s623_s4, %s797_s5 }
 0x1e3   :  { %p629_p7 = pnand %p627_p6, %p624_p5 }
 0x1e5   :  { %632 = shalt.err (!%p629_p7)
}
 0x1e6   :  { %475 = dma.vmem_to_hbm [thread:$0]  %s473_s14, 32, %s797_s5, [#allocation3]  }
 0x1e7   :  { %633 = dma.done.wait [#allocation3], 32  }
 0x1e8   :  { %634 = vsyncadd [#allocation3], 4294967264 }
 0x1e9   :  { %479 = vsyncpa [#allocation3], 1 }

// kernel: mnist_net_forward.3
= control target key start
LH: loop header
LB: loop body
LE: loop exit
PB: predicated region body
PF: predicated region fallthrough
CT: control target
= control target key end

     0   :  { %s4468_s12 = smov 0   ;;  %s5972_s0 = inlined_call_operand.vmem [shape: bf16[2,18,18,4], index: 0, kind: input, shape index: {}]   ;;  %s5973_s1 = inlined_call_operand.vmem [shape: bf16[64,16], index: 1, kind: input, shape index: {}]   ;;  %s5974_s2 = inlined_call_operand.vmem [shape: f32[1,16], index: 2, kind: input, shape index: {}]   ;;  %s5975_s3 = inlined_call_operand.vmem [shape: bf16[2,13,13,16], index: 3, kind: output, shape index: {}]  }
   0x1 LB: > { %s3664_s13 = sadd.s32 4294967295, %s4429_s12   ;;  %p3668_p0 = scmp.ge.s32.totalorder %s4429_s12, 1  ;;  %s4429_s12 = sphi %s4468_s12, %s13_s12  }
   0x2   : > { %p137_p1 = scmp.lt.s32.totalorder %s4429_s12, 3 }
   0x4   : > { %p138_p2 = pnand %p3668_p0, %p137_p1 }
   0x5   : > { %p161_p3 = scmp.lt.s32.totalorder (!%p138_p2), %s3664_s13, 1  ;;  %s4431_s18 = smov (!%p138_p2), 16   ;;  %vm5986_vm0 = vsmask.f32 (!%p138_p2), 6400  ;;  %vm5981_vm1 = vmmov (!%p138_p2), 0   ;;  %vm5978_vm2 = vcmask (!%p138_p2), 31744  }
   0x6   : > { %141 = sbr.rel (%p138_p2) target bundleno = 790 (0x316), region = 32  ;;  %s4432_s19 = smov (!%p138_p2), 8   ;;  %vm5979_vm3 = vcmask (!%p138_p2), 64512   ;;  %vm329_vm4 = vcmask (!%p138_p2), 97280   ;;  %vm332_vm5 = vcmask (!%p138_p2), 130048   ;;  %vm335_vm6 = vcmask (!%p138_p2), 162816  }
   0x7   : > { %s4433_s20 = smov (!%p138_p2), 32   ;;  %s4434_s21 = smov (!%p138_p2), 4   ;;  %vm5977_vm7 = vcmask (!%p138_p2), 195584   ;;  %vm5976_vm8 = vcmask (!%p138_p2), 228352   ;;  %vm344_vm9 = vcmask (!%p138_p2), 261120   ;;  %vm5989_vm10 = vcmask (!%p138_p2), 293888  }
   0x8   : > { %s4435_s22 = smov (!%p138_p2), 24   ;;  %s4436_s23 = smov (!%p138_p2), 20   ;;  %vm5990_vm11 = vcmask (!%p138_p2), 326656   ;;  %vm353_vm12 = vcmask (!%p138_p2), 359424   ;;  %vm356_vm13 = vcmask (!%p138_p2), 392192   ;;  %vm5988_vm14 = vcmask (!%p138_p2), 424960  }
   0x9   : > { %s4437_s24 = smov (!%p138_p2), 36   ;;  %s4438_s25 = smov (!%p138_p2), 12   ;;  %vm5985_vm15 = vcmask (!%p138_p2), 457728  }
   0xa   : > { %s4439_s26 = smov (!%p138_p2), 28   ;;  %s4440_s27 = smov (!%p138_p2), 40  }
   0xb   : > { %s4441_s28 = smov (!%p138_p2), 44   ;;  %s4442_s29 = smov (!%p138_p2), 48  }
   0xc   : > { %s4443_s30 = smov (!%p138_p2), 52   ;;  %s4444_s4 = smov (!%p138_p2), 56  }
   0xd   : > { %s6079_s13 = smov (!%p161_p3, %s3664_s13), 1  ;;  %s4445_s5 = smov 60  }
   0xe   : > { %s4259_s14 = smul.u32 216, %s6079_s13 }
  0x10   : > { %s4482_s17 = scalar_lea.vmem %s5972_s0, %s4259_s14 }
  0x11   : > { %v4286_v0 = vld [vmem:[%s4482_s17 + $0xc] sm:$0xff]   ;;  %v4287_v1 = vld [vmem:[%s4482_s17] sm:$0xff]   ;;  %v4488_v2 = vld [vmem:[%s4482_s17 + $0x18] sm:$0xff]  }
  0x12   : > { %232 = vrot.lane.b32.xlu1 %v4286_v0, %s4431_s18  ;;  %v210_v3 = vrot.slane %v4287_v1, 1  ;;  %v202_v4 = vshrl.u32 %v4287_v1, 16  ;;  %v204_v5 = vshll.u32 %v4287_v1, 16  ;;  %v237_v6 = vshll.u32 %v4286_v0, 16  ;;  %v4491_v7 = vld [vmem:[%s4482_s17 + $0xc] sm:$0xff]   ;;  %v4505_v24 = vld [vmem:[%s4482_s17 + $0x18] sm:$0xff]  }
  0x13   : > { %v269_v8 = vshll.u32 %v4488_v2, 16  ;;  %v243_v11 = vrot.slane %v4286_v0, 1  ;;  %v235_v12 = vshrl.u32 %v4286_v0, 16  ;;  %v466_v14 = vshrl.u32 %v4491_v7, 16  ;;  %v4295_v45 = vld [vmem:[%s4482_s17 + $0x24] sm:$0xff]  }
  0x14   : > { %211 = vrot.lane.b32.xlu0 %v210_v3, %s4432_s19  ;;  %v206_v9 = vrot.slane %v204_v5, 1  ;;  %v217_v10 = vrot.slane %v202_v4, 1  ;;  %v239_v13 = vrot.slane %v237_v6, 1  ;;  %v468_v15 = vshll.u32 %v4491_v7, 16 }
  0x15   : > { %v218_v16 = vrot.slane %v204_v5, 2  ;;  %v249_v18 = vrot.slane %v235_v12, 1  ;;  %v267_v19 = vshrl.u32 %v4488_v2, 16  ;;  %v4290_v20 = vld [vmem:[%s4482_s17 + $0x8] ss:$0 sps:$4 sm:$0x11]  }
  0x16   : > { %264 = vrot.lane.b32.xlu1 %v4488_v2, %s4433_s20  ;;  %v207_v17 = vor.u32 %v206_v9, %v202_v4  ;;  %v470_v21 = vrot.slane %v468_v15, 1  ;;  %v271_v22 = vrot.slane %v269_v8, 1  ;;  %v4291_v23 = vld [vmem:[%s4482_s17 + $0x14] ss:$0 sps:$4 sm:$0x11]   ;;  %v240_v25 = vor.u32 %v239_v13, %v235_v12  ;;  %v4299_v13 = vld [vmem:[%s4482_s17 + $0x24] sm:$0xff]  }
  0x17   : > { %v221_v26 = vshll.u32 %v4290_v20, 16  ;;  %v4292_v27 = vld [vmem:[%s4482_s17 + $0x14] ss:$0 sps:$4 sm:$0x11]   ;;  %v219_v29 = vor.u32 %v218_v16, %v217_v10  ;;  %v250_v30 = vrot.slane %v237_v6, 2  ;;  %v253_v31 = vshll.u32 %v4291_v23, 16 }
  0x18   : > { %208 = vrot.lane.b32.xlu0 %v207_v17, %s4434_s21  ;;  %v471_v28 = vor.u32 %v470_v21, %v466_v14  ;;  %v480_v32 = vrot.slane %v466_v14, 1  ;;  %v481_v34 = vrot.slane %v468_v15, 2  ;;  %v484_v35 = vshll.u32 %v4292_v27, 16  ;;  %v4294_v41 = vld [vmem:[%s4482_s17 + $0x20] ss:$0 sps:$4 sm:$0x11]  }
  0x19   : > { %v223_v33 = vrot.slane %v221_v26, 2  ;;  %v272_v36 = vor.u32 %v271_v22, %v267_v19  ;;  %v498_v37 = vshrl.u32 %v4505_v24, 16  ;;  %v500_v38 = vshll.u32 %v4505_v24, 16  ;;  %v4296_v60 = vld [vmem:[%s4482_s17 + $0x2c] ss:$0 sps:$4 sm:$0x11]  }
  0x1a   : > { %244 = vrot.lane.b32.xlu1 %v243_v11, %s4435_s22  ;;  %v251_v39 = vor.u32 %v250_v30, %v249_v18  ;;  %v255_v40 = vrot.slane %v253_v31, 2  ;;  %v482_v43 = vor.u32 %v481_v34, %v480_v32  ;;  %v486_v44 = vrot.slane %v484_v35, 2  ;;  %v4297_v0 = vld [vmem:[%s4482_s17 + $0x20] ss:$0 sps:$4 sm:$0x11]   ;;  %v4298_v9 = vld [vmem:[%s4482_s17 + $0x30] sm:$0xff]  }
  0x1b   : > { %v224_v42 = vsel %vm5986_vm0, %v219_v29, %v223_v33  ;;  %v502_v47 = vrot.slane %v500_v38, 1  ;;  %v512_v48 = vrot.slane %v498_v37, 1  ;;  %v513_v50 = vrot.slane %v500_v38, 2  ;;  %v4300_v20 = vld [vmem:[%s4482_s17 + $0x38] ss:$0 sps:$4 sm:$0x11]  }
  0x1c   : > { %241 = vrot.lane.b32.xlu0 %v240_v25, %s4436_s23  ;;  %v256_v46 = vsel %vm5986_vm0, %v251_v39, %v255_v40  ;;  %v487_v49 = vsel %vm5986_vm0, %v482_v43, %v486_v44  ;;  %v516_v51 = vshll.u32 %v4294_v41, 16  ;;  %v474_v52 = vrot.slane %v4491_v7, 1  ;;  %v4302_v25 = vld [vmem:[%s4482_s17 + $0x24] sm:$0xff]   ;;  %v4303_v31 = vld [vmem:[%s4482_s17 + $0x18] sm:$0xff]  }
  0x1d   : > { %v503_v53 = vor.u32 %v502_v47, %v498_v37  ;;  %v532_v54 = vshll.u32 %v4295_v45, 16  ;;  %v514_v55 = vor.u32 %v513_v50, %v512_v48  ;;  %v530_v57 = vshrl.u32 %v4295_v45, 16  ;;  %v4305_v50 = vld [vmem:[%s4482_s17 + $0x20] ss:$0 sps:$4 sm:$0x11]  }
  0x1e   : > { %472 = vrot.lane.b32.xlu1 %v471_v28, %s4434_s21  ;;  %v518_v56 = vrot.slane %v516_v51, 2  ;;  %v506_v61 = vrot.slane %v4505_v24, 1  ;;  %v548_v3 = vshll.u32 %v4296_v60, 16  ;;  %v281_v4 = vrot.slane %v267_v19, 1 }
  0x1f   : > { %v534_v58 = vrot.slane %v532_v54, 1  ;;  %v544_v63 = vrot.slane %v530_v57, 1  ;;  %v545_v1 = vrot.slane %v532_v54, 2  ;;  %v538_v5 = vrot.slane %v4295_v45, 1 }
  0x20   : > { %273 = vrot.lane.b32.xlu0 %v272_v36, %s4437_s24  ;;  %v519_v59 = vsel %vm5986_vm0, %v514_v55, %v518_v56  ;;  %v282_v6 = vrot.slane %v269_v8, 2  ;;  %v285_v7 = vshll.u32 %v4297_v0, 16  ;;  %v550_v11 = vrot.slane %v548_v3, 2  ;;  %v4578_v0 = vld [vmem:[%s4482_s17 + $0x24] sm:$0xff]  }
  0x21   : > { %v535_v62 = vor.u32 %v534_v58, %v530_v57  ;;  %v546_v10 = vor.u32 %v545_v1, %v544_v63  ;;  %v275_v12 = vrot.slane %v4488_v2, 1  ;;  %v564_v16 = vshll.u32 %v4298_v9, 16  ;;  %v4568_v57 = vld [vmem:[%s4482_s17 + $0x30] sm:$0xff]  }
  0x22   : > { %225 = vrot.lane.b32.xlu1 %v224_v42, %s4438_s25  ;;  %v283_v14 = vor.u32 %v282_v6, %v281_v4  ;;  %v287_v15 = vrot.slane %v285_v7, 2  ;;  %v562_v8 = vshrl.u32 %v4298_v9, 16  ;;  %v301_v18 = vshll.u32 %v4299_v13, 16  ;;  %v4589_v7 = vld [vmem:[%s5973_s1 + $0x8] sm:$0xff]  }
  0x23   : > { %v551_v17 = vsel %vm5986_vm0, %v546_v10, %v550_v11  ;;  %v566_v19 = vrot.slane %v564_v16, 1  ;;  %v299_v21 = vshrl.u32 %v4299_v13, 16  ;;  %v577_v27 = vrot.slane %v564_v16, 2 }
  0x24   : > { %257 = vrot.lane.b32.xlu0 %v256_v46, %s4439_s26  ;;  %v288_v2 = vsel %vm5986_vm0, %v283_v14, %v287_v15  ;;  %v303_v22 = vrot.slane %v301_v18, 1  ;;  %v576_v26 = vrot.slane %v562_v8, 1  ;;  %v580_v28 = vshll.u32 %v4300_v20, 16  ;;  %v4604_v14 = vld [vmem:[%s5973_s1 + $0x10] sm:$0xff]   ;;  %v4620_v20 = vld [vmem:[%s5973_s1 + $0x18] sm:$0xff]  }
  0x25   : > { %v567_v23 = vor.u32 %v566_v19, %v562_v8  ;;  %v570_v30 = vrot.slane %v4298_v9, 1  ;;  %v313_v32 = vrot.slane %v299_v21, 1  ;;  %v314_v33 = vrot.slane %v301_v18, 2  ;;  %v4309_v8 = vld [vmem:[%s4482_s17 + $0x2c] ss:$0 sps:$4 sm:$0x11]  }
  0x26   : > { %488 = vrot.lane.b32.xlu1 %v487_v49, %s4438_s25  ;;  %v304_v29 = vor.u32 %v303_v22, %v299_v21  ;;  %v902_v35 = vshll.u32 %v4302_v25, 16  ;;  %v578_v36 = vor.u32 %v577_v27, %v576_v26  ;;  %v582_v37 = vrot.slane %v580_v28, 2  ;;  %v4310_v22 = vld [vmem:[%s4482_s17 + $0x3c] sm:$0xff]  }
  0x27   : > { %v307_v38 = vrot.slane %v4299_v13, 1  ;;  %v685_v39 = vshll.u32 %v4303_v31, 16  ;;  %v315_v40 = vor.u32 %v314_v33, %v313_v32  ;;  %v900_v42 = vshrl.u32 %v4302_v25, 16 }
  0x28   : > { %475 = vrot.lane.b32.xlu0 %v474_v52, %s4432_s19  ;;  %v904_v43 = vrot.slane %v902_v35, 1  ;;  %v583_v44 = vsel %vm5986_vm0, %v578_v36, %v582_v37  ;;  %v683_v46 = vshrl.u32 %v4303_v31, 16  ;;  %v915_v52 = vrot.slane %v902_v35, 2 }
  0x29   : > { %v687_v47 = vrot.slane %v685_v39, 1  ;;  %v914_v51 = vrot.slane %v900_v42, 1  ;;  %v908_v56 = vrot.slane %v4302_v25, 1  ;;  %v698_v58 = vrot.slane %v685_v39, 2 }
  0x2a   : > { %504 = vrot.lane.b32.xlu1 %v503_v53, %s4436_s23  ;;  %v905_v49 = vor.u32 %v904_v43, %v900_v42  ;;  %v697_v55 = vrot.slane %v683_v46, 1  ;;  %v691_v63 = vrot.slane %v4303_v31, 1  ;;  %v934_v4 = vshll.u32 %v4568_v57, 16  ;;  %v4312_v39 = vld [vmem:[%s4482_s17 + $0x44] ss:$0 sps:$4 sm:$0x11]  }
  0x2b   : > { %v688_v54 = vor.u32 %v687_v47, %v683_v46  ;;  %v916_v60 = vor.u32 %v915_v52, %v914_v51  ;;  %v932_v11 = vshrl.u32 %v4568_v57, 16  ;;  %v715_v15 = vshrl.u32 %v4578_v0, 16 }
  0x2c   : > { %495 = vrot.lane.b32.xlu0 %v4505_v24, %s4431_s18  ;;  %v4301_v24 = vld [vmem:[%s4482_s17 + $0x2c] ss:$0 sps:$4 sm:$0x11]   ;;  %v699_v1 = vor.u32 %v698_v58, %v697_v55  ;;  %v733_v26 = vshll.u32 %v4309_v8, 16  ;;  %v966_v33 = vshll.u32 %v4310_v22, 16  ;;  %v964_v37 = vshrl.u32 %v4310_v22, 16 }
  0x2d   : > { %v317_v34 = vshll.u32 %v4301_v24, 16  ;;  %v946_v18 = vrot.slane %v932_v11, 1  ;;  %v940_v24 = vrot.slane %v4568_v57, 1  ;;  %v982_v46 = vshll.u32 %v4312_v39, 16 }
  0x2e   : > { %520 = vrot.lane.b32.xlu1 %v519_v59, %s4439_s26  ;;  %v701_v59 = vshll.u32 %v4305_v50, 16  ;;  %v735_v32 = vrot.slane %v733_v26, 2  ;;  %v4314_v50 = vld [vmem:[%s4482_s17 + $0x48] sm:$0xff]  }
  0x2f   : > { %v319_v41 = vrot.slane %v317_v34, 2  ;;  %v998_v58 = vshll.u32 %v4314_v50, 16  ;;  %v1004_v8 = vrot.slane %v4314_v50, 1 }
  0x30   : > { %507 = vrot.lane.b32.xlu0 %v506_v61, %s4435_s22  ;;  %v703_v3 = vrot.slane %v701_v59, 2 }
  0x31   : > { %v320_v48 = vsel %vm5986_vm0, %v315_v40, %v319_v41  ;;  %v4313_v40 = vld [vmem:[%s4482_s17 + $0x38] ss:$0 sps:$4 sm:$0x11]  }
  0x32   : > { %536 = vrot.lane.b32.xlu1 %v535_v62, %s4437_s24  ;;  %v4574_v62 = vld [vmem:[%s5973_s1] sm:$0xff]   ;;  %v704_v10 = vsel %vm5986_vm0, %v699_v1, %v703_v3  ;;  %v4316_v1 = vld [vmem:[%s4482_s17 + $0x50] ss:$0 sps:$4 sm:$0x11]  }
  0x34   : > { %527 = vrot.lane.b32.xlu0 %v4295_v45, %s4433_s20  ;;  %v4304_v45 = vld [vmem:[%s4482_s17 + $0x2c] ss:$0 sps:$4 sm:$0x11]  }
  0x35   : > { %v918_v53 = vshll.u32 %v4304_v45, 16  ;;  %v979_v45 = vrot.slane %v966_v33, 2 }
  0x36   : > { %539 = vrot.lane.b32.xlu1 %v538_v5, %s4440_s27  ;;  %v4446_v5 = vmov 0.0  }
  0x37   : > { %v920_v61 = vrot.slane %v918_v53, 2  ;;  %4103 = vmatprep.subr.bf16.mxu1 %v4446_v5  ;;  %4091 = vmatprep.subr.bf16.mxu0 %v4446_v5 }
  0x38   : > { %276 = vrot.lane.b32.xlu0 %v275_v12, %s4440_s27  ;;  %4104 = vmatpush3.bf16.msra.mxu1 %v4574_v62  ;;  %v936_v12 = vrot.slane %v934_v4, 1 }
  0x39   : > { %v921_v6 = vsel %vm5986_vm0, %v916_v60, %v920_v61  ;;  %4092 = vmatpush3.bf16.msra.mxu0 %v4574_v62  ;;  %4105 = vmatprep.subr.bf16.mxu1 %v4446_v5  ;;  %v996_v61 = vshrl.u32 %v4314_v50, 16 }
  0x3a   : > { %552 = vrot.lane.b32.xlu1 %v551_v17, %s4441_s28  ;;  %4093 = vmatprep.subr.bf16.mxu0 %v4446_v5  ;;  %v937_v17 = vor.u32 %v936_v12, %v932_v11 }
  0x3b   : > { %4111 = vmatprep.mubr.msk.bf16.mxu1 %vm5981_vm1, %v4446_v5  ;;  %4099 = vmatprep.mubr.msk.bf16.mxu0 %vm5981_vm1, %v4446_v5  ;;  %v1010_v12 = vrot.slane %v996_v61, 1 }
  0x3c   : > { %289 = vrot.lane.b32.xlu0 %v288_v2, %s4441_s28  ;;  %4106 = vmatpush3.bf16.msra.mxu1 %v4589_v7  ;;  %v947_v2 = vrot.slane %v934_v4, 2  ;;  %v4317_v4 = vld [vmem:[%s4482_s17 + $0x44] ss:$0 sps:$4 sm:$0x11]  }
  0x3d   : > { %4094 = vmatpush3.bf16.msra.mxu0 %v4589_v7  ;;  %4107 = vmatprep.subr.bf16.mxu1 %v4446_v5 }
  0x3e   : > { %559 = vrot.lane.b32.xlu1 %v4298_v9, %s4442_s29  ;;  %v717_v9 = vshll.u32 %v4578_v0, 16  ;;  %4095 = vmatprep.subr.bf16.mxu0 %v4446_v5  ;;  %v948_v27 = vor.u32 %v947_v2, %v946_v18 }
  0x40   : > { %296 = vrot.lane.b32.xlu0 %v4299_v13, %s4442_s29  ;;  %v4308_v13 = vld [vmem:[%s4482_s17 + $0x38] ss:$0 sps:$4 sm:$0x11]   ;;  %v719_v16 = vrot.slane %v717_v9, 1  ;;  %4108 = vmatpush3.bf16.msra.mxu1 %v4604_v14  ;;  %v730_v25 = vrot.slane %v717_v9, 2 }
  0x41   : > { %v950_v19 = vshll.u32 %v4308_v13, 16  ;;  %4096 = vmatpush3.bf16.msra.mxu0 %v4604_v14  ;;  %4109 = vmatprep.subr.bf16.mxu1 %v4446_v5  ;;  %v1011_v13 = vrot.slane %v998_v58, 2 }
  0x42   : > { %568 = vrot.lane.b32.xlu1 %v567_v23, %s4443_s30  ;;  %v720_v21 = vor.u32 %v719_v16, %v715_v15  ;;  %4097 = vmatprep.subr.bf16.mxu0 %v4446_v5  ;;  %v729_v23 = vrot.slane %v715_v15, 1  ;;  %v1014_v15 = vshll.u32 %v4316_v1, 16  ;;  %v4319_v16 = vld [vmem:[%s4482_s17 + $0x30] sm:$0xff]  }
  0x43   : > { %v952_v28 = vrot.slane %v950_v19, 2  ;;  %v1119_v26 = vshll.u32 %v4319_v16, 16  ;;  %v4324_v1 = vld [vmem:[%s4482_s17 + $0x50] ss:$0 sps:$4 sm:$0x11]  }
  0x44   : > { %305 = vrot.lane.b32.xlu0 %v304_v29, %s4443_s30  ;;  %4110 = vmatpush3.bf16.msra.mxu1 %v4620_v20  ;;  %v723_v29 = vrot.slane %v4578_v0, 1  ;;  %v731_v31 = vor.u32 %v730_v25, %v729_v23  ;;  %v1012_v23 = vor.u32 %v1011_v13, %v1010_v12  ;;  %v4325_v12 = vld [vmem:[%s4482_s17 + $0x44] ss:$0 sps:$4 sm:$0x11]  }
  0x45   : > { %4098 = vmatpush3.bf16.msra.mxu0 %v4620_v20  ;;  %4127 = vmatprep.subr.bf16.mxu1 %v4446_v5  ;;  %v953_v34 = vsel %vm5986_vm0, %v948_v27, %v952_v28 }
  0x46   : > { %571 = vrot.lane.b32.xlu1 %v570_v30, %s4444_s4  ;;  %v4311_v30 = vld [vmem:[%s4482_s17 + $0x30] sm:$0xff]   ;;  %4115 = vmatprep.subr.bf16.mxu0 %v4446_v5  ;;  %v736_v36 = vsel %vm5986_vm0, %v731_v31, %v735_v32 }
  0x47   : > { %v749_v35 = vshll.u32 %v4311_v30, 16  ;;  %v747_v41 = vshrl.u32 %v4311_v30, 16  ;;  %v755_v55 = vrot.slane %v4311_v30, 1 }
  0x48   : > { %308 = vrot.lane.b32.xlu0 %v307_v38, %s4444_s4  ;;  %v968_v38 = vrot.slane %v966_v33, 1  ;;  %v4321_v33 = vld [vmem:[%s4482_s17 + $0x38] ss:$0 sps:$4 sm:$0x11]  }
  0x49   : > { %v751_v42 = vrot.slane %v749_v35, 1  ;;  %v761_v51 = vrot.slane %v747_v41, 1  ;;  %v762_v52 = vrot.slane %v749_v35, 2  ;;  %v1121_v35 = vrot.slane %v1119_v26, 1 }
  0x4a   : > { %584 = vrot.lane.b32.xlu1 %v583_v44, %s4445_s5  ;;  %v969_v43 = vor.u32 %v968_v38, %v964_v37  ;;  %v978_v44 = vrot.slane %v964_v37, 1 }
  0x4b   : > { %v752_v47 = vor.u32 %v751_v42, %v747_v41  ;;  %v763_v59 = vor.u32 %v762_v52, %v761_v51 }
  0x4c   : > { %321 = vrot.lane.b32.xlu0 %v320_v48, %s4445_s5  ;;  %v972_v48 = vrot.slane %v4310_v22, 1  ;;  %v980_v53 = vor.u32 %v979_v45, %v978_v44  ;;  %v1125_v45 = vrot.slane %v4319_v16, 1 }
  0x4e   : > { %906 = vrot.lane.b32.xlu1 %v905_v49, %s4434_s21  ;;  %v765_v49 = vshll.u32 %v4313_v40, 16 }
  0x50   : > { %689 = vrot.lane.b32.xlu0 %v688_v54, %s4434_s21  ;;  %v984_v54 = vrot.slane %v982_v46, 2  ;;  %v4322_v46 = vld [vmem:[%s4482_s17 + $0x48] sm:$0xff]  }
  0x52   : > { %909 = vrot.lane.b32.xlu1 %v908_v56, %s4432_s19  ;;  %v767_v56 = vrot.slane %v765_v49, 2  ;;  %v985_v60 = vsel %vm5986_vm0, %v980_v53, %v984_v54  ;;  %v1135_v49 = vshll.u32 %v4321_v33, 16  ;;  %v4323_v53 = vld [vmem:[%s4482_s17 + $0x3c] sm:$0xff]  }
  0x54   : > { %692 = vrot.lane.b32.xlu0 %v691_v63, %s4432_s19  ;;  %v1000_v63 = vrot.slane %v998_v58, 1  ;;  %v768_v3 = vsel %vm5986_vm0, %v763_v59, %v767_v56  ;;  %v1368_v56 = vshll.u32 %v4322_v46, 16 }
  0x56   : > { %922 = vrot.lane.b32.xlu1 %v921_v6, %s4438_s25  ;;  %v4318_v6 = vld [vmem:[%s4482_s17 + $0x3c] sm:$0xff]   ;;  %v1001_v11 = vor.u32 %v1000_v63, %v996_v61  ;;  %v1370_v63 = vrot.slane %v1368_v56, 1 }
  0x57   : > { %v1334_v25 = vshrl.u32 %v4318_v6, 16  ;;  %v1342_v44 = vrot.slane %v4318_v6, 1 }
  0x58   : > { %705 = vrot.lane.b32.xlu0 %v704_v10, %s4438_s25 }
  0x59   : > { %v1348_v38 = vrot.slane %v1334_v25, 1 }
  0x5a   : > { %929 = vrot.lane.b32.xlu1 %v4568_v57, %s4431_s18  ;;  %v4315_v57 = vld [vmem:[%s4482_s17 + $0x3c] sm:$0xff]  }
  0x5b   : > { %v779_v9 = vshrl.u32 %v4315_v57, 16  ;;  %v787_v18 = vrot.slane %v4315_v57, 1 }
  0x5c   : > { %712 = vrot.lane.b32.xlu0 %v4578_v0, %s4431_s18  ;;  %v781_v0 = vshll.u32 %v4315_v57, 16 }
  0x5e   : > { %938 = vrot.lane.b32.xlu1 %v937_v17, %s4436_s23  ;;  %v783_v10 = vrot.slane %v781_v0, 1  ;;  %v793_v17 = vrot.slane %v779_v9, 1  ;;  %v794_v19 = vrot.slane %v781_v0, 2  ;;  %v1151_v0 = vshll.u32 %v4323_v53, 16 }
  0x60   : > { %721 = vrot.lane.b32.xlu0 %v720_v21, %s4436_s23  ;;  %v784_v2 = vor.u32 %v783_v10, %v779_v9  ;;  %v797_v21 = vshll.u32 %v4317_v4, 16  ;;  %v1149_v9 = vshrl.u32 %v4323_v53, 16  ;;  %v1153_v10 = vrot.slane %v1151_v0, 1 }
  0x62   : > { %941 = vrot.lane.b32.xlu1 %v940_v24, %s4435_s22  ;;  %v1016_v24 = vrot.slane %v1014_v15, 2  ;;  %v799_v27 = vrot.slane %v797_v21, 2  ;;  %v1164_v21 = vrot.slane %v1151_v0, 2 }
  0x64   : > { %724 = vrot.lane.b32.xlu0 %v723_v29, %s4435_s22  ;;  %v4320_v29 = vld [vmem:[%s4482_s17 + $0x44] ss:$0 sps:$4 sm:$0x11]   ;;  %v1017_v31 = vsel %vm5986_vm0, %v1012_v23, %v1016_v24  ;;  %v4709_v23 = vld [vmem:[%s4482_s17 + $0x54] sm:$0xff]  }
  0x65   : > { %v1352_v41 = vshll.u32 %v4320_v29, 16  ;;  %v4713_v29 = vld [vmem:[%s4482_s17 + $0x48] sm:$0xff]   ;;  %v1400_v33 = vshll.u32 %v4709_v23, 16 }
  0x66   : > { %954 = vrot.lane.b32.xlu1 %v953_v34, %s4439_s26  ;;  %v1117_v34 = vshrl.u32 %v4319_v16, 16  ;;  %v1381_v16 = vrot.slane %v1368_v56, 2  ;;  %v4331_v56 = vld [vmem:[%s4482_s17 + $0x50] ss:$0 sps:$4 sm:$0x11]  }
  0x67   : > { %v1354_v52 = vrot.slane %v1352_v41, 2  ;;  %v1402_v41 = vrot.slane %v1400_v33, 1 }
  0x68   : > { %737 = vrot.lane.b32.xlu0 %v736_v36, %s4439_s26 }
  0x6a   : > { %961 = vrot.lane.b32.xlu1 %v4310_v22, %s4433_s20  ;;  %v1336_v22 = vshll.u32 %v4318_v6, 16 }
  0x6c   : > { %744 = vrot.lane.b32.xlu0 %v4311_v30, %s4433_s20  ;;  %v1338_v28 = vrot.slane %v1336_v22, 1  ;;  %v795_v30 = vor.u32 %v794_v19, %v793_v17  ;;  %v1349_v40 = vrot.slane %v1336_v22, 2  ;;  %v1384_v17 = vshll.u32 %v4324_v1, 16 }
  0x6d   : > { %v1374_v19 = vrot.slane %v4322_v46, 1  ;;  %v1167_v22 = vshll.u32 %v4325_v12, 16  ;;  %v1199_v12 = vshll.u32 %v4331_v56, 16 }
  0x6e   : > { %970 = vrot.lane.b32.xlu1 %v969_v43, %s4437_s24  ;;  %v800_v36 = vsel %vm5986_vm0, %v795_v30, %v799_v27  ;;  %v1339_v37 = vor.u32 %v1338_v28, %v1334_v25  ;;  %v1131_v43 = vrot.slane %v1117_v34, 1  ;;  %v1350_v51 = vor.u32 %v1349_v40, %v1348_v38 }
  0x6f   : > { %v1157_v28 = vrot.slane %v4323_v53, 1  ;;  %v1398_v40 = vshrl.u32 %v4709_v23, 16 }
  0x70   : > { %753 = vrot.lane.b32.xlu0 %v752_v47, %s4437_s24  ;;  %v1122_v47 = vor.u32 %v1121_v35, %v1117_v34  ;;  %v1355_v59 = vsel %vm5986_vm0, %v1350_v51, %v1354_v52  ;;  %v1181_v51 = vshrl.u32 %v4713_v29, 16 }
  0x72   : > { %973 = vrot.lane.b32.xlu1 %v972_v48, %s4440_s27  ;;  %v1132_v48 = vrot.slane %v1119_v26, 2  ;;  %v1386_v26 = vrot.slane %v1384_v17, 2 }
  0x74   : > { %756 = vrot.lane.b32.xlu0 %v755_v55, %s4440_s27  ;;  %v1137_v55 = vrot.slane %v1135_v49, 2 }
  0x76   : > { %986 = vrot.lane.b32.xlu1 %v985_v60, %s4441_s28  ;;  %v1366_v60 = vshrl.u32 %v4322_v46, 16 }
  0x78   : > { %769 = vrot.lane.b32.xlu0 %v768_v3, %s4441_s28  ;;  %v1380_v15 = vrot.slane %v1366_v60, 1 }
  0x7a   : > { %993 = vrot.lane.b32.xlu1 %v4314_v50, %s4442_s29  ;;  %v1382_v25 = vor.u32 %v1381_v16, %v1380_v15  ;;  %v4752_v15 = vld [vmem:[%s4482_s17 + $0x60] sm:$0xff]  }
  0x7c   : > { %776 = vrot.lane.b32.xlu0 %v4315_v57, %s4442_s29  ;;  %v1133_v57 = vor.u32 %v1132_v48, %v1131_v43  ;;  %v1387_v35 = vsel %vm5986_vm0, %v1382_v25, %v1386_v26  ;;  %v4403_v48 = vld [vmem:[%s4482_s17 + $0xc] sm:$0xff]   ;;  %v1432_v25 = vshll.u32 %v4752_v15, 16 }
  0x7e   : > { %1002 = vrot.lane.b32.xlu1 %v1001_v11, %s4443_s30  ;;  %v1138_v3 = vsel %vm5986_vm0, %v1133_v57, %v1137_v55  ;;  %v1371_v11 = vor.u32 %v1370_v63, %v1366_v60  ;;  %v1403_v55 = vor.u32 %v1402_v41, %v1398_v40  ;;  %v1413_v60 = vrot.slane %v1400_v33, 2 }
  0x80   : > { %785 = vrot.lane.b32.xlu0 %v784_v2, %s4443_s30  ;;  %v1163_v2 = vrot.slane %v1149_v9, 1 }
  0x82   : > { %1005 = vrot.lane.b32.xlu1 %v1004_v8, %s4444_s4  ;;  %v1165_v30 = vor.u32 %v1164_v21, %v1163_v2 }
  0x84   : > { %v4670_v32 = vpop.permute.xlu1 %232  ;;  %788 = vrot.lane.b32.xlu0 %v787_v18, %s4444_s4  ;;  %v1154_v18 = vor.u32 %v1153_v10, %v1149_v9  ;;  %v1195_v9 = vrot.slane %v1181_v51, 1 }
  0x86   : > { %1018 = vrot.lane.b32.xlu1 %v1017_v31, %s4445_s5  ;;  %v4676_v39 = vpop.permute.xlu0 %211  ;;  %v1169_v31 = vrot.slane %v1167_v22, 2  ;;  %v4762_v22 = vld [vmem:[%s4482_s17 + $0x54] sm:$0xff]  }
  0x87   : > { %v1213_v41 = vshrl.u32 %v4762_v22, 16 }
  0x88   : > { %v4678_v42 = vpop.permute.xlu1 %264  ;;  %801 = vrot.lane.b32.xlu0 %v800_v36, %s4445_s5  ;;  %v1170_v38 = vsel %vm5986_vm0, %v1165_v30, %v1169_v31  ;;  %v1215_v30 = vshll.u32 %v4762_v22, 16 }
  0x8a   : > { %1340 = vrot.lane.b32.xlu1 %v1339_v37, %s4434_s21  ;;  %v4683_v50 = vpop.permute.xlu0 %208  ;;  %v1183_v37 = vshll.u32 %v4713_v29, 16 }
  0x8c   : > { %v4686_v54 = vpop.permute.xlu1 %244  ;;  %1123 = vrot.lane.b32.xlu0 %v1122_v47, %s4434_s21  ;;  %v1185_v52 = vrot.slane %v1183_v37, 1  ;;  %v1196_v10 = vrot.slane %v1183_v37, 2 }
  0x8e   : > { %1343 = vrot.lane.b32.xlu1 %v1342_v44, %s4432_s19  ;;  %v4690_v58 = vpop.permute.xlu0 %241  ;;  %v4329_v44 = vld [vmem:[%s4482_s17 + $0x5c] ss:$0 sps:$4 sm:$0x11]   ;;  %v1197_v21 = vor.u32 %v1196_v10, %v1195_v9 }
  0x90   : > { %v473_v61 = vpop.permute.xlu1 %472  ;;  %1126 = vrot.lane.b32.xlu0 %v1125_v45, %s4432_s19  ;;  %v4402_v45 = vld [vmem:[%s4482_s17] sm:$0xff]  }
  0x91   : > { %v587_v49 = vsel %vm5978_vm2, %v4403_v48, %v473_v61  ;;  %v1416_v61 = vshll.u32 %v4329_v44, 16 }
  0x92   : > { %1356 = vrot.lane.b32.xlu1 %v1355_v59, %s4438_s25  ;;  %v4697_v4 = vpop.permute.xlu0 %273  ;;  %v1412_v59 = vrot.slane %v1398_v40, 1 }
  0x94   : > { %v4699_v6 = vpop.permute.xlu1 %225  ;;  %1139 = vrot.lane.b32.xlu0 %v1138_v3, %s4438_s25  ;;  %v1186_v3 = vor.u32 %v1185_v52, %v1181_v51  ;;  %v1414_v17 = vor.u32 %v1413_v60, %v1412_v59  ;;  %v4802_v59 = vld [vmem:[%s4482_s17 + $0x48] sm:$0xff]  }
  0x96   : > { %1363 = vrot.lane.b32.xlu1 %v4322_v46, %s4431_s18  ;;  %v4704_v13 = vpop.permute.xlu0 %257  ;;  %v325_v46 = vsel %vm5978_vm2, %v4402_v45, %v4683_v50  ;;  %v4791_v45 = vld [vmem:[%s4482_s17 + $0x54] sm:$0xff]  }
  0x97   : > { %v328_v50 = vsel %vm5979_vm3, %v325_v46, %v4676_v39 }
  0x98   : > { %v489_v8 = vpop.permute.xlu1 %488  ;;  %1146 = vrot.lane.b32.xlu0 %v4323_v53, %s4431_s18  ;;  %v331_v63 = vsel %vm329_vm4, %v328_v50, %v4699_v6 }
  0x99   : > { %v334_v6 = vsel %vm332_vm5, %v331_v63, %v4670_v32 }
  0x9a   : > { %1372 = vrot.lane.b32.xlu1 %v1371_v11, %s4436_s23  ;;  %v476_v24 = vpop.permute.xlu0 %475  ;;  %v1406_v11 = vrot.slane %v4709_v23, 1 }
  0x9b   : > { %v589_v53 = vsel %vm5979_vm3, %v587_v49, %v476_v24  ;;  %v1201_v24 = vrot.slane %v1199_v12, 2  ;;  %v1445_v49 = vrot.slane %v1432_v25, 2 }
  0x9c   : > { %v505_v27 = vpop.permute.xlu1 %504  ;;  %1155 = vrot.lane.b32.xlu0 %v1154_v18, %s4436_s23  ;;  %v591_v1 = vsel %vm329_vm4, %v589_v53, %v489_v8  ;;  %v1418_v8 = vrot.slane %v1416_v61, 2 }
  0x9d   : > { %v1202_v33 = vsel %vm5986_vm0, %v1197_v21, %v1201_v24  ;;  %v4340_v24 = vld [vmem:[%s4482_s17 + $0x5c] ss:$0 sps:$4 sm:$0x11]  }
  0x9e   : > { %1375 = vrot.lane.b32.xlu1 %v1374_v19, %s4435_s22  ;;  %v496_v34 = vpop.permute.xlu0 %495  ;;  %v1189_v19 = vrot.slane %v4713_v29, 1 }
  0x9f   : > { %v593_v39 = vsel %vm332_vm5, %v591_v1, %v496_v34  ;;  %v1430_v34 = vshrl.u32 %v4752_v15, 16 }
  0xa0   : > { %v4718_v36 = vpop.permute.xlu1 %520  ;;  %1158 = vrot.lane.b32.xlu0 %v1157_v28, %s4435_s22  ;;  %v595_v2 = vsel %vm335_vm6, %v593_v39, %v505_v27  ;;  %v1419_v27 = vsel %vm5986_vm0, %v1414_v17, %v1418_v8  ;;  %v1553_v8 = vshll.u32 %v4802_v59, 16 }
  0xa1   : > { %v1444_v48 = vrot.slane %v1430_v34, 1 }
  0xa2   : > { %1388 = vrot.lane.b32.xlu1 %v1387_v35, %s4439_s26  ;;  %v508_v43 = vpop.permute.xlu0 %507  ;;  %v1434_v35 = vrot.slane %v1432_v25, 1 }
  0xa3   : > { %v597_v32 = vsel %vm5977_vm7, %v595_v2, %v508_v43  ;;  %v1217_v43 = vrot.slane %v1215_v30, 1  ;;  %v1446_v10 = vor.u32 %v1445_v49, %v1444_v48 }
  0xa4   : > { %v4729_v47 = vpop.permute.xlu1 %536  ;;  %1171 = vrot.lane.b32.xlu0 %v1170_v38, %s4439_s26  ;;  %v1435_v44 = vor.u32 %v1434_v35, %v1430_v34  ;;  %v1786_v35 = vshll.u32 %v4340_v24, 16 }
  0xa5   : > { %v1218_v50 = vor.u32 %v1217_v43, %v1213_v41 }
  0xa6   : > { %1395 = vrot.lane.b32.xlu1 %v4709_v23, %s4433_s20  ;;  %v528_v57 = vpop.permute.xlu0 %527  ;;  %v337_v23 = vsel %vm335_vm6, %v334_v6, %v4690_v58  ;;  %v599_v58 = vsel %vm5976_vm8, %v597_v32, %v4718_v36 }
  0xa7   : > { %v601_v31 = vsel %vm344_vm9, %v599_v58, %v528_v57  ;;  %v1227_v57 = vrot.slane %v1213_v41, 1  ;;  %v4342_v41 = vld [vmem:[%s4482_s17 + $0x60] sm:$0xff]  }
  0xa8   : > { %v4743_v0 = vpop.permute.xlu1 %539  ;;  %1178 = vrot.lane.b32.xlu0 %v4713_v29, %s4433_s20  ;;  %v340_v29 = vsel %vm5977_vm7, %v337_v23, %v4686_v54  ;;  %v4336_v54 = vld [vmem:[%s4482_s17 + $0x68] ss:$0 sps:$4 sm:$0x11]   ;;  %v603_v40 = vsel %vm5989_vm10, %v601_v31, %v4729_v47  ;;  %vm5983_vm7 = vcmask 523264   ;;  %v1802_v49 = vshll.u32 %v4342_v41, 16 }
  0xa9   : > { %v343_v36 = vsel %vm5976_vm8, %v340_v29, %v4704_v13  ;;  %v4337_v13 = vld [vmem:[%s4482_s17 + $0x5c] ss:$0 sps:$4 sm:$0x11]   ;;  %v1448_v51 = vshll.u32 %v4336_v54, 16  ;;  %v605_v52 = vsel %vm5990_vm11, %v603_v40, %v4743_v0  ;;  %vm5984_vm8 = vcmask 490496  }
  0xaa   : > { %1404 = vrot.lane.b32.xlu1 %v1403_v55, %s4437_s24  ;;  %v4756_v16 = vpop.permute.xlu0 %276  ;;  %v346_v46 = vsel %vm344_vm9, %v343_v36, %v4678_v42  ;;  %v1438_v55 = vrot.slane %v4752_v15, 1  ;;  %v1228_v42 = vrot.slane %v1215_v30, 2  ;;  %v1231_v63 = vshll.u32 %v4337_v13, 16  ;;  %v4341_v30 = vld [vmem:[%s4482_s17 + $0x50] ss:$0 sps:$4 sm:$0x11]  }
  0xab   : > { %v349_v60 = vsel %vm5989_vm10, %v346_v46, %v4697_v4  ;;  %v1770_v0 = vshll.u32 %v4791_v45, 16  ;;  %v1450_v39 = vrot.slane %v1448_v51, 2  ;;  %v1776_v36 = vrot.slane %v4791_v45, 1 }
  0xac   : > { %v553_v18 = vpop.permute.xlu1 %552  ;;  %1187 = vrot.lane.b32.xlu0 %v1186_v3, %s4437_s24  ;;  %v352_v1 = vsel %vm5990_vm11, %v349_v60, %v4756_v16  ;;  %v1768_v16 = vshrl.u32 %v4791_v45, 16  ;;  %v1229_v2 = vor.u32 %v1228_v42, %v1227_v57  ;;  %v1569_v40 = vshll.u32 %v4341_v30, 16  ;;  %v4344_v42 = vld [vmem:[%s4482_s17 + $0x68] ss:$0 sps:$4 sm:$0x11]  }
  0xad   : > { %v607_v56 = vsel %vm353_vm12, %v605_v52, %v553_v18  ;;  %v1772_v21 = vrot.slane %v1770_v0, 1  ;;  %v1451_v32 = vsel %vm5986_vm0, %v1446_v10, %v1450_v39  ;;  %v1783_v34 = vrot.slane %v1770_v0, 2  ;;  %v4345_v0 = vld [vmem:[%s4482_s17 + $0x5c] ss:$0 sps:$4 sm:$0x11]  }
  0xae   : > { %1407 = vrot.lane.b32.xlu1 %v1406_v11, %s4440_s27  ;;  %v290_v26 = vpop.permute.xlu0 %289  ;;  %v1788_v13 = vrot.slane %v1786_v35, 2  ;;  %v1559_v45 = vrot.slane %v4802_v59, 1  ;;  %v1571_v48 = vrot.slane %v1569_v40, 2 }
  0xaf   : > { %v355_v11 = vsel %vm353_vm12, %v352_v1, %v290_v26  ;;  %v1773_v58 = vor.u32 %v1772_v21, %v1768_v16 }
  0xb0   : > { %v560_v28 = vpop.permute.xlu1 %559  ;;  %1190 = vrot.lane.b32.xlu0 %v1189_v19, %s4440_s27  ;;  %v1233_v19 = vrot.slane %v1231_v63, 2 }
  0xb1   : > { %v609_v61 = vsel %vm356_vm13, %v607_v56, %v560_v28  ;;  %v1555_v28 = vrot.slane %v1553_v8, 1  ;;  %v1800_v56 = vshrl.u32 %v4342_v41, 16 }
  0xb2   : > { %1420 = vrot.lane.b32.xlu1 %v1419_v27, %s4441_s28  ;;  %v297_v37 = vpop.permute.xlu0 %296  ;;  %v1551_v27 = vshrl.u32 %v4802_v59, 16  ;;  %v1234_v29 = vsel %vm5986_vm0, %v1229_v2, %v1233_v19  ;;  %v4347_v19 = vld [vmem:[%s4482_s17 + $0x60] sm:$0xff]  }
  0xb3   : > { %v358_v6 = vsel %vm356_vm13, %v355_v11, %v297_v37  ;;  %v1808_v11 = vrot.slane %v4342_v41, 1  ;;  %v1615_v35 = vshrl.u32 %v4347_v19, 16 }
  0xb4   : > { %v569_v38 = vpop.permute.xlu1 %568  ;;  %1203 = vrot.lane.b32.xlu0 %v1202_v33, %s4441_s28  ;;  %v1782_v33 = vrot.slane %v1768_v16, 1  ;;  %v1565_v54 = vrot.slane %v1551_v27, 1 }
  0xb5   : > { %v611_v3 = vsel %vm5988_vm14, %v609_v61, %v569_v38  ;;  %v1566_v38 = vrot.slane %v1553_v8, 2 }
  0xb6   : > { %1427 = vrot.lane.b32.xlu1 %v4752_v15, %s4442_s29  ;;  %v306_v47 = vpop.permute.xlu0 %305  ;;  %v1221_v15 = vrot.slane %v4762_v22, 1 }
  0xb7   : > { %v361_v18 = vsel %vm5988_vm14, %v358_v6, %v306_v47  ;;  %v4343_v47 = vld [vmem:[%s4482_s17 + $0x54] sm:$0xff]   ;;  %v4346_v6 = vld [vmem:[%s4482_s17 + $0x6c] sm:$0xff]  }
  0xb8   : > { %v572_v53 = vpop.permute.xlu1 %571  ;;  %1210 = vrot.lane.b32.xlu0 %v4762_v22, %s4442_s29  ;;  %v1583_v60 = vshrl.u32 %v4343_v47, 16  ;;  %v1591_v2 = vrot.slane %v4343_v47, 1 }
  0xb9   : > { %v613_v12 = vsel %vm5985_vm15, %v611_v3, %v572_v53  ;;  %v1814_v3 = vrot.slane %v1800_v56, 1 }
  0xba   : > { %1436 = vrot.lane.b32.xlu1 %v1435_v44, %s4443_s30  ;;  %v309_v9 = vpop.permute.xlu0 %308  ;;  %v1784_v44 = vor.u32 %v1783_v34, %v1782_v33  ;;  %v4348_v33 = vld [vmem:[%s4482_s17 + $0x74] ss:$0 sps:$4 sm:$0x11]  }
  0xbb   : > { %v364_v22 = vsel %vm5985_vm15, %v361_v18, %v309_v9  ;;  %v1818_v9 = vshll.u32 %v4344_v42, 16  ;;  %v4927_v42 = vld [vmem:[%s4482_s17 + $0x6c] sm:$0xff]  }
  0xbc   : > { %v585_v4 = vpop.permute.xlu1 %584  ;;  %1219 = vrot.lane.b32.xlu0 %v1218_v50, %s4443_s30  ;;  %v1789_v52 = vsel %vm5986_vm0, %v1784_v44, %v1788_v13  ;;  %v1804_v50 = vrot.slane %v1802_v49, 1  ;;  %v1850_v44 = vshll.u32 %v4348_v33, 16  ;;  %v4973_v33 = vld [vmem:[%s4482_s17 + $0x6c] sm:$0xff]  }
  0xbd   : > { %v615_v17 = vsel %vm5984_vm8, %v613_v12, %v585_v4  ;;  %v1597_v12 = vrot.slane %v1583_v60, 1  ;;  %v1820_v8 = vrot.slane %v1818_v9, 2 }
  0xbe   : > { %1439 = vrot.lane.b32.xlu1 %v1438_v55, %s4444_s4  ;;  %4112 = vmatmul.mubr.msk.bf16.vlgmr.msra.gmra.mrb[0].mxu1 %vm5983_vm7, %v615_v17  ;;  %v322_v23 = vpop.permute.xlu0 %321  ;;  %v1585_v55 = vshll.u32 %v4343_v47, 16  ;;  %v1805_v63 = vor.u32 %v1804_v50, %v1800_v56  ;;  %v1852_v56 = vrot.slane %v1850_v44, 2 }
  0xbf   : > { %4128 = vmatpush3.bf16.msra.mxu1 %v4574_v62  ;;  %4135 = vmatprep.mubr.msk.bf16.mxu1 %vm5981_vm1, %v4446_v5  ;;  %v367_v25 = vsel %vm5984_vm8, %v364_v22, %v322_v23  ;;  %v1834_v23 = vshll.u32 %v4346_v6, 16 }
  0xc0   : > { %v4830_v26 = vpop.permute.xlu1 %906  ;;  %4129 = vmatprep.subr.bf16.mxu1 %v4446_v5  ;;  %1222 = vrot.lane.b32.xlu0 %v1221_v15, %s4444_s4  ;;  %v1587_v61 = vrot.slane %v1585_v55, 1  ;;  %v1598_v4 = vrot.slane %v1585_v55, 2  ;;  %v1601_v15 = vshll.u32 %v4345_v0, 16 }
  0xc1   : > { %4100 = vmatmul.mubr.msk.bf16.vlgmr.msra.gmra.mrb[0].mxu0 %vm5983_vm7, %v367_v25 }
  0xc2   : > { %1452 = vrot.lane.b32.xlu1 %v1451_v32, %s4445_s5  ;;  %4116 = vmatpush3.bf16.msra.mxu0 %v4574_v62  ;;  %v4840_v31 = vpop.permute.xlu0 %689  ;;  %v1556_v62 = vor.u32 %v1555_v28, %v1551_v27  ;;  %v1588_v39 = vor.u32 %v1587_v61, %v1583_v60  ;;  %v1599_v21 = vor.u32 %v1598_v4, %v1597_v12  ;;  %v1603_v22 = vrot.slane %v1601_v15, 2  ;;  %v4404_v60 = vld [vmem:[%s4482_s17 + $0x24] sm:$0xff]  }
  0xc3   : > { %4130 = vmatpush3.bf16.msra.mxu1 %v4589_v7  ;;  %4117 = vmatprep.subr.bf16.mxu0 %v4446_v5  ;;  %v1617_v27 = vshll.u32 %v4347_v19, 16  ;;  %v1021_v61 = vsel %vm5978_vm2, %v4404_v60, %v4830_v26  ;;  %v1649_v4 = vshll.u32 %v4927_v42, 16 }
  0xc4   : > { %v4844_v37 = vpop.permute.xlu1 %909  ;;  %4131 = vmatprep.subr.bf16.mxu1 %v4446_v5  ;;  %4123 = vmatprep.mubr.msk.bf16.mxu0 %vm5981_vm1, %v4446_v5  ;;  %v1604_v28 = vsel %vm5986_vm0, %v1599_v21, %v1603_v22  ;;  %v4352_v22 = vld [vmem:[%s4482_s17 + $0x80] ss:$0 sps:$4 sm:$0x11]  }
  0xc5   : > { %1235 = vrot.lane.b32.xlu0 %v1234_v29, %s4445_s5  ;;  %v1832_v29 = vshrl.u32 %v4346_v6, 16 }
  0xc6   : > { %1774 = vrot.lane.b32.xlu1 %v1773_v58, %s4434_s21  ;;  %4118 = vmatpush3.bf16.msra.mxu0 %v4589_v7  ;;  %v4854_v43 = vpop.permute.xlu0 %692  ;;  %v1567_v7 = vor.u32 %v1566_v38, %v1565_v54  ;;  %v1836_v58 = vrot.slane %v1834_v23, 1  ;;  %v4349_v54 = vld [vmem:[%s4482_s17 + $0x68] ss:$0 sps:$4 sm:$0x11]  }
  0xc7   : > { %4132 = vmatpush3.bf16.msra.mxu1 %v4604_v14  ;;  %4119 = vmatprep.subr.bf16.mxu0 %v4446_v5  ;;  %v1846_v40 = vrot.slane %v1832_v29, 1 }
  0xc8   : > { %v4858_v46 = vpop.permute.xlu1 %922  ;;  %4133 = vmatprep.subr.bf16.mxu1 %v4446_v5 }
  0xc9   : > { %1557 = vrot.lane.b32.xlu0 %v1556_v62, %s4434_s21  ;;  %v1619_v62 = vrot.slane %v1617_v27, 1 }
  0xca   : > { %1777 = vrot.lane.b32.xlu1 %v1776_v36, %s4432_s19  ;;  %4120 = vmatpush3.bf16.msra.mxu0 %v4604_v14  ;;  %v4866_v51 = vpop.permute.xlu0 %705  ;;  %v1572_v14 = vsel %vm5986_vm0, %v1567_v7, %v1571_v48  ;;  %v1837_v36 = vor.u32 %v1836_v58, %v1832_v29  ;;  %v1630_v7 = vrot.slane %v1617_v27, 2  ;;  %v1633_v48 = vshll.u32 %v4349_v54, 16  ;;  %v4353_v58 = vld [vmem:[%s4482_s17 + $0x74] ss:$0 sps:$4 sm:$0x11]  }
  0xcb   : > { %4134 = vmatpush3.bf16.msra.mxu1 %v4620_v20  ;;  %4121 = vmatprep.subr.bf16.mxu0 %v4446_v5  ;;  %v1651_v27 = vrot.slane %v1649_v4, 1 }
  0xcc   : > { %v4871_v53 = vpop.permute.xlu1 %929  ;;  %4151 = vmatprep.subr.bf16.mxu1 %v4446_v5 }
  0xcd   : > { %1560 = vrot.lane.b32.xlu0 %v1559_v45, %s4432_s19  ;;  %v1620_v45 = vor.u32 %v1619_v62, %v1615_v35  ;;  %v1882_v62 = vshll.u32 %v4352_v22, 16 }
  0xce   : > { %1790 = vrot.lane.b32.xlu1 %v1789_v52, %s4438_s25  ;;  %4122 = vmatpush3.bf16.msra.mxu0 %v4620_v20  ;;  %v4878_v57 = vpop.permute.xlu0 %712  ;;  %v1815_v20 = vrot.slane %v1802_v49, 2  ;;  %v1840_v49 = vrot.slane %v4346_v6, 1  ;;  %v4922_v52 = vld [vmem:[%s4482_s17 + $0x78] sm:$0xff]  }
  0xcf   : > { %4139 = vmatprep.subr.bf16.mxu0 %v4446_v5 }
  0xd0   : > { %v4882_v59 = vpop.permute.xlu1 %938  ;;  %v1816_v16 = vor.u32 %v1815_v20, %v1814_v3  ;;  %v1635_v3 = vrot.slane %v1633_v48, 2  ;;  %v1866_v20 = vshll.u32 %v4922_v52, 16  ;;  %v2204_v48 = vshll.u32 %v4973_v33, 16 }
  0xd1   : > { %1573 = vrot.lane.b32.xlu0 %v1572_v14, %s4438_s25 }
  0xd2   : > { %1797 = vrot.lane.b32.xlu1 %v4342_v41, %s4431_s18  ;;  %v4887_v1 = vpop.permute.xlu0 %721  ;;  %v1821_v24 = vsel %vm5986_vm0, %v1816_v16, %v1820_v8  ;;  %v1847_v41 = vrot.slane %v1834_v23, 2 }
  0xd4   : > { %v4889_v10 = vpop.permute.xlu1 %941  ;;  %v1848_v14 = vor.u32 %v1847_v41, %v1846_v40  ;;  %v1872_v41 = vrot.slane %v4922_v52, 1 }
  0xd5   : > { %1580 = vrot.lane.b32.xlu0 %v4343_v47, %s4431_s18  ;;  %v1629_v47 = vrot.slane %v1615_v35, 1 }
  0xd6   : > { %1806 = vrot.lane.b32.xlu1 %v1805_v63, %s4436_s23  ;;  %v4894_v17 = vpop.permute.xlu0 %724  ;;  %v1623_v63 = vrot.slane %v4347_v19, 1 }
  0xd7   : > { %v1631_v0 = vor.u32 %v1630_v7, %v1629_v47  ;;  %v4989_v47 = vld [vmem:[%s4482_s17 + $0x60] sm:$0xff]   ;;  %v1665_v7 = vshll.u32 %v4353_v58, 16 }
  0xd8   : > { %v4896_v18 = vpop.permute.xlu1 %954 }
  0xd9   : > { %1589 = vrot.lane.b32.xlu0 %v1588_v39, %s4436_s23  ;;  %v1853_v39 = vsel %vm5986_vm0, %v1848_v14, %v1852_v56  ;;  %v1636_v15 = vsel %vm5986_vm0, %v1631_v0, %v1635_v3  ;;  %v1884_v56 = vrot.slane %v1882_v62, 2  ;;  %v1987_v3 = vshll.u32 %v4989_v47, 16 }
  0xda   : > { %1809 = vrot.lane.b32.xlu1 %v1808_v11, %s4435_s22  ;;  %v4901_v32 = vpop.permute.xlu0 %737  ;;  %v1023_v11 = vsel %vm5979_vm3, %v1021_v61, %v4844_v37  ;;  %v1864_v37 = vshrl.u32 %v4922_v52, 16  ;;  %v1655_v61 = vrot.slane %v4927_v42, 1 }
  0xdb   : > { %v1025_v26 = vsel %vm329_vm4, %v1023_v11, %v4858_v46  ;;  %v2206_v11 = vrot.slane %v2204_v48, 1 }
  0xdc   : > { %v4904_v25 = vpop.permute.xlu1 %961  ;;  %v1027_v8 = vsel %vm332_vm5, %v1025_v26, %v4871_v53  ;;  %v1878_v29 = vrot.slane %v1864_v37, 1  ;;  %v4356_v26 = vld [vmem:[%s4482_s17 + $0x74] ss:$0 sps:$4 sm:$0x11]  }
  0xdd   : > { %1592 = vrot.lane.b32.xlu0 %v1591_v2, %s4435_s22  ;;  %v1868_v2 = vrot.slane %v1866_v20, 1  ;;  %v1029_v46 = vsel %vm335_vm6, %v1027_v8, %v4882_v59  ;;  %v1985_v8 = vshrl.u32 %v4989_v47, 16 }
  0xde   : > { %1822 = vrot.lane.b32.xlu1 %v1821_v24, %s4439_s26  ;;  %v4909_v30 = vpop.permute.xlu0 %744  ;;  %v1647_v24 = vshrl.u32 %v4927_v42, 16 }
  0xe0   : > { %v4912_v34 = vpop.permute.xlu1 %970  ;;  %v1652_v40 = vor.u32 %v1651_v27, %v1647_v24 }
  0xe1   : > { %1605 = vrot.lane.b32.xlu0 %v1604_v28, %s4439_s26 }
  0xe2   : > { %1829 = vrot.lane.b32.xlu1 %v4346_v6, %s4433_s20  ;;  %v4917_v38 = vpop.permute.xlu0 %753  ;;  %v4405_v6 = vld [vmem:[%s4482_s17 + $0x18] sm:$0xff]  }
  0xe3   : > { %v804_v16 = vsel %vm5978_vm2, %v4405_v6, %v4840_v31  ;;  %vm5991_vm2 = vcmask 195584  }
  0xe4   : > { %v974_v13 = vpop.permute.xlu1 %973  ;;  %v1031_v53 = vsel %vm5991_vm2, %v1029_v46, %v4889_v10  ;;  %v1869_v10 = vor.u32 %v1868_v2, %v1864_v37  ;;  %v1989_v37 = vrot.slane %v1987_v3, 1  ;;  %v4357_v46 = vld [vmem:[%s4482_s17 + $0x68] ss:$0 sps:$4 sm:$0x11]  }
  0xe5   : > { %1612 = vrot.lane.b32.xlu0 %v4347_v19, %s4433_s20  ;;  %v806_v19 = vsel %vm5979_vm3, %v804_v16, %v4854_v43  ;;  %vm5992_vm3 = vcmask 228352  }
  0xe6   : > { %1838 = vrot.lane.b32.xlu1 %v1837_v36, %s4437_s24  ;;  %v4924_v55 = vpop.permute.xlu0 %756  ;;  %v808_v31 = vsel %vm329_vm4, %v806_v19, %v4866_v51  ;;  %v1033_v59 = vsel %vm5992_vm3, %v1031_v53, %v4896_v18  ;;  %v2220_v53 = vshll.u32 %v4356_v26, 16  ;;  %v1990_v27 = vor.u32 %v1989_v37, %v1985_v8 }
  0xe7   : > { %v810_v43 = vsel %vm332_vm5, %v808_v31, %v4878_v57  ;;  %v1035_v51 = vsel %vm344_vm9, %v1033_v59, %v4904_v25  ;;  %v2217_v31 = vrot.slane %v2204_v48, 2  ;;  %v1999_v59 = vrot.slane %v1985_v8, 1 }
  0xe8   : > { %v987_v50 = vpop.permute.xlu1 %986  ;;  %v812_v28 = vsel %vm335_vm6, %v810_v43, %v4887_v1  ;;  %v1037_v18 = vsel %vm5989_vm10, %v1035_v51, %v4912_v34  ;;  %v1879_v1 = vrot.slane %v1866_v20, 2  ;;  %v1661_v34 = vrot.slane %v1647_v24, 1 }
  0xe9   : > { %1621 = vrot.lane.b32.xlu0 %v1620_v45, %s4437_s24  ;;  %v814_v57 = vsel %vm5991_vm2, %v812_v28, %v4894_v17  ;;  %v1039_v54 = vsel %vm5990_vm11, %v1037_v18, %v974_v13  ;;  %v1662_v45 = vrot.slane %v1649_v4, 2  ;;  %v2210_v43 = vrot.slane %v4973_v33, 1  ;;  %v5056_v18 = vld [vmem:[%s5973_s1 + $0x10] sm:$0xff]  }
  0xea   : > { %1841 = vrot.lane.b32.xlu1 %v1840_v49, %s4440_s27  ;;  %v770_v9 = vpop.permute.xlu0 %769  ;;  %v816_v25 = vsel %vm5992_vm3, %v814_v57, %v4901_v32  ;;  %v1041_v17 = vsel %vm353_vm12, %v1039_v54, %v987_v50  ;;  %v1880_v14 = vor.u32 %v1879_v1, %v1878_v29  ;;  %v2000_v28 = vrot.slane %v1987_v3, 2  ;;  %v4359_v1 = vld [vmem:[%s4482_s17 + $0x6c] sm:$0xff]  }
  0xeb   : > { %v818_v44 = vsel %vm344_vm9, %v816_v25, %v4909_v30  ;;  %v2003_v51 = vshll.u32 %v4357_v46, 16  ;;  %v2222_v57 = vrot.slane %v2220_v53, 2  ;;  %v2017_v48 = vshrl.u32 %v4359_v1, 16 }
  0xec   : > { %v994_v12 = vpop.permute.xlu1 %993  ;;  %v820_v32 = vsel %vm5989_vm10, %v818_v44, %v4917_v38  ;;  %v1885_v4 = vsel %vm5986_vm0, %v1880_v14, %v1884_v56  ;;  %v2001_v62 = vor.u32 %v2000_v28, %v1999_v59  ;;  %vm5993_vm2 = vcmask 31744  }
  0xed   : > { %1624 = vrot.lane.b32.xlu0 %v1623_v63, %s4440_s27  ;;  %v1043_v13 = vsel %vm356_vm13, %v1041_v17, %v994_v12  ;;  %v822_v30 = vsel %vm5990_vm11, %v820_v32, %v4924_v55  ;;  %v1663_v55 = vor.u32 %v1662_v45, %v1661_v34  ;;  %v2005_v25 = vrot.slane %v2003_v51, 2 }
  0xee   : > { %1854 = vrot.lane.b32.xlu1 %v1853_v39, %s4441_s28  ;;  %v777_v21 = vpop.permute.xlu0 %776  ;;  %v824_v50 = vsel %vm353_vm12, %v822_v30, %v770_v9  ;;  %v1667_v9 = vrot.slane %v1665_v7, 2  ;;  %v2202_v39 = vshrl.u32 %v4973_v33, 16  ;;  %v2019_v17 = vshll.u32 %v4359_v1, 16 }
  0xef   : > { %v826_v63 = vsel %vm356_vm13, %v824_v50, %v777_v21  ;;  %v2006_v34 = vsel %vm5986_vm0, %v2001_v62, %v2005_v25  ;;  %vm5994_vm3 = vcmask 64512  }
  0xf0   : > { %v1003_v23 = vpop.permute.xlu1 %1002  ;;  %v1668_v2 = vsel %vm5986_vm0, %v1663_v55, %v1667_v9  ;;  %v2207_v19 = vor.u32 %v2206_v11, %v2202_v39  ;;  %v2216_v22 = vrot.slane %v2202_v39, 1  ;;  %v2021_v30 = vrot.slane %v2019_v17, 1 }
  0xf1   : > { %1637 = vrot.lane.b32.xlu0 %v1636_v15, %s4441_s28  ;;  %v1045_v49 = vsel %vm5988_vm14, %v1043_v13, %v1003_v23  ;;  %v5016_v15 = vld [vmem:[%s5973_s1] sm:$0xff]   ;;  %v5037_v23 = vld [vmem:[%s5973_s1 + $0x8] sm:$0xff]   ;;  %v2032_v55 = vrot.slane %v2019_v17, 2 }
  0xf2   : > { %1861 = vrot.lane.b32.xlu1 %v4922_v52, %s4442_s29  ;;  %v786_v35 = vpop.permute.xlu0 %785  ;;  %v2218_v58 = vor.u32 %v2217_v31, %v2216_v22  ;;  %v4360_v13 = vld [vmem:[%s4482_s17 + $0x80] ss:$0 sps:$4 sm:$0x11]  }
  0xf3   : > { %v828_v20 = vsel %vm5988_vm14, %v826_v63, %v786_v35  ;;  %v1993_v35 = vrot.slane %v4989_v47, 1 }
  0xf4   : > { %v1006_v36 = vpop.permute.xlu1 %1005 }
  0xf5   : > { %1644 = vrot.lane.b32.xlu0 %v4927_v42, %s4442_s29  ;;  %v1047_v60 = vsel %vm5985_vm15, %v1045_v49, %v1006_v36 }
  0xf6   : > { %1870 = vrot.lane.b32.xlu1 %v1869_v10, %s4443_s30  ;;  %v789_v52 = vpop.permute.xlu0 %788  ;;  %v4358_v10 = vld [vmem:[%s4482_s17 + $0x78] sm:$0xff]  }
  0xf7   : > { %v830_v42 = vsel %vm5985_vm15, %v828_v20, %v789_v52  ;;  %v2236_v54 = vshll.u32 %v4358_v10, 16  ;;  %v2234_v45 = vshrl.u32 %v4358_v10, 16  ;;  %v4361_v52 = vld [vmem:[%s4482_s17 + $0x74] ss:$0 sps:$4 sm:$0x11]   ;;  %v2242_v63 = vrot.slane %v4358_v10, 1 }
  0xf8   : > { %v1019_v38 = vpop.permute.xlu1 %1018  ;;  %v2035_v3 = vshll.u32 %v4361_v52, 16  ;;  %v4362_v20 = vld [vmem:[%s4482_s17 + $0x84] sm:$0xff]  }
  0xf9   : > { %v1049_v0 = vsel %vm5984_vm8, %v1047_v60, %v1019_v38  ;;  %1653 = vrot.lane.b32.xlu0 %v1652_v40, %s4443_s30  ;;  %v2223_v40 = vsel %vm5986_vm0, %v2218_v58, %v2222_v57  ;;  %v2238_v47 = vrot.slane %v2236_v54, 1  ;;  %v2248_v56 = vrot.slane %v2234_v45, 1  ;;  %v5134_v52 = vld [vmem:[%s4482_s17 + $0x84] sm:$0xff]  }
  0xfa   : > { %1873 = vrot.lane.b32.xlu1 %v1872_v41, %s4444_s4  ;;  %4136 = vmatmul.mubr.msk.bf16.vlgmr.msra.gmra.mrb[4].mxu1 %vm5983_vm7, %v1049_v0  ;;  %v802_v12 = vpop.permute.xlu0 %801  ;;  %v5074_v41 = vld [vmem:[%s5973_s1 + $0x18] sm:$0xff]   ;;  %v2249_v50 = vrot.slane %v2236_v54, 2  ;;  %v2252_v60 = vshll.u32 %v4360_v13, 16  ;;  %v2031_v0 = vrot.slane %v2017_v48, 1  ;;  %v2268_v8 = vshll.u32 %v4362_v20, 16 }
  0xfb   : > { %4152 = vmatpush3.bf16.msra.mxu1 %v5016_v15  ;;  %4159 = vmatprep.mubr.msk.bf16.mxu1 %vm5981_vm1, %v4446_v5  ;;  %v832_v6 = vsel %vm5984_vm8, %v830_v42, %v802_v12  ;;  %v2239_v49 = vor.u32 %v2238_v47, %v2234_v45  ;;  %v2025_v12 = vrot.slane %v4359_v1, 1  ;;  %v2266_v31 = vshrl.u32 %v4362_v20, 16  ;;  %v5129_v47 = vld [vmem:[%s4482_s17 + $0x90] sm:$0xff]  }
  0xfc   : > { %v5022_v16 = vpop.permute.xlu1 %1340  ;;  %4153 = vmatprep.subr.bf16.mxu1 %v4446_v5  ;;  %4124 = vmatmul.mubr.msk.bf16.vlgmr.msra.gmra.mrb[4].mxu0 %vm5983_vm7, %v832_v6  ;;  %v2250_v39 = vor.u32 %v2249_v50, %v2248_v56  ;;  %v2254_v11 = vrot.slane %v2252_v60, 2  ;;  %v2033_v26 = vor.u32 %v2032_v55, %v2031_v0  ;;  %v2037_v6 = vrot.slane %v2035_v3, 2  ;;  %v4410_v56 = vld [vmem:[%s4482_s17 + $0x3c] sm:$0xff]  }
  0xfd   : > { %1656 = vrot.lane.b32.xlu0 %v1655_v61, %s4444_s4  ;;  %4140 = vmatpush3.bf16.msra.mxu0 %v5016_v15  ;;  %v2022_v61 = vor.u32 %v2021_v30, %v2017_v48  ;;  %v2270_v53 = vrot.slane %v2268_v8, 1  ;;  %v2274_v45 = vrot.slane %v4362_v20, 1  ;;  %v1455_v50 = vsel %vm5993_vm2, %v4410_v56, %v5022_v16 }
  0xfe   : > { %1886 = vrot.lane.b32.xlu1 %v1885_v4, %s4445_s5  ;;  %v5032_v21 = vpop.permute.xlu0 %1123  ;;  %4141 = vmatprep.subr.bf16.mxu0 %v4446_v5  ;;  %v4363_v4 = vld [vmem:[%s4482_s17 + $0x78] sm:$0xff]   ;;  %v2038_v22 = vsel %vm5986_vm0, %v2033_v26, %v2037_v6  ;;  %v2300_v0 = vshll.u32 %v5129_v47, 16 }
  0xff   : > { %4154 = vmatpush3.bf16.msra.mxu1 %v5037_v23  ;;  %4147 = vmatprep.mubr.msk.bf16.mxu0 %vm5981_vm1, %v4446_v5  ;;  %v2051_v46 = vshll.u32 %v4363_v4, 16  ;;  %v2049_v28 = vshrl.u32 %v4363_v4, 16  ;;  %v2271_v58 = vor.u32 %v2270_v53, %v2266_v31  ;;  %v2057_v60 = vrot.slane %v4363_v4, 1 }
 0x100   : > { %v5041_v24 = vpop.permute.xlu1 %1343  ;;  %4155 = vmatprep.subr.bf16.mxu1 %v4446_v5  ;;  %v2081_v53 = vshrl.u32 %v5134_v52, 16 }
 0x101   : > { %1669 = vrot.lane.b32.xlu0 %v1668_v2, %s4445_s5  ;;  %4142 = vmatpush3.bf16.msra.mxu0 %v5037_v23  ;;  %v2255_v2 = vsel %vm5986_vm0, %v2250_v39, %v2254_v11  ;;  %v2053_v51 = vrot.slane %v2051_v46, 1  ;;  %v2064_v17 = vrot.slane %v2051_v46, 2  ;;  %v2083_v11 = vshll.u32 %v5134_v52, 16 }
 0x102   : > { %2208 = vrot.lane.b32.xlu1 %v2207_v19, %s4434_s21  ;;  %v5051_v29 = vpop.permute.xlu0 %1126  ;;  %4143 = vmatprep.subr.bf16.mxu0 %v4446_v5 }
 0x103   : > { %4156 = vmatpush3.bf16.msra.mxu1 %v5056_v18  ;;  %v2054_v54 = vor.u32 %v2053_v51, %v2049_v28 }
 0x104   : > { %v5060_v33 = vpop.permute.xlu1 %1356  ;;  %4157 = vmatprep.subr.bf16.mxu1 %v4446_v5 }
 0x105   : > { %1991 = vrot.lane.b32.xlu0 %v1990_v27, %s4434_s21  ;;  %4144 = vmatpush3.bf16.msra.mxu0 %v5056_v18 }
 0x106   : > { %2211 = vrot.lane.b32.xlu1 %v2210_v43, %s4432_s19  ;;  %v5068_v36 = vpop.permute.xlu0 %1139  ;;  %4145 = vmatprep.subr.bf16.mxu0 %v4446_v5  ;;  %v4364_v43 = vld [vmem:[%s4482_s17 + $0x8c] ss:$0 sps:$4 sm:$0x11]  }
 0x107   : > { %4158 = vmatpush3.bf16.msra.mxu1 %v5074_v41  ;;  %v2284_v62 = vshll.u32 %v4364_v43, 16  ;;  %v2085_v43 = vrot.slane %v2083_v11, 1 }
 0x108   : > { %v5078_v44 = vpop.permute.xlu1 %1363  ;;  %4175 = vmatprep.subr.bf16.mxu1 %v4446_v5 }
 0x109   : > { %1994 = vrot.lane.b32.xlu0 %v1993_v35, %s4432_s19  ;;  %4146 = vmatpush3.bf16.msra.mxu0 %v5074_v41  ;;  %v2280_v35 = vrot.slane %v2266_v31, 1  ;;  %v2286_v30 = vrot.slane %v2284_v62, 2 }
 0x10a   : > { %2224 = vrot.lane.b32.xlu1 %v2223_v40, %s4438_s25  ;;  %v5085_v32 = vpop.permute.xlu0 %1146  ;;  %4163 = vmatprep.subr.bf16.mxu0 %v4446_v5  ;;  %v2063_v40 = vrot.slane %v2049_v28, 1 }
 0x10c   : > { %v5089_v7 = vpop.permute.xlu1 %1372 }
 0x10d   : > { %2007 = vrot.lane.b32.xlu0 %v2006_v34, %s4438_s25 }
 0x10e   : > { %2231 = vrot.lane.b32.xlu1 %v4358_v10, %s4431_s18  ;;  %v5094_v14 = vpop.permute.xlu0 %1155  ;;  %v4365_v10 = vld [vmem:[%s4482_s17 + $0x80] ss:$0 sps:$4 sm:$0x11]  }
 0x10f   : > { %v2067_v34 = vshll.u32 %v4365_v10, 16  ;;  %v4369_v10 = vld [vmem:[%s4482_s17 + $0x8c] ss:$0 sps:$4 sm:$0x11]  }
 0x110   : > { %v5096_v38 = vpop.permute.xlu1 %1375 }
 0x111   : > { %2014 = vrot.lane.b32.xlu0 %v4359_v1, %s4431_s18  ;;  %v2281_v1 = vrot.slane %v2268_v8, 2  ;;  %v2302_v8 = vrot.slane %v2300_v0, 1 }
 0x112   : > { %2240 = vrot.lane.b32.xlu1 %v2239_v49, %s4436_s23  ;;  %v5101_v9 = vpop.permute.xlu0 %1158 }
 0x113   : > { %v2282_v48 = vor.u32 %v2281_v1, %v2280_v35 }
 0x114   : > { %v5103_v42 = vpop.permute.xlu1 %1388 }
 0x115   : > { %2023 = vrot.lane.b32.xlu0 %v2022_v61, %s4436_s23  ;;  %v2065_v61 = vor.u32 %v2064_v17, %v2063_v40  ;;  %v2287_v3 = vsel %vm5986_vm0, %v2282_v48, %v2286_v30  ;;  %v2086_v40 = vor.u32 %v2085_v43, %v2081_v53  ;;  %v2306_v17 = vrot.slane %v5129_v47, 1  ;;  %v5196_v48 = vld [vmem:[%s4482_s17 + $0x78] sm:$0xff]  }
 0x116   : > { %2243 = vrot.lane.b32.xlu1 %v2242_v63, %s4435_s22  ;;  %v5108_v37 = vpop.permute.xlu0 %1171  ;;  %v2069_v63 = vrot.slane %v2067_v34, 2 }
 0x118   : > { %v5111_v19 = vpop.permute.xlu1 %1395 }
 0x119   : > { %2026 = vrot.lane.b32.xlu0 %v2025_v12, %s4435_s22  ;;  %v2070_v12 = vsel %vm5986_vm0, %v2065_v61, %v2069_v63 }
 0x11a   : > { %2256 = vrot.lane.b32.xlu1 %v2255_v2, %s4439_s26  ;;  %v5116_v27 = vpop.permute.xlu0 %1178 }
 0x11c   : > { %v5119_v59 = vpop.permute.xlu1 %1404 }
 0x11d   : > { %2039 = vrot.lane.b32.xlu0 %v2038_v22, %s4439_s26  ;;  %v4368_v22 = vld [vmem:[%s4482_s17 + $0x98] ss:$0 sps:$4 sm:$0x11]  }
 0x11e   : > { %2263 = vrot.lane.b32.xlu1 %v4362_v20, %s4433_s20  ;;  %v5124_v57 = vpop.permute.xlu0 %1187  ;;  %v1457_v20 = vsel %vm5994_vm3, %v1455_v50, %v5041_v24  ;;  %v2298_v24 = vshrl.u32 %v5129_v47, 16  ;;  %v2316_v1 = vshll.u32 %v4368_v22, 16 }
 0x11f   : > { %v1459_v16 = vsel %vm329_vm4, %v1457_v20, %v5060_v33 }
 0x120   : > { %v1408_v25 = vpop.permute.xlu1 %1407  ;;  %v1461_v6 = vsel %vm332_vm5, %v1459_v16, %v5078_v44  ;;  %v2312_v51 = vrot.slane %v2298_v24, 1 }
 0x121   : > { %2046 = vrot.lane.b32.xlu0 %v4363_v4, %s4433_s20  ;;  %v4411_v4 = vld [vmem:[%s4482_s17 + $0x30] sm:$0xff]   ;;  %v1463_v33 = vsel %vm335_vm6, %v1461_v6, %v5089_v7  ;;  %v4372_v6 = vld [vmem:[%s4482_s17 + $0x8c] ss:$0 sps:$4 sm:$0x11]  }
 0x122   : > { %2272 = vrot.lane.b32.xlu1 %v2271_v58, %s4437_s24  ;;  %v5131_v13 = vpop.permute.xlu0 %1190  ;;  %v1238_v26 = vsel %vm5993_vm2, %v4411_v4, %v5032_v21  ;;  %vm5995_vm2 = vcmask 195584   ;;  %v5180_v58 = vld [vmem:[%s4482_s17 + $0x84] sm:$0xff]   ;;  %v2654_v43 = vshll.u32 %v4372_v6, 16 }
 0x123   : > { %v1240_v2 = vsel %vm5994_vm3, %v1238_v26, %v5051_v29  ;;  %v1465_v44 = vsel %vm5995_vm2, %v1463_v33, %v5096_v38  ;;  %vm5996_vm3 = vcmask 228352   ;;  %v2303_v38 = vor.u32 %v2302_v8, %v2298_v24 }
 0x124   : > { %v1421_v49 = vpop.permute.xlu1 %1420  ;;  %v1242_v21 = vsel %vm329_vm4, %v1240_v2, %v5068_v36  ;;  %v1467_v7 = vsel %vm5996_vm3, %v1465_v44, %v5103_v42  ;;  %v2638_v30 = vshll.u32 %v5180_v58, 16  ;;  %v2636_v16 = vshrl.u32 %v5180_v58, 16 }
 0x125   : > { %2055 = vrot.lane.b32.xlu0 %v2054_v54, %s4437_s24  ;;  %v1244_v29 = vsel %vm332_vm5, %v1242_v21, %v5085_v32  ;;  %v1469_v36 = vsel %vm344_vm9, %v1467_v7, %v5111_v19  ;;  %v2419_v2 = vshrl.u32 %v5196_v48, 16  ;;  %v4373_v21 = vld [vmem:[%s4482_s17 + $0x80] ss:$0 sps:$4 sm:$0x11]  }
 0x126   : > { %2275 = vrot.lane.b32.xlu1 %v2274_v45, %s4440_s27  ;;  %v1204_v55 = vpop.permute.xlu0 %1203  ;;  %v1246_v28 = vsel %vm335_vm6, %v1244_v29, %v5094_v14  ;;  %v1471_v42 = vsel %vm5989_vm10, %v1469_v36, %v5119_v59  ;;  %v2313_v14 = vrot.slane %v2300_v0, 2  ;;  %v2095_v59 = vrot.slane %v2081_v53, 1 }
 0x127   : > { %v1248_v32 = vsel %vm5995_vm2, %v1246_v28, %v5101_v9  ;;  %v1473_v62 = vsel %vm5990_vm11, %v1471_v42, %v1408_v25  ;;  %v2096_v45 = vrot.slane %v2083_v11, 2  ;;  %v2089_v0 = vrot.slane %v5134_v52, 1 }
 0x128   : > { %v1428_v39 = vpop.permute.xlu1 %1427  ;;  %v1250_v19 = vsel %vm5996_vm3, %v1248_v32, %v5108_v37  ;;  %v1475_v9 = vsel %vm353_vm12, %v1473_v62, %v1421_v49  ;;  %v2314_v50 = vor.u32 %v2313_v14, %v2312_v51  ;;  %v2651_v53 = vrot.slane %v2638_v30, 2 }
 0x129   : > { %2058 = vrot.lane.b32.xlu0 %v2057_v60, %s4440_s27  ;;  %v1252_v34 = vsel %vm344_vm9, %v1250_v19, %v5116_v27  ;;  %v1477_v25 = vsel %vm356_vm13, %v1475_v9, %v1428_v39  ;;  %v2318_v60 = vrot.slane %v2316_v1, 2  ;;  %v2421_v39 = vshll.u32 %v5196_v48, 16  ;;  %v4375_v1 = vld [vmem:[%s4482_s17 + $0x84] sm:$0xff]  }
 0x12a   : > { %2288 = vrot.lane.b32.xlu1 %v2287_v3, %s4441_s28  ;;  %v1211_v46 = vpop.permute.xlu0 %1210  ;;  %v1254_v37 = vsel %vm5989_vm10, %v1252_v34, %v5124_v57  ;;  %v2644_v28 = vrot.slane %v5180_v58, 1  ;;  %v2433_v36 = vrot.slane %v2419_v2, 1  ;;  %v2437_v51 = vshll.u32 %v4373_v21, 16 }
 0x12b   : > { %v1256_v27 = vsel %vm5990_vm11, %v1254_v37, %v5131_v13  ;;  %v2097_v13 = vor.u32 %v2096_v45, %v2095_v59  ;;  %v2319_v26 = vsel %vm5986_vm0, %v2314_v50, %v2318_v60  ;;  %v2423_v33 = vrot.slane %v2421_v39, 1 }
 0x12c   : > { %v1437_v31 = vpop.permute.xlu1 %1436  ;;  %v1258_v61 = vsel %vm353_vm12, %v1256_v27, %v1204_v55  ;;  %v2427_v58 = vrot.slane %v5196_v48, 1  ;;  %v2439_v62 = vrot.slane %v2437_v51, 2  ;;  %v2453_v9 = vshll.u32 %v4375_v1, 16 }
 0x12d   : > { %2071 = vrot.lane.b32.xlu0 %v2070_v12, %s4441_s28  ;;  %v1479_v49 = vsel %vm5988_vm14, %v1477_v25, %v1437_v31  ;;  %v1260_v3 = vsel %vm356_vm13, %v1258_v61, %v1211_v46  ;;  %v2640_v12 = vrot.slane %v2638_v30, 1  ;;  %v2650_v31 = vrot.slane %v2636_v16, 1  ;;  %v4376_v25 = vld [vmem:[%s4482_s17 + $0x98] ss:$0 sps:$4 sm:$0x11]  }
 0x12e   : > { %2295 = vrot.lane.b32.xlu1 %v5129_v47, %s4442_s29  ;;  %v1220_v35 = vpop.permute.xlu0 %1219  ;;  %v2099_v47 = vshll.u32 %v4369_v10, 16  ;;  %v2424_v7 = vor.u32 %v2423_v33, %v2419_v2  ;;  %v4374_v10 = vld [vmem:[%s4482_s17 + $0x90] sm:$0xff]   ;;  %v2451_v30 = vshrl.u32 %v4375_v1, 16  ;;  %v2455_v27 = vrot.slane %v2453_v9, 1 }
 0x12f   : > { %v1262_v11 = vsel %vm5988_vm14, %v1260_v3, %v1220_v35  ;;  %v2641_v22 = vor.u32 %v2640_v12, %v2636_v16  ;;  %v2652_v42 = vor.u32 %v2651_v53, %v2650_v31  ;;  %v2656_v35 = vrot.slane %v2654_v43, 2 }
 0x130   : > { %v1440_v54 = vpop.permute.xlu1 %1439  ;;  %v2101_v55 = vrot.slane %v2099_v47, 2  ;;  %v2668_v45 = vshrl.u32 %v4374_v10, 16  ;;  %v2676_v3 = vrot.slane %v4374_v10, 1  ;;  %vm5997_vm2 = vcmask 31744  }
 0x131   : > { %2078 = vrot.lane.b32.xlu0 %v5134_v52, %s4442_s29  ;;  %v1481_v63 = vsel %vm5985_vm15, %v1479_v49, %v1440_v54  ;;  %v2670_v54 = vshll.u32 %v4374_v10, 16  ;;  %vm5998_vm3 = vcmask 64512  }
 0x132   : > { %2304 = vrot.lane.b32.xlu1 %v2303_v38, %s4443_s30  ;;  %v1223_v56 = vpop.permute.xlu0 %1222  ;;  %v2102_v46 = vsel %vm5986_vm0, %v2097_v13, %v2101_v55  ;;  %v2434_v38 = vrot.slane %v2421_v39, 2  ;;  %v2682_v60 = vrot.slane %v2668_v45, 1  ;;  %v2466_v13 = vrot.slane %v2453_v9, 2 }
 0x133   : > { %v1264_v52 = vsel %vm5985_vm15, %v1262_v11, %v1223_v56  ;;  %v2672_v48 = vrot.slane %v2670_v54, 1  ;;  %v4377_v56 = vld [vmem:[%s4482_s17 + $0x8c] ss:$0 sps:$4 sm:$0x11]   ;;  %v2683_v61 = vrot.slane %v2670_v54, 2  ;;  %v4378_v11 = vld [vmem:[%s4482_s17 + $0x9c] sm:$0xff]  }
 0x134   : > { %v1453_v57 = vpop.permute.xlu1 %1452  ;;  %v2435_v19 = vor.u32 %v2434_v38, %v2433_v36  ;;  %v2469_v39 = vshll.u32 %v4377_v56, 16  ;;  %v2702_v2 = vshll.u32 %v4378_v11, 16  ;;  %v2700_v53 = vshrl.u32 %v4378_v11, 16  ;;  %v5321_v56 = vld [vmem:[%s4482_s17 + $0x9c] sm:$0xff]  }
 0x135   : > { %v1483_v20 = vsel %vm5984_vm8, %v1481_v63, %v1453_v57  ;;  %2087 = vrot.lane.b32.xlu0 %v2086_v40, %s4443_s30  ;;  %v2673_v49 = vor.u32 %v2672_v48, %v2668_v45  ;;  %v2686_v63 = vshll.u32 %v4376_v25, 16  ;;  %v2684_v16 = vor.u32 %v2683_v61, %v2682_v60  ;;  %v5316_v48 = vld [vmem:[%s4482_s17 + $0xa8] sm:$0xff]   ;;  %v4412_v60 = vld [vmem:[%s4482_s17 + $0x54] sm:$0xff]  }
 0x136   : > { %2307 = vrot.lane.b32.xlu1 %v2306_v17, %s4444_s4  ;;  %4160 = vmatmul.mubr.msk.bf16.vlgmr.msra.gmra.mrb[8].mxu1 %vm5983_vm7, %v1483_v20  ;;  %v2657_v17 = vsel %vm5986_vm0, %v2652_v42, %v2656_v35  ;;  %v2440_v59 = vsel %vm5986_vm0, %v2435_v19, %v2439_v62  ;;  %v2465_v20 = vrot.slane %v2451_v30, 1  ;;  %v2704_v43 = vrot.slane %v2702_v2, 1 }
 0x137   : > { %v1236_v4 = vpop.permute.xlu0 %1235  ;;  %4176 = vmatpush3.bf16.msra.mxu1 %v5016_v15  ;;  %4183 = vmatprep.mubr.msk.bf16.mxu1 %vm5981_vm1, %v4446_v5  ;;  %v2688_v12 = vrot.slane %v2686_v63, 2  ;;  %v2708_v45 = vrot.slane %v4378_v11, 1 }
 0x138   : > { %v1266_v24 = vsel %vm5984_vm8, %v1264_v52, %v1236_v4  ;;  %v5224_v8 = vpop.permute.xlu1 %1774  ;;  %4177 = vmatprep.subr.bf16.mxu1 %v4446_v5  ;;  %v2459_v4 = vrot.slane %v4375_v1, 1  ;;  %v2467_v6 = vor.u32 %v2466_v13, %v2465_v20  ;;  %v2705_v42 = vor.u32 %v2704_v43, %v2700_v53 }
 0x139   : > { %2090 = vrot.lane.b32.xlu0 %v2089_v0, %s4444_s4  ;;  %4148 = vmatmul.mubr.msk.bf16.vlgmr.msra.gmra.mrb[8].mxu0 %vm5983_vm7, %v1266_v24  ;;  %v2456_v0 = vor.u32 %v2455_v27, %v2451_v30  ;;  %v2471_v24 = vrot.slane %v2469_v39, 2  ;;  %v1889_v61 = vsel %vm5997_vm2, %v4412_v60, %v5224_v8  ;;  %v2734_v20 = vshll.u32 %v5316_v48, 16 }
 0x13a   : > { %2320 = vrot.lane.b32.xlu1 %v2319_v26, %s4445_s5  ;;  %4164 = vmatpush3.bf16.msra.mxu0 %v5016_v15  ;;  %v4379_v26 = vld [vmem:[%s4482_s17 + $0x90] sm:$0xff]   ;;  %v2515_v43 = vshrl.u32 %v5321_v56, 16 }
 0x13b   : > { %v5234_v44 = vpop.permute.xlu0 %1557  ;;  %4178 = vmatpush3.bf16.msra.mxu1 %v5037_v23  ;;  %4165 = vmatprep.subr.bf16.mxu0 %v4446_v5  ;;  %v2485_v21 = vshll.u32 %v4379_v26, 16  ;;  %v2472_v31 = vsel %vm5986_vm0, %v2467_v6, %v2471_v24  ;;  %v2483_v38 = vshrl.u32 %v4379_v26, 16  ;;  %v2491_v63 = vrot.slane %v4379_v26, 1 }
 0x13c   : > { %v5238_v29 = vpop.permute.xlu1 %1777  ;;  %4179 = vmatprep.subr.bf16.mxu1 %v4446_v5  ;;  %4171 = vmatprep.mubr.msk.bf16.mxu0 %vm5981_vm1, %v4446_v5 }
 0x13d   : > { %2103 = vrot.lane.b32.xlu0 %v2102_v46, %s4445_s5  ;;  %v2689_v46 = vsel %vm5986_vm0, %v2684_v16, %v2688_v12  ;;  %v2487_v51 = vrot.slane %v2485_v21, 1  ;;  %v2498_v9 = vrot.slane %v2485_v21, 2  ;;  %v2517_v12 = vshll.u32 %v5321_v56, 16 }
 0x13e   : > { %2642 = vrot.lane.b32.xlu1 %v2641_v22, %s4434_s21  ;;  %4166 = vmatpush3.bf16.msra.mxu0 %v5037_v23 }
 0x13f   : > { %v5248_v32 = vpop.permute.xlu0 %1560  ;;  %4180 = vmatpush3.bf16.msra.mxu1 %v5056_v18  ;;  %4167 = vmatprep.subr.bf16.mxu0 %v4446_v5  ;;  %v2488_v54 = vor.u32 %v2487_v51, %v2483_v38 }
 0x140   : > { %v5252_v14 = vpop.permute.xlu1 %1790  ;;  %4181 = vmatprep.subr.bf16.mxu1 %v4446_v5 }
 0x141   : > { %2425 = vrot.lane.b32.xlu0 %v2424_v7, %s4434_s21 }
 0x142   : > { %2645 = vrot.lane.b32.xlu1 %v2644_v28, %s4432_s19  ;;  %4168 = vmatpush3.bf16.msra.mxu0 %v5056_v18  ;;  %v4380_v28 = vld [vmem:[%s4482_s17 + $0xa4] ss:$0 sps:$4 sm:$0x11]  }
 0x143   : > { %v5260_v40 = vpop.permute.xlu0 %1573  ;;  %4182 = vmatpush3.bf16.msra.mxu1 %v5074_v41  ;;  %4169 = vmatprep.subr.bf16.mxu0 %v4446_v5  ;;  %v2718_v19 = vshll.u32 %v4380_v28, 16  ;;  %v2519_v28 = vrot.slane %v2517_v12, 1 }
 0x144   : > { %v5265_v34 = vpop.permute.xlu1 %1797  ;;  %4199 = vmatprep.subr.bf16.mxu1 %v4446_v5 }
 0x145   : > { %2428 = vrot.lane.b32.xlu0 %v2427_v58, %s4432_s19  ;;  %v2714_v58 = vrot.slane %v2700_v53, 1  ;;  %v2720_v27 = vrot.slane %v2718_v19, 2 }
 0x146   : > { %2658 = vrot.lane.b32.xlu1 %v2657_v17, %s4438_s25  ;;  %4170 = vmatpush3.bf16.msra.mxu0 %v5074_v41  ;;  %v2497_v17 = vrot.slane %v2483_v38, 1 }
 0x147   : > { %v5272_v37 = vpop.permute.xlu0 %1580  ;;  %4187 = vmatprep.subr.bf16.mxu0 %v4446_v5 }
 0x148   : > { %v5276_v47 = vpop.permute.xlu1 %1806 }
 0x149   : > { %2441 = vrot.lane.b32.xlu0 %v2440_v59, %s4438_s25 }
 0x14a   : > { %2665 = vrot.lane.b32.xlu1 %v4374_v10, %s4431_s18  ;;  %v4381_v10 = vld [vmem:[%s4482_s17 + $0x98] ss:$0 sps:$4 sm:$0x11]  }
 0x14b   : > { %v5281_v50 = vpop.permute.xlu0 %1589  ;;  %v2501_v59 = vshll.u32 %v4381_v10, 16  ;;  %v4385_v10 = vld [vmem:[%s4482_s17 + $0xa4] ss:$0 sps:$4 sm:$0x11]  }
 0x14c   : > { %v5283_v57 = vpop.permute.xlu1 %1809 }
 0x14d   : > { %2448 = vrot.lane.b32.xlu0 %v4375_v1, %s4431_s18  ;;  %v2715_v1 = vrot.slane %v2702_v2, 2  ;;  %v2736_v2 = vrot.slane %v2734_v20, 1 }
 0x14e   : > { %2674 = vrot.lane.b32.xlu1 %v2673_v49, %s4436_s23 }
 0x14f   : > { %v5288_v55 = vpop.permute.xlu0 %1592  ;;  %v2716_v30 = vor.u32 %v2715_v1, %v2714_v58 }
 0x150   : > { %v5290_v52 = vpop.permute.xlu1 %1822 }
 0x151   : > { %2457 = vrot.lane.b32.xlu0 %v2456_v0, %s4436_s23  ;;  %v2499_v0 = vor.u32 %v2498_v9, %v2497_v17  ;;  %v2721_v39 = vsel %vm5986_vm0, %v2716_v30, %v2720_v27  ;;  %v2520_v17 = vor.u32 %v2519_v28, %v2515_v43  ;;  %v2740_v9 = vrot.slane %v5316_v48, 1  ;;  %v5383_v30 = vld [vmem:[%s4482_s17 + $0x90] sm:$0xff]  }
 0x152   : > { %2677 = vrot.lane.b32.xlu1 %v2676_v3, %s4435_s22  ;;  %v2503_v3 = vrot.slane %v2501_v59, 2 }
 0x153   : > { %v5295_v33 = vpop.permute.xlu0 %1605 }
 0x154   : > { %v5298_v22 = vpop.permute.xlu1 %1829 }
 0x155   : > { %2460 = vrot.lane.b32.xlu0 %v2459_v4, %s4435_s22  ;;  %v2504_v4 = vsel %vm5986_vm0, %v2499_v0, %v2503_v3 }
 0x156   : > { %2690 = vrot.lane.b32.xlu1 %v2689_v46, %s4439_s26 }
 0x157   : > { %v5303_v7 = vpop.permute.xlu0 %1612 }
 0x158   : > { %v5306_v36 = vpop.permute.xlu1 %1838 }
 0x159   : > { %2473 = vrot.lane.b32.xlu0 %v2472_v31, %s4439_s26  ;;  %v4384_v31 = vld [vmem:[%s4482_s17 + $0xb0] ss:$0 sps:$4 sm:$0x11]  }
 0x15a   : > { %2697 = vrot.lane.b32.xlu1 %v4378_v11, %s4433_s20  ;;  %v1891_v11 = vsel %vm5998_vm3, %v1889_v61, %v5238_v29  ;;  %v2732_v29 = vshrl.u32 %v5316_v48, 16  ;;  %v2750_v1 = vshll.u32 %v4384_v31, 16 }
 0x15b   : > { %v5311_v35 = vpop.permute.xlu0 %1621  ;;  %v1893_v8 = vsel %vm329_vm4, %v1891_v11, %v5252_v14 }
 0x15c   : > { %v1842_v62 = vpop.permute.xlu1 %1841  ;;  %v1895_v24 = vsel %vm332_vm5, %v1893_v8, %v5265_v34  ;;  %v2746_v51 = vrot.slane %v2732_v29, 1 }
 0x15d   : > { %2480 = vrot.lane.b32.xlu0 %v4379_v26, %s4433_s20  ;;  %v4413_v26 = vld [vmem:[%s4482_s17 + $0x48] sm:$0xff]   ;;  %v1897_v14 = vsel %vm335_vm6, %v1895_v24, %v5276_v47  ;;  %v4388_v24 = vld [vmem:[%s4482_s17 + $0xa4] ss:$0 sps:$4 sm:$0x11]  }
 0x15e   : > { %2706 = vrot.lane.b32.xlu1 %v2705_v42, %s4437_s24  ;;  %v1672_v6 = vsel %vm5997_vm2, %v4413_v26, %v5234_v44  ;;  %vm5999_vm2 = vcmask 195584   ;;  %v5367_v42 = vld [vmem:[%s4482_s17 + $0x9c] sm:$0xff]   ;;  %v3088_v28 = vshll.u32 %v4388_v24, 16 }
 0x15f   : > { %v5318_v25 = vpop.permute.xlu0 %1624  ;;  %v1674_v46 = vsel %vm5998_vm3, %v1672_v6, %v5248_v32  ;;  %v1899_v34 = vsel %vm5999_vm2, %v1897_v14, %v5283_v57  ;;  %vm6000_vm3 = vcmask 228352   ;;  %v2737_v57 = vor.u32 %v2736_v2, %v2732_v29 }
 0x160   : > { %v1855_v49 = vpop.permute.xlu1 %1854  ;;  %v1676_v44 = vsel %vm329_vm4, %v1674_v46, %v5260_v40  ;;  %v1901_v47 = vsel %vm6000_vm3, %v1899_v34, %v5290_v52  ;;  %v3072_v27 = vshll.u32 %v5367_v42, 16  ;;  %v3070_v8 = vshrl.u32 %v5367_v42, 16 }
 0x161   : > { %2489 = vrot.lane.b32.xlu0 %v2488_v54, %s4437_s24  ;;  %v1678_v32 = vsel %vm332_vm5, %v1676_v44, %v5272_v37  ;;  %v1903_v40 = vsel %vm344_vm9, %v1901_v47, %v5298_v22  ;;  %v2853_v46 = vshrl.u32 %v5383_v30, 16  ;;  %v4389_v44 = vld [vmem:[%s4482_s17 + $0x98] ss:$0 sps:$4 sm:$0x11]   ;;  %v3078_v47 = vrot.slane %v5367_v42, 1 }
 0x162   : > { %2709 = vrot.lane.b32.xlu1 %v2708_v45, %s4440_s27  ;;  %v1680_v38 = vsel %vm335_vm6, %v1678_v32, %v5281_v50  ;;  %v1905_v52 = vsel %vm5989_vm10, %v1903_v40, %v5306_v36  ;;  %v2747_v50 = vrot.slane %v2734_v20, 2  ;;  %v2529_v36 = vrot.slane %v2515_v43, 1 }
 0x163   : > { %v1638_v13 = vpop.permute.xlu0 %1637  ;;  %v1682_v37 = vsel %vm5999_vm2, %v1680_v38, %v5288_v55  ;;  %v1907_v19 = vsel %vm5990_vm11, %v1905_v52, %v1842_v62  ;;  %v2530_v45 = vrot.slane %v2517_v12, 2  ;;  %v2523_v20 = vrot.slane %v5321_v56, 1 }
 0x164   : > { %v1862_v16 = vpop.permute.xlu1 %1861  ;;  %v1684_v22 = vsel %vm6000_vm3, %v1682_v37, %v5295_v33  ;;  %v1909_v55 = vsel %vm353_vm12, %v1907_v19, %v1855_v49  ;;  %v2748_v61 = vor.u32 %v2747_v50, %v2746_v51  ;;  %v3085_v43 = vrot.slane %v3072_v27, 2  ;;  %v4390_v51 = vld [vmem:[%s4482_s17 + $0xa8] sm:$0xff]  }
 0x165   : > { %2492 = vrot.lane.b32.xlu0 %v2491_v63, %s4440_s27  ;;  %v1686_v59 = vsel %vm344_vm9, %v1684_v22, %v5303_v7  ;;  %v1911_v62 = vsel %vm356_vm13, %v1909_v55, %v1862_v16  ;;  %v2752_v63 = vrot.slane %v2750_v1, 2  ;;  %v2855_v16 = vshll.u32 %v5383_v30, 16  ;;  %v4391_v1 = vld [vmem:[%s4482_s17 + $0x9c] sm:$0xff]  }
 0x166   : > { %2722 = vrot.lane.b32.xlu1 %v2721_v39, %s4441_s28  ;;  %v1688_v33 = vsel %vm5989_vm10, %v1686_v59, %v5311_v35  ;;  %v2867_v38 = vrot.slane %v2853_v46, 1  ;;  %v3090_v52 = vrot.slane %v3088_v28, 2  ;;  %v2861_v50 = vrot.slane %v5383_v30, 1 }
 0x167   : > { %v1645_v21 = vpop.permute.xlu0 %1644  ;;  %v1690_v7 = vsel %vm5990_vm11, %v1688_v33, %v5318_v25  ;;  %v2531_v25 = vor.u32 %v2530_v45, %v2529_v36  ;;  %v2753_v6 = vsel %vm5986_vm0, %v2748_v61, %v2752_v63  ;;  %v2857_v14 = vrot.slane %v2855_v16, 1  ;;  %v4392_v33 = vld [vmem:[%s4482_s17 + $0xb0] ss:$0 sps:$4 sm:$0x11]  }
 0x168   : > { %v1871_v53 = vpop.permute.xlu1 %1870  ;;  %v1692_v0 = vsel %vm353_vm12, %v1690_v7, %v1638_v13  ;;  %v2868_v40 = vrot.slane %v2855_v16, 2  ;;  %v3104_v19 = vshll.u32 %v4390_v51, 16  ;;  %v2887_v59 = vshll.u32 %v4391_v1, 16 }
 0x169   : > { %2505 = vrot.lane.b32.xlu0 %v2504_v4, %s4441_s28  ;;  %v1913_v49 = vsel %vm5988_vm14, %v1911_v62, %v1871_v53  ;;  %v1694_v39 = vsel %vm356_vm13, %v1692_v0, %v1645_v21  ;;  %v3074_v4 = vrot.slane %v3072_v27, 1  ;;  %v3084_v53 = vrot.slane %v3070_v8, 1 }
 0x16a   : > { %2729 = vrot.lane.b32.xlu1 %v5316_v48, %s4442_s29  ;;  %v2533_v48 = vshll.u32 %v4385_v10, 16  ;;  %v3102_v55 = vshrl.u32 %v4390_v51, 16  ;;  %v3106_v36 = vrot.slane %v3104_v19, 1  ;;  %v2889_v27 = vrot.slane %v2887_v59, 1 }
 0x16b   : > { %v1654_v58 = vpop.permute.xlu0 %1653  ;;  %v3075_v31 = vor.u32 %v3074_v4, %v3070_v8  ;;  %v3086_v37 = vor.u32 %v3085_v43, %v3084_v53  ;;  %v3120_v63 = vshll.u32 %v4392_v33, 16  ;;  %v2893_v4 = vrot.slane %v4391_v1, 1  ;;  %v5517_v33 = vld [vmem:[%s4482_s17 + $0xb4] sm:$0xff]  }
 0x16c   : > { %v1874_v54 = vpop.permute.xlu1 %1873  ;;  %v1696_v12 = vsel %vm5988_vm14, %v1694_v39, %v1654_v58  ;;  %v2535_v13 = vrot.slane %v2533_v48, 2  ;;  %v2885_v48 = vshrl.u32 %v4391_v1, 16  ;;  %v3107_v7 = vor.u32 %v3106_v36, %v3102_v55 }
 0x16d   : > { %2512 = vrot.lane.b32.xlu0 %v5321_v56, %s4442_s29  ;;  %v1915_v3 = vsel %vm5985_vm15, %v1913_v49, %v1874_v54  ;;  %v4393_v49 = vld [vmem:[%s4482_s17 + $0xa4] ss:$0 sps:$4 sm:$0x11]   ;;  %v3116_v61 = vrot.slane %v3102_v55, 1  ;;  %vm5980_vm2 = vcmask 128000   ;;  %vm6001_vm3 = vcmask 31744  }
 0x16e   : > { %2738 = vrot.lane.b32.xlu1 %v2737_v57, %s4443_s30  ;;  %v2536_v21 = vsel %vm5986_vm0, %v2531_v25, %v2535_v13  ;;  %v2871_v57 = vshll.u32 %v4389_v44, 16  ;;  %v2899_v39 = vrot.slane %v2885_v48, 1  ;;  %v2903_v25 = vshll.u32 %v4393_v49, 16 }
 0x16f   : > { %v1657_v60 = vpop.permute.xlu0 %1656  ;;  %v3122_v13 = vrot.slane %v3120_v63, 2 }
 0x170   : > { %v1887_v35 = vpop.permute.xlu1 %1886  ;;  %v1698_v56 = vsel %vm5985_vm15, %v1696_v12, %v1657_v60  ;;  %v2873_v22 = vrot.slane %v2871_v57, 2  ;;  %v2905_v24 = vrot.slane %v2903_v25, 2 }
 0x171   : > { %v1917_v11 = vsel %vm5984_vm8, %v1915_v3, %v1887_v35  ;;  %2521 = vrot.lane.b32.xlu0 %v2520_v17, %s4443_s30  ;;  %v3091_v17 = vsel %vm5986_vm0, %v3086_v37, %v3090_v52  ;;  %v2890_v3 = vor.u32 %v2889_v27, %v2885_v48  ;;  %v5474_v35 = vld [vmem:[%s4482_s17 + $0xb4] sm:$0xff]  }
 0x172   : > { %2741 = vrot.lane.b32.xlu1 %v2740_v9, %s4444_s4  ;;  %4184 = vmatmul.mubr.msk.bf16.vlgmr.msra.gmra.mrb[12].mxu1 %vm5983_vm7, %v1917_v11  ;;  %v2900_v11 = vrot.slane %v2887_v59, 2  ;;  %v3134_v44 = vshrl.u32 %v5474_v35, 16 }
 0x173   : > { %v1670_v26 = vpop.permute.xlu0 %1669  ;;  %4200 = vmatpush3.bf16.msra.mxu1 %v5016_v15  ;;  %4207 = vmatprep.mubr.msk.bf16.mxu1 %vm5981_vm1, %v4446_v5 }
 0x174   : > { %v1700_v29 = vsel %vm5984_vm8, %v1698_v56, %v1670_v26  ;;  %v5411_v2 = vpop.permute.xlu1 %2208  ;;  %4201 = vmatprep.subr.bf16.mxu1 %v4446_v5  ;;  %v5483_v56 = vld [vmem:[%s4482_s17 + $0xa8] sm:$0xff]   ;;  %v3136_v26 = vshll.u32 %v5474_v35, 16  ;;  %v3148_v36 = vrot.slane %v3134_v44, 1  ;;  %vm6002_vm8 = vcmask 64512  }
 0x175   : > { %2524 = vrot.lane.b32.xlu0 %v2523_v20, %s4444_s4  ;;  %4172 = vmatmul.mubr.msk.bf16.vlgmr.msra.gmra.mrb[12].mxu0 %vm5983_vm7, %v1700_v29  ;;  %v3110_v20 = vrot.slane %v4390_v51, 1  ;;  %v2919_v43 = vshll.u32 %v5483_v56, 16  ;;  %vm3556_vm7 = vsmask.f32 2304  ;;  %vm6003_vm15 = vmmov %vm6002_vm8 }
 0x176   : > { %2754 = vrot.lane.b32.xlu1 %v2753_v6, %s4445_s5  ;;  %4188 = vmatpush3.bf16.msra.mxu0 %v5016_v15  ;;  %v2858_v15 = vor.u32 %v2857_v14, %v2853_v46  ;;  %v2901_v6 = vor.u32 %v2900_v11, %v2899_v39  ;;  %v5492_v46 = vld [vmem:[%s5974_s2] ss:$0 sm:$0xff]  ;;  %v3138_v53 = vrot.slane %v3136_v26, 1 }
 0x177   : > { %v5421_v34 = vpop.permute.xlu0 %1991  ;;  %4202 = vmatpush3.bf16.msra.mxu1 %v5037_v23  ;;  %4189 = vmatprep.subr.bf16.mxu0 %v4446_v5  ;;  %v2921_v55 = vrot.slane %v2919_v43, 1  ;;  %v2932_v39 = vrot.slane %v2919_v43, 2 }
 0x178   : > { %v5425_v32 = vpop.permute.xlu1 %2211  ;;  %4203 = vmatprep.subr.bf16.mxu1 %v4446_v5  ;;  %4195 = vmatprep.mubr.msk.bf16.mxu0 %vm5981_vm1, %v4446_v5  ;;  %vm3555_vm1 = vcmask 124928  }
 0x179   : > { %2537 = vrot.lane.b32.xlu0 %v2536_v21, %s4445_s5 }
 0x17a   : > { %3076 = vrot.lane.b32.xlu1 %v3075_v31, %s4434_s21  ;;  %4190 = vmatpush3.bf16.msra.mxu0 %v5037_v23  ;;  %v2869_v23 = vor.u32 %v2868_v40, %v2867_v38  ;;  %v4396_v38 = vld [vmem:[%s4482_s17 + $0xbc] ss:$0 sps:$4 sm:$0x11]  }
 0x17b   : > { %v5435_v10 = vpop.permute.xlu0 %1994  ;;  %4204 = vmatpush3.bf16.msra.mxu1 %v5056_v18  ;;  %4191 = vmatprep.subr.bf16.mxu0 %v4446_v5  ;;  %v3152_v49 = vshll.u32 %v4396_v38, 16 }
 0x17c   : > { %v5439_v58 = vpop.permute.xlu1 %2224  ;;  %4205 = vmatprep.subr.bf16.mxu1 %v4446_v5 }
 0x17d   : > { %2859 = vrot.lane.b32.xlu0 %v2858_v15, %s4434_s21 }
 0x17e   : > { %3079 = vrot.lane.b32.xlu1 %v3078_v47, %s4432_s19  ;;  %4192 = vmatpush3.bf16.msra.mxu0 %v5056_v18  ;;  %v2874_v18 = vsel %vm5986_vm0, %v2869_v23, %v2873_v22  ;;  %v2906_v47 = vsel %vm5986_vm0, %v2901_v6, %v2905_v24  ;;  %v2917_v23 = vshrl.u32 %v5483_v56, 16  ;;  %v5512_v22 = vld [vmem:[%s4482_s17 + $0xc0] sm:$0xff]   ;;  %v3142_v6 = vrot.slane %v5474_v35, 1 }
 0x17f   : > { %v5447_v54 = vpop.permute.xlu0 %2007  ;;  %4206 = vmatpush3.bf16.msra.mxu1 %v5074_v41  ;;  %4193 = vmatprep.subr.bf16.mxu0 %v4446_v5 }
 0x180   : > { %v5452_v9 = vpop.permute.xlu1 %2231  ;;  %4223 = vmatprep.subr.bf16.mxu1 %v4446_v5 }
 0x181   : > { %2862 = vrot.lane.b32.xlu0 %v2861_v50, %s4432_s19 }
 0x182   : > { %3092 = vrot.lane.b32.xlu1 %v3091_v17, %s4438_s25  ;;  %4194 = vmatpush3.bf16.msra.mxu0 %v5074_v41  ;;  %v3117_v41 = vrot.slane %v3104_v19, 2 }
 0x183   : > { %v5459_v45 = vpop.permute.xlu0 %2014  ;;  %4211 = vmatprep.subr.bf16.mxu0 %v4446_v5 }
 0x184   : > { %v5463_v62 = vpop.permute.xlu1 %2240  ;;  %v3118_v12 = vor.u32 %v3117_v41, %v3116_v61  ;;  %v2931_v61 = vrot.slane %v2917_v23, 1 }
 0x185   : > { %2875 = vrot.lane.b32.xlu0 %v2874_v18, %s4438_s25  ;;  %v3139_v18 = vor.u32 %v3138_v53, %v3134_v44 }
 0x186   : > { %3099 = vrot.lane.b32.xlu1 %v4390_v51, %s4431_s18  ;;  %v3123_v14 = vsel %vm5986_vm0, %v3118_v12, %v3122_v13  ;;  %v4397_v51 = vld [vmem:[%s4482_s17 + $0xb0] ss:$0 sps:$4 sm:$0x11]   ;;  %v3168_v12 = vshll.u32 %v5512_v22, 16  ;;  %v2933_v44 = vor.u32 %v2932_v39, %v2931_v61 }
 0x187   : > { %v5468_v60 = vpop.permute.xlu0 %2023  ;;  %v2935_v11 = vshll.u32 %v4397_v51, 16 }
 0x188   : > { %v5470_v0 = vpop.permute.xlu1 %2243 }
 0x189   : > { %2882 = vrot.lane.b32.xlu0 %v4391_v1, %s4431_s18  ;;  %v2937_v53 = vrot.slane %v2935_v11, 2 }
 0x18a   : > { %3108 = vrot.lane.b32.xlu1 %v3107_v7, %s4436_s23  ;;  %v3149_v7 = vrot.slane %v3136_v26, 2  ;;  %v2951_v26 = vshll.u32 %v5517_v33, 16 }
 0x18b   : > { %v5477_v16 = vpop.permute.xlu0 %2026 }
 0x18c   : > { %v5479_v8 = vpop.permute.xlu1 %2256  ;;  %v2953_v51 = vrot.slane %v2951_v26, 1 }
 0x18d   : > { %2891 = vrot.lane.b32.xlu0 %v2890_v3, %s4436_s23 }
 0x18e   : > { %3111 = vrot.lane.b32.xlu1 %v3110_v20, %s4435_s22 }
 0x18f   : > { %v5487_v29 = vpop.permute.xlu0 %2039 }
 0x190   : > { %v5495_v21 = vpop.permute.xlu1 %2263 }
 0x191   : > { %2894 = vrot.lane.b32.xlu0 %v2893_v4, %s4435_s22  ;;  %v652_v31 = vpop.f32.mrb[0].mxu1  ;;  %v2922_v4 = vor.u32 %v2921_v55, %v2917_v23  ;;  %v4415_v23 = vld [vmem:[%s4482_s17 + $0x60] sm:$0xff]  }
 0x192   : > { %v653_v28 = vadd.f32 %v5492_v46, %v652_v31  ;;  %3124 = vrot.lane.b32.xlu1 %v3123_v14, %s4439_s26  ;;  %v4113_v15 = vpop.f32.mrb[1].mxu1  ;;  %v3150_v14 = vor.u32 %v3149_v7, %v3148_v36  ;;  %v3154_v31 = vrot.slane %v3152_v49, 2 }
 0x193   : > { %v5504_v40 = vpop.permute.xlu0 %2046  ;;  %v655_v57 = vpop.f32.mrb[2].mxu1  ;;  %v3170_v15 = vrot.slane %v3168_v12, 1 }
 0x194   : > { %v659_v37 = vmax.f32 %v653_v28, 0.0  ;;  %v435_v52 = vpop.f32.mrb[0].mxu0  ;;  %v656_v50 = vadd.f32 %v5492_v46, %v655_v57  ;;  %v5508_v1 = vpop.permute.xlu1 %2272  ;;  %v3166_v28 = vshrl.u32 %v5512_v22, 16  ;;  %v2949_v57 = vshrl.u32 %v5517_v33, 16 }
 0x195   : > { %v436_v19 = vadd.f32 %v5492_v46, %v435_v52  ;;  %v4101_v17 = vpop.f32.mrb[1].mxu0  ;;  %v4114_v59 = vpop.f32.mrb[3].mxu1  ;;  %2907 = vrot.lane.b32.xlu0 %v2906_v47, %s4439_s26  ;;  %v4414_v47 = vld [vmem:[%s4482_s17 + $0x6c] sm:$0xff]  }
 0x196   : > { %662 = vst.msk [vmem:[#allocation2 + $0x10] sm:$0xff] %vm332_vm5, %v659_v37  ;;  %v660_v48 = vmax.f32 %v656_v50, 0.0  ;;  %v438_v27 = vpop.f32.mrb[2].mxu0  ;;  %3131 = vrot.lane.b32.xlu1 %v5474_v35, %s4433_s20  ;;  %v2323_v38 = vsel %vm6001_vm3, %v4414_v47, %v5411_v2  ;;  %v2925_v35 = vrot.slane %v5483_v56, 1  ;;  %v3155_v2 = vsel %vm5986_vm0, %v3150_v14, %v3154_v31 }
 0x197   : > { %v442_v41 = vmax.f32 %v436_v19, 0.0  ;;  %v439_v63 = vadd.f32 %v5492_v46, %v438_v27  ;;  %v4102_v3 = vpop.f32.mrb[3].mxu0  ;;  %v5523_v20 = vpop.permute.xlu0 %2055  ;;  %v2106_v19 = vsel %vm6001_vm3, %v4415_v23, %v5421_v34  ;;  %v2325_v17 = vsel %vm6002_vm8, %v2323_v38, %v5425_v32 }
 0x198   : > { %663 = vst.msk [vmem:[#allocation2 + $0x18] sm:$0x3f] %vm5980_vm2, %v660_v48  ;;  %v5526_v25 = vpop.permute.xlu1 %2275  ;;  %v3171_v36 = vor.u32 %v3170_v15, %v3166_v28  ;;  %v4400_v48 = vld [vmem:[%s4482_s17 + $0xc8] ss:$0 sps:$4 sm:$0x11]   ;;  %v2108_v27 = vsel %vm6003_vm15, %v2106_v19, %v5435_v10  ;;  %v2327_v7 = vsel %vm329_vm4, %v2325_v17, %v5439_v58  ;;  %v5568_v34 = vor.u32 %v2953_v51, %v2949_v57 }
 0x199   : > { %444 = vst.msk [vmem:[#allocation2] sm:$0xff] %vm332_vm5, %v442_v41  ;;  %v443_v13 = vmax.f32 %v439_v63, 0.0  ;;  %2914 = vrot.lane.b32.xlu0 %v5483_v56, %s4433_s20  ;;  %v2938_v56 = vsel %vm5986_vm0, %v2933_v44, %v2937_v53  ;;  %s4260_s20 = smul.u32 104, %s6079_s13  ;;  %vm5987_vm0 = vcmask 125952   ;;  %v2110_v32 = vsel %vm329_vm4, %v2108_v27, %v5447_v54 }
 0x19a   : > { %3140 = vrot.lane.b32.xlu1 %v3139_v18, %s4437_s24  ;;  %v2329_v61 = vsel %vm332_vm5, %v2327_v7, %v5452_v9  ;;  %v5575_v10 = vrot.slane %v3166_v28, 1  ;;  %v5577_v58 = vrot.slane %v3168_v12, 2  ;;  %v2112_v54 = vsel %vm332_vm5, %v2110_v32, %v5459_v45  ;;  %v4401_v28 = vld [vmem:[%s4482_s17 + $0xbc] ss:$0 sps:$4 sm:$0x11]  }
 0x19b   : > { %446 = vst.msk [vmem:[#allocation2 + $0x8] sm:$0x3f] %vm5980_vm2, %v443_v13  ;;  %v5536_v24 = vpop.permute.xlu0 %2058  ;;  %vm3322_vm2 = vcmask 1046528   ;;  %v2331_v63 = vsel %vm335_vm6, %v2329_v61, %v5463_v62  ;;  %vm6004_vm8 = vcmask 195584   ;;  %v3184_v12 = vshll.u32 %v4400_v48, 16  ;;  %s5594_s22 = scalar_lea.vmem %s5975_s3, %s4260_s20 }
 0x19c   : > { %v5538_v43 = vpop.permute.xlu1 %2288  ;;  %v2333_v9 = vsel %vm6004_vm8, %v2331_v63, %v5470_v0  ;;  %vm6005_vm15 = vcmask 228352   ;;  %v2114_v0 = vsel %vm335_vm6, %v2112_v54, %v5468_v60  ;;  %vm6006_vm3 = vmmov %vm6004_vm8  ;;  %v3182_v60 = vor.u32 %v5577_v58, %v5575_v10  ;;  %v5664_v10 = vld [vmem:[%s5973_s1] sm:$0xff]  }
 0x19d   : > { %2923 = vrot.lane.b32.xlu0 %v2922_v4, %s4437_s24  ;;  %v3270_v37 = vld [vmem:[#allocation2 + $0x10] sm:$0xff]  ;;  %v2335_v14 = vsel %vm6005_vm15, %v2333_v9, %v5479_v8  ;;  %v2116_v15 = vsel %vm6006_vm3, %v2114_v0, %v5477_v16  ;;  %vm6007_vm8 = vmmov %vm6005_vm15  ;;  %v3558_v16 = vld [vmem:[%s5594_s22 + $0x4] sm:$0x7]  ;;  %v2964_v23 = vrot.slane %v2951_v26, 2  ;;  %v3186_v48 = vrot.slane %v3184_v12, 2 }
 0x19e   : > { %3143 = vrot.lane.b32.xlu1 %v3142_v6, %s4440_s27  ;;  %v3326_v49 = vrot.slane %v3270_v37, 1  ;;  %v3174_v6 = vrot.slane %v5512_v22, 1  ;;  %v2337_v44 = vsel %vm344_vm9, %v2335_v14, %v5495_v21  ;;  %v2118_v21 = vsel %vm6007_vm8, %v2116_v15, %v5487_v29  ;;  %vm5619_vm15 = vmand %vm3555_vm1, %vm3556_vm7 }
 0x19f   : > { %v3271_v52 = vld [vmem:[#allocation2 + $0x18] sm:$0x3f]  ;;  %v5550_v50 = vpop.permute.xlu0 %2071  ;;  %v2339_v47 = vsel %vm5989_vm10, %v2337_v44, %v5508_v1  ;;  %v2120_v29 = vsel %vm344_vm9, %v2118_v21, %v5504_v40  ;;  %v2967_v40 = vshll.u32 %v4401_v28, 16  ;;  %vm6010_vm1 = vcmask 457728  }
 0x1a0   : > { %v3268_v59 = vld [vmem:[#allocation2] sm:$0xff]  ;;  %v3327_v18 = vrot.slane %v3271_v52, 1  ;;  %v2296_v55 = vpop.permute.xlu1 %2295  ;;  %v2341_v1 = vsel %vm5990_vm11, %v2339_v47, %v5526_v25  ;;  %v2122_v19 = vsel %vm5989_vm10, %v2120_v29, %v5523_v20  ;;  %vm6011_vm7 = vcmask 490496   ;;  %vm6013_vm8 = vmmov %vm6010_vm1 }
 0x1a1   : > { %2926 = vrot.lane.b32.xlu0 %v2925_v35, %s4440_s27  ;;  %v3323_v3 = vrot.slane %v3268_v59, 1  ;;  %vm6012_vm3 = vcmask 523264  }
 0x1a2   : > { %v3269_v41 = vld [vmem:[#allocation2 + $0x8] sm:$0x3f]  ;;  %3156 = vrot.lane.b32.xlu1 %v3155_v2, %s4441_s28  ;;  %v3328_v39 = vsel %vm3322_vm2, %v3326_v49, %v3327_v18  ;;  %v5589_v62 = vmax.f32 %v3271_v52, %v3327_v18  ;;  %v2963_v52 = vrot.slane %v2949_v57, 1 }
 0x1a3   : > { %v3324_v11 = vrot.slane %v3269_v41, 1  ;;  %v2079_v13 = vpop.permute.xlu0 %2078  ;;  %v5602_v8 = vmax.f32 %v3270_v37, %v3328_v39 }
 0x1a4   : > { %v2305_v4 = vpop.permute.xlu1 %2304  ;;  %v2965_v49 = vor.u32 %v2964_v23, %v2963_v52 }
 0x1a5   : > { %v3325_v45 = vsel %vm3322_vm2, %v3323_v3, %v3324_v11  ;;  %v3389_v31 = vmax.f32 %v3269_v41, %v3324_v11  ;;  %2939 = vrot.lane.b32.xlu0 %v2938_v56, %s4441_s28  ;;  %v2343_v56 = vsel %vm353_vm12, %v2341_v1, %v5538_v43  ;;  %v2124_v43 = vsel %vm5990_vm11, %v2122_v19, %v5536_v24  ;;  %v5683_v3 = vld [vmem:[%s5973_s1 + $0x8] sm:$0xff]  }
 0x1a6   : > { %v3388_v53 = vmax.f32 %v3268_v59, %v3325_v45  ;;  %3163 = vrot.lane.b32.xlu1 %v5512_v22, %s4442_s29  ;;  %v2345_v57 = vsel %vm356_vm13, %v2343_v56, %v2296_v55  ;;  %v2126_v20 = vsel %vm353_vm12, %v2124_v43, %v5550_v50  ;;  %v2957_v24 = vrot.slane %v5517_v33, 1 }
 0x1a7   : > { %v3424_v38 = vmax.f32 %v3389_v31, %v5589_v62  ;;  %v2088_v35 = vpop.permute.xlu0 %2087  ;;  %v2347_v59 = vsel %vm5988_vm14, %v2345_v57, %v2305_v4  ;;  %v2969_v50 = vrot.slane %v2967_v40, 2  ;;  %v5704_v4 = vld [vmem:[%s5973_s1 + $0x18] sm:$0xff]  }
 0x1a8   : > { %v3423_v51 = vmax.f32 %v3388_v53, %v5602_v8  ;;  %v2308_v37 = vpop.permute.xlu1 %2307 }
 0x1a9   : > { %v3996_v2 = vpack.c.bf16 %v3424_v38, %v3424_v38  ;;  %2946 = vrot.lane.b32.xlu0 %v5517_v33, %s4442_s29  ;;  %v2349_v26 = vsel %vm6010_vm1, %v2347_v59, %v2308_v37  ;;  %vm6014_vm1 = vsmask.f32 6400 }
 0x1aa   : > { %v3995_v25 = vpack.c.bf16 %v3423_v51, %v3423_v51  ;;  %3172 = vrot.lane.b32.xlu1 %v3171_v36, %s4443_s30  ;;  %v2128_v36 = vsel %vm356_vm13, %v2126_v20, %v2079_v13  ;;  %v3187_v41 = vsel %vm6014_vm1, %v3182_v60, %v3186_v48  ;;  %v5695_v13 = vld [vmem:[%s5973_s1 + $0x10] sm:$0xff]  }
 0x1ab   : > { %v3559_v17 = vsel %vm5619_vm15, %v3996_v2, %v3558_v16  ;;  %v2091_v18 = vpop.permute.xlu0 %2090  ;;  %v2130_v7 = vsel %vm5988_vm14, %v2128_v36, %v2088_v35  ;;  %v4421_v36 = vld [vmem:[%s4482_s17 + $0x78] sm:$0xff]  }
 0x1ac   : > { %3554 = vst.msk [vmem:[%s5594_s22] sm:$0xf] %vm5987_vm0, %v3995_v25  ;;  %3560 = vst [vmem:[%s5594_s22 + $0x4] sm:$0x7] %v3559_v17  ;;  %v2321_v55 = vpop.permute.xlu1 %2320  ;;  %v2132_v32 = vsel %vm6013_vm8, %v2130_v7, %v2091_v18  ;;  %vm6016_vm0 = vcmask 490496   ;;  %v4420_v18 = vld [vmem:[%s4482_s17 + $0x84] sm:$0xff]  }
 0x1ad   : > { %v2351_v27 = vsel %vm6011_vm7, %v2349_v26, %v2321_v55  ;;  %2955 = vrot.lane.b32.xlu0 %v5568_v34, %s4443_s30  ;;  %vm6015_vm7 = vmmov 0   ;;  %vm6017_vm8 = vmmov %vm6014_vm1 }
 0x1ae   : > { %3175 = vrot.lane.b32.xlu1 %v3174_v6, %s4444_s4  ;;  %4208 = vmatmul.mubr.msk.bf16.vlgmr.msra.gmra.mrb[16].mxu1 %vm6012_vm3, %v2351_v27  ;;  %v2970_v58 = vsel %vm6017_vm8, %v2965_v49, %v2969_v50 }
 0x1af   : > { %v2104_v61 = vpop.permute.xlu0 %2103  ;;  %4224 = vmatpush3.bf16.msra.mxu1 %v5664_v10  ;;  %4231 = vmatprep.mubr.msk.bf16.mxu1 %vm6015_vm7, %v4446_v5 }
 0x1b0   : > { %v2134_v33 = vsel %vm6016_vm0, %v2132_v32, %v2104_v61  ;;  %v5670_v34 = vpop.permute.xlu1 %2642  ;;  %4225 = vmatprep.subr.bf16.mxu1 %v4446_v5  ;;  %vm6018_vm0 = vcmask 128000  }
 0x1b1   : > { %2958 = vrot.lane.b32.xlu0 %v2957_v24, %s4444_s4  ;;  %4196 = vmatmul.mubr.msk.bf16.vlgmr.msra.gmra.mrb[16].mxu0 %vm6012_vm3, %v2134_v33  ;;  %vm6019_vm1 = vmmov %vm6018_vm0  ;;  %vm6020_vm3 = vcmask 31744  }
 0x1b2   : > { %3188 = vrot.lane.b32.xlu1 %v3187_v41, %s4445_s5  ;;  %4212 = vmatpush3.bf16.msra.mxu0 %v5664_v10  ;;  %v2757_v48 = vsel %vm6020_vm3, %v4420_v18, %v5670_v34  ;;  %vm6021_vm8 = vmmov %vm6020_vm3 }
 0x1b3   : > { %v5678_v63 = vpop.permute.xlu0 %2425  ;;  %4226 = vmatpush3.bf16.msra.mxu1 %v5683_v3  ;;  %4213 = vmatprep.subr.bf16.mxu0 %v4446_v5 }
 0x1b4   : > { %v2646_v39 = vpop.permute.xlu1 %2645  ;;  %4227 = vmatprep.subr.bf16.mxu1 %v4446_v5  ;;  %4219 = vmatprep.mubr.msk.bf16.mxu0 %vm6015_vm7, %v4446_v5  ;;  %v2540_v27 = vsel %vm6021_vm8, %v4421_v36, %v5678_v63 }
 0x1b5   : > { %2971 = vrot.lane.b32.xlu0 %v2970_v58, %s4445_s5 }
 0x1b6   : > { %4214 = vmatpush3.bf16.msra.mxu0 %v5683_v3 }
 0x1b7   : > { %v2429_v11 = vpop.permute.xlu0 %2428  ;;  %4228 = vmatpush3.bf16.msra.mxu1 %v5695_v13  ;;  %4215 = vmatprep.subr.bf16.mxu0 %v4446_v5 }
 0x1b8   : > { %v2659_v54 = vpop.permute.xlu1 %2658  ;;  %4229 = vmatprep.subr.bf16.mxu1 %v4446_v5 }
 0x1ba   : > { %4216 = vmatpush3.bf16.msra.mxu0 %v5695_v13 }
 0x1bb   : > { %v2442_v9 = vpop.permute.xlu0 %2441  ;;  %4230 = vmatpush3.bf16.msra.mxu1 %v5704_v4  ;;  %4217 = vmatprep.subr.bf16.mxu0 %v4446_v5 }
 0x1bc   : > { %v2666_v6 = vpop.permute.xlu1 %2665  ;;  %4247 = vmatprep.subr.bf16.mxu1 %v4446_v5 }
 0x1be   : > { %4218 = vmatpush3.bf16.msra.mxu0 %v5704_v4 }
 0x1bf   : > { %v2449_v12 = vpop.permute.xlu0 %2448  ;;  %4235 = vmatprep.subr.bf16.mxu0 %v4446_v5 }
 0x1c0   : > { %v2675_v14 = vpop.permute.xlu1 %2674 }
 0x1c3   : > { %v2458_v45 = vpop.permute.xlu0 %2457 }
 0x1c4   : > { %v2678_v31 = vpop.permute.xlu1 %2677 }
 0x1c7   : > { %v5711_v0 = vpop.permute.xlu0 %2460 }
 0x1c8   : > { %v2691_v44 = vpop.permute.xlu1 %2690 }
 0x1cb   : > { %v5713_v53 = vpop.permute.xlu0 %2473 }
 0x1cc   : > { %v2698_v28 = vpop.permute.xlu1 %2697 }
 0x1cd   : > { %v1086_v15 = vpop.f32.mrb[4].mxu1 }
 0x1ce   : > { %v1087_v47 = vadd.f32 %v5492_v46, %v1086_v15  ;;  %v4137_v38 = vpop.f32.mrb[5].mxu1 }
 0x1cf   : > { %v5716_v35 = vpop.permute.xlu0 %2480  ;;  %v1089_v60 = vpop.f32.mrb[6].mxu1 }
 0x1d0   : > { %v1093_v21 = vmax.f32 %v1087_v47, 0.0  ;;  %v869_v51 = vpop.f32.mrb[4].mxu0  ;;  %v1090_v16 = vadd.f32 %v5492_v46, %v1089_v60  ;;  %v2707_v1 = vpop.permute.xlu1 %2706 }
 0x1d1   : > { %v870_v37 = vadd.f32 %v5492_v46, %v869_v51  ;;  %v4125_v52 = vpop.f32.mrb[5].mxu0  ;;  %v4138_v29 = vpop.f32.mrb[7].mxu1 }
 0x1d2   : > { %1096 = vst.msk [vmem:[#allocation2 + $0x30] sm:$0xff] %vm332_vm5, %v1093_v21  ;;  %v1094_v2 = vmax.f32 %v1090_v16, 0.0  ;;  %v872_v56 = vpop.f32.mrb[6].mxu0 }
 0x1d3   : > { %v876_v23 = vmax.f32 %v870_v37, 0.0  ;;  %v873_v25 = vadd.f32 %v5492_v46, %v872_v56  ;;  %v4126_v19 = vpop.f32.mrb[7].mxu0  ;;  %v2490_v57 = vpop.permute.xlu0 %2489 }
 0x1d4   : > { %1097 = vst.msk [vmem:[#allocation2 + $0x38] sm:$0x3f] %vm6018_vm0, %v1094_v2  ;;  %v2710_v40 = vpop.permute.xlu1 %2709  ;;  %vm6022_vm0 = vcmask 64512  }
 0x1d5   : > { %879 = vst.msk [vmem:[#allocation2 + $0x20] sm:$0xff] %vm332_vm5, %v876_v23  ;;  %v877_v17 = vmax.f32 %v873_v25, 0.0  ;;  %v2759_v24 = vsel %vm6022_vm0, %v2757_v48, %v2646_v39  ;;  %vm6023_vm14 = vmmov %vm6022_vm0  ;;  %v3562_v23 = vld [vmem:[%s5594_s22 + $0xc] sm:$0x7]  ;;  %v3566_v25 = vld [vmem:[%s5594_s22 + $0x14] sm:$0x7] }
 0x1d6   : > { %v2542_v32 = vsel %vm6023_vm14, %v2540_v27, %v2429_v11  ;;  %v2761_v61 = vsel %vm329_vm4, %v2759_v24, %v2659_v54  ;;  %vm6025_vm14 = vcmask 228352   ;;  %vm6028_vm0 = vcmask 424960  }
 0x1d7   : > { %880 = vst.msk [vmem:[#allocation2 + $0x28] sm:$0x3f] %vm6019_vm1, %v877_v17  ;;  %v2493_v43 = vpop.permute.xlu0 %2492  ;;  %v2544_v33 = vsel %vm329_vm4, %v2542_v32, %v2442_v9  ;;  %v2763_v34 = vsel %vm332_vm5, %v2761_v61, %v2666_v6  ;;  %vm6024_vm1 = vcmask 195584   ;;  %vm6027_vm8 = vmmov %vm6025_vm14 }
 0x1d8   : > { %v2723_v59 = vpop.permute.xlu1 %2722  ;;  %v2765_v15 = vsel %vm335_vm6, %v2763_v34, %v2675_v14  ;;  %v2546_v60 = vsel %vm332_vm5, %v2544_v33, %v2449_v12  ;;  %vm6026_vm3 = vmmov %vm6024_vm1 }
 0x1d9   : > { %v3274_v20 = vld [vmem:[#allocation2 + $0x30] sm:$0xff]  ;;  %v2767_v21 = vsel %vm6024_vm1, %v2765_v15, %v2678_v31  ;;  %v2548_v14 = vsel %vm335_vm6, %v2546_v60, %v2458_v45  ;;  %vm6029_vm1 = vcmask 125952  }
 0x1da   : > { %v3332_v41 = vrot.slane %v3274_v20, 1  ;;  %v2769_v54 = vsel %vm6025_vm14, %v2767_v21, %v2691_v44  ;;  %v2550_v12 = vsel %vm6026_vm3, %v2548_v14, %v5711_v0  ;;  %vm6030_vm14 = vmmov %vm6029_vm1  ;;  %vm6031_vm3 = vcmask 457728  }
 0x1db   : > { %v3275_v26 = vld [vmem:[#allocation2 + $0x38] sm:$0x3f]  ;;  %v2506_v55 = vpop.permute.xlu0 %2505  ;;  %v2771_v16 = vsel %vm344_vm9, %v2769_v54, %v2698_v28  ;;  %v2552_v56 = vsel %vm6027_vm8, %v2550_v12, %v5713_v53  ;;  %vm6032_vm8 = vcmask 490496  }
 0x1dc   : > { %v3272_v7 = vld [vmem:[#allocation2 + $0x20] sm:$0xff]  ;;  %v3333_v49 = vrot.slane %v3275_v26, 1  ;;  %v2730_v50 = vpop.permute.xlu1 %2729  ;;  %v2773_v31 = vsel %vm5989_vm10, %v2771_v16, %v2707_v1 }
 0x1dd   : > { %v3329_v47 = vrot.slane %v3272_v7, 1  ;;  %v2775_v19 = vsel %vm5990_vm11, %v2773_v31, %v2710_v40 }
 0x1de   : > { %v3273_v58 = vld [vmem:[#allocation2 + $0x28] sm:$0x3f]  ;;  %v3334_v63 = vsel %vm3322_vm2, %v3332_v41, %v3333_v49  ;;  %v5741_v51 = vmax.f32 %v3275_v26, %v3333_v49  ;;  %v2777_v53 = vsel %vm353_vm12, %v2775_v19, %v2723_v59 }
 0x1df   : > { %v3330_v38 = vrot.slane %v3273_v58, 1  ;;  %v2513_v39 = vpop.permute.xlu0 %2512  ;;  %v5746_v37 = vmax.f32 %v3274_v20, %v3334_v63  ;;  %v2779_v20 = vsel %vm356_vm13, %v2777_v53, %v2730_v50 }
 0x1e0   : > { %v2739_v11 = vpop.permute.xlu1 %2738 }
 0x1e1   : > { %v3331_v9 = vsel %vm3322_vm2, %v3329_v47, %v3330_v38  ;;  %v3393_v6 = vmax.f32 %v3273_v58, %v3330_v38 }
 0x1e2   : > { %v3392_v52 = vmax.f32 %v3272_v7, %v3331_v9 }
 0x1e3   : > { %v3426_v44 = vmax.f32 %v5589_v62, %v3393_v6  ;;  %v3428_v29 = vmax.f32 %v3393_v6, %v5741_v51  ;;  %v2522_v2 = vpop.permute.xlu0 %2521  ;;  %v2554_v62 = vsel %vm344_vm9, %v2552_v56, %v5716_v35  ;;  %v2781_v35 = vsel %vm6028_vm0, %v2779_v20, %v2739_v11 }
 0x1e4   : > { %v3425_v45 = vmax.f32 %v5602_v8, %v3392_v52  ;;  %v3427_v28 = vmax.f32 %v3392_v52, %v5746_v37  ;;  %v2742_v0 = vpop.permute.xlu1 %2741  ;;  %v2556_v48 = vsel %vm5989_vm10, %v2554_v62, %v2490_v57  ;;  %vm6033_vm10 = vmmov %vm6028_vm0 }
 0x1e5   : > { %v3998_v1 = vpack.c.bf16 %v3426_v44, %v3426_v44  ;;  %v4000_v17 = vpack.c.bf16 %v3428_v29, %v3428_v29  ;;  %v2558_v36 = vsel %vm5990_vm11, %v2556_v48, %v2493_v43  ;;  %v2783_v59 = vsel %vm6031_vm3, %v2781_v35, %v2742_v0  ;;  %vm6035_vm0 = vmmov %vm6031_vm3 }
 0x1e6   : > { %v3997_v18 = vpack.c.bf16 %v3425_v45, %v3425_v45  ;;  %v3999_v8 = vpack.c.bf16 %v3427_v28, %v3427_v28  ;;  %v2560_v57 = vsel %vm353_vm12, %v2558_v36, %v2506_v55  ;;  %vm6034_vm11 = vcmask 523264  }
 0x1e7   : > { %v3563_v40 = vsel %vm5619_vm15, %v3998_v1, %v3562_v23  ;;  %v3567_v26 = vsel %vm5619_vm15, %v4000_v17, %v3566_v25  ;;  %v2525_v27 = vpop.permute.xlu0 %2524  ;;  %v2562_v7 = vsel %vm356_vm13, %v2560_v57, %v2513_v39 }
 0x1e8   : > { %3561 = vst.msk [vmem:[%s5594_s22 + $0x8] sm:$0xf] %vm6029_vm1, %v3997_v18  ;;  %3564 = vst [vmem:[%s5594_s22 + $0xc] sm:$0x7] %v3563_v40  ;;  %v2755_v24 = vpop.permute.xlu1 %2754  ;;  %v2564_v43 = vsel %vm6033_vm10, %v2562_v7, %v2522_v2  ;;  %vm6038_vm10 = vcmask 128000  }
 0x1e9   : > { %3565 = vst.msk [vmem:[%s5594_s22 + $0x10] sm:$0xf] %vm6030_vm14, %v3999_v8  ;;  %3568 = vst [vmem:[%s5594_s22 + $0x14] sm:$0x7] %v3567_v26  ;;  %v2785_v49 = vsel %vm6032_vm8, %v2783_v59, %v2755_v24  ;;  %v2566_v50 = vsel %vm6035_vm0, %v2564_v43, %v2525_v27 }
 0x1ea   : > { %4232 = vmatmul.mubr.msk.bf16.vlgmr.msra.gmra.mrb[20].mxu1 %vm6034_vm11, %v2785_v49  ;;  %vm6036_vm1 = vmmov %vm6032_vm8  ;;  %vm6042_vm8 = vcmask 64512  }
 0x1eb   : > { %v2538_v32 = vpop.permute.xlu0 %2537  ;;  %4248 = vmatpush3.bf16.msra.mxu1 %v5664_v10  ;;  %4255 = vmatprep.mubr.msk.bf16.mxu1 %vm6015_vm7, %v4446_v5  ;;  %vm6037_vm14 = vmmov %vm6034_vm11 }
 0x1ec   : > { %v2568_v55 = vsel %vm6036_vm1, %v2566_v50, %v2538_v32  ;;  %v3077_v61 = vpop.permute.xlu1 %3076  ;;  %4249 = vmatprep.subr.bf16.mxu1 %v4446_v5  ;;  %vm6039_vm11 = vmmov %vm6038_vm10  ;;  %vm6044_vm1 = vcmask 195584  }
 0x1ed   : > { %4220 = vmatmul.mubr.msk.bf16.vlgmr.msra.gmra.mrb[20].mxu0 %vm6037_vm14, %v2568_v55  ;;  %vm6043_vm0 = vmmov %vm6042_vm8  ;;  %vm6045_vm14 = vcmask 228352  }
 0x1ee   : > { %4236 = vmatpush3.bf16.msra.mxu0 %v5664_v10  ;;  %4243 = vmatprep.mubr.msk.bf16.mxu0 %vm6015_vm7, %v4446_v5  ;;  %vm6040_vm7 = vcmask 31744  }
 0x1ef   : > { %v2860_v41 = vpop.permute.xlu0 %2859  ;;  %4250 = vmatpush3.bf16.msra.mxu1 %v5683_v3  ;;  %4237 = vmatprep.subr.bf16.mxu0 %v4446_v5  ;;  %v3191_v1 = vsel %vm6040_vm7, %v5367_v42, %v3077_v61  ;;  %vm6041_vm3 = vmmov %vm6040_vm7 }
 0x1f0   : > { %v3080_v33 = vpop.permute.xlu1 %3079  ;;  %4251 = vmatprep.subr.bf16.mxu1 %v4446_v5  ;;  %v2974_v8 = vsel %vm6041_vm3, %v5383_v30, %v2860_v41 }
 0x1f1   : > { %v3193_v48 = vsel %vm6042_vm8, %v3191_v1, %v3080_v33  ;;  %vm6053_vm8 = vcmask 125952  }
 0x1f2   : > { %4238 = vmatpush3.bf16.msra.mxu0 %v5683_v3 }
 0x1f3   : > { %v2863_v34 = vpop.permute.xlu0 %2862  ;;  %4252 = vmatpush3.bf16.msra.mxu1 %v5695_v13  ;;  %4239 = vmatprep.subr.bf16.mxu0 %v4446_v5 }
 0x1f4   : > { %v3093_v58 = vpop.permute.xlu1 %3092  ;;  %4253 = vmatprep.subr.bf16.mxu1 %v4446_v5  ;;  %v2976_v36 = vsel %vm6043_vm0, %v2974_v8, %v2863_v34  ;;  %vm6054_vm0 = vmmov %vm6053_vm8 }
 0x1f5   : > { %v3195_v35 = vsel %vm329_vm4, %v3193_v48, %v3093_v58 }
 0x1f6   : > { %4240 = vmatpush3.bf16.msra.mxu0 %v5695_v13 }
 0x1f7   : > { %v2876_v10 = vpop.permute.xlu0 %2875  ;;  %4254 = vmatpush3.bf16.msra.mxu1 %v5704_v4  ;;  %4241 = vmatprep.subr.bf16.mxu0 %v4446_v5 }
 0x1f8   : > { %v3100_v15 = vpop.permute.xlu1 %3099  ;;  %v2978_v57 = vsel %vm329_vm4, %v2976_v36, %v2876_v10  ;;  %vm6046_vm4 = vmmov %vm6044_vm1 }
 0x1f9   : > { %v3197_v42 = vsel %vm332_vm5, %v3195_v35, %v3100_v15 }
 0x1fa   : > { %4242 = vmatpush3.bf16.msra.mxu0 %v5704_v4 }
 0x1fb   : > { %v2883_v47 = vpop.permute.xlu0 %2882 }
 0x1fc   : > { %v3109_v3 = vpop.permute.xlu1 %3108  ;;  %v2980_v50 = vsel %vm332_vm5, %v2978_v57, %v2883_v47 }
 0x1fd   : > { %v3199_v24 = vsel %vm335_vm6, %v3197_v42, %v3109_v3 }
 0x1ff   : > { %v2892_v63 = vpop.permute.xlu0 %2891 }
 0x200   : > { %v3112_v38 = vpop.permute.xlu1 %3111  ;;  %v2982_v58 = vsel %vm335_vm6, %v2980_v50, %v2892_v63  ;;  %vm6049_vm6 = vcmask 326656  }
 0x201   : > { %v3201_v32 = vsel %vm6044_vm1, %v3199_v24, %v3112_v38  ;;  %vm6051_vm3 = vmmov %vm6049_vm6  ;;  %vm6055_vm1 = vcmask 457728  }
 0x203   : > { %v2895_v39 = vpop.permute.xlu0 %2894 }
 0x204   : > { %v3125_v60 = vpop.permute.xlu1 %3124  ;;  %v2984_v47 = vsel %vm6046_vm4, %v2982_v58, %v2895_v39 }
 0x205   : > { %v3203_v61 = vsel %vm6045_vm14, %v3201_v32, %v3125_v60 }
 0x207   : > { %v5804_v21 = vpop.permute.xlu0 %2907 }
 0x208   : > { %v3132_v11 = vpop.permute.xlu1 %3131 }
 0x209   : > { %v1520_v54 = vpop.f32.mrb[8].mxu1  ;;  %v3205_v10 = vsel %vm344_vm9, %v3203_v61, %v3132_v11  ;;  %v3570_v11 = vld [vmem:[%s5594_s22 + $0x1c] sm:$0x7] }
 0x20a   : > { %v1521_v13 = vadd.f32 %v5492_v46, %v1520_v54  ;;  %v4161_v9 = vpop.f32.mrb[9].mxu1 }
 0x20b   : > { %v5807_v6 = vpop.permute.xlu0 %2914  ;;  %v1523_v14 = vpop.f32.mrb[10].mxu1 }
 0x20c   : > { %v1527_v5 = vmax.f32 %v1521_v13, 0.0  ;;  %v1303_v16 = vpop.f32.mrb[8].mxu0  ;;  %v1524_v4 = vadd.f32 %v5492_v46, %v1523_v14  ;;  %v3141_v52 = vpop.permute.xlu1 %3140 }
 0x20d   : > { %v1304_v12 = vadd.f32 %v5492_v46, %v1303_v16  ;;  %v4149_v31 = vpop.f32.mrb[9].mxu0  ;;  %v4162_v44 = vpop.f32.mrb[11].mxu1 }
 0x20e   : > { %1530 = vst.msk [vmem:[#allocation2 + $0x50] sm:$0xff] %vm332_vm5, %v1527_v5  ;;  %v1528_v29 = vmax.f32 %v1524_v4, 0.0  ;;  %v1306_v2 = vpop.f32.mrb[10].mxu0  ;;  %v3574_v5 = vld [vmem:[%s5594_s22 + $0x24] sm:$0x7] }
 0x20f   : > { %v1310_v56 = vmax.f32 %v1304_v12, 0.0  ;;  %v1307_v45 = vadd.f32 %v5492_v46, %v1306_v2  ;;  %v4150_v28 = vpop.f32.mrb[11].mxu0  ;;  %v2924_v23 = vpop.permute.xlu0 %2923 }
 0x210   : > { %1531 = vst.msk [vmem:[#allocation2 + $0x58] sm:$0x3f] %vm6038_vm10, %v1528_v29  ;;  %v3144_v25 = vpop.permute.xlu1 %3143  ;;  %vm6047_vm10 = vcmask 293888  }
 0x211   : > { %1313 = vst.msk [vmem:[#allocation2 + $0x40] sm:$0xff] %vm332_vm5, %v1310_v56  ;;  %v1311_v19 = vmax.f32 %v1307_v45, 0.0  ;;  %v3207_v38 = vsel %vm6047_vm10, %v3205_v10, %v3141_v52  ;;  %vm6050_vm7 = vmmov %vm6047_vm10  ;;  %vm6058_vm10 = vcmask 523264  }
 0x212   : > { %v3209_v16 = vsel %vm6049_vm6, %v3207_v38, %v3144_v25 }
 0x213   : > { %1314 = vst.msk [vmem:[#allocation2 + $0x48] sm:$0x3f] %vm6039_vm11, %v1311_v19  ;;  %v2927_v0 = vpop.permute.xlu0 %2926  ;;  %vm6048_vm11 = vmmov %vm6045_vm14  ;;  %vm6056_vm14 = vcmask 490496  }
 0x214   : > { %v3157_v62 = vpop.permute.xlu1 %3156  ;;  %v2986_v9 = vsel %vm6048_vm11, %v2984_v47, %v5804_v21  ;;  %vm6059_vm11 = vmmov %vm6055_vm1 }
 0x215   : > { %v3278_v17 = vld [vmem:[#allocation2 + $0x50] sm:$0xff]  ;;  %v3211_v21 = vsel %vm353_vm12, %v3209_v16, %v3157_v62  ;;  %vm6060_vm6 = vmmov %vm6056_vm14 }
 0x216   : > { %v3338_v27 = vrot.slane %v3278_v17, 1 }
 0x217   : > { %v3279_v53 = vld [vmem:[#allocation2 + $0x58] sm:$0x3f]  ;;  %v2940_v18 = vpop.permute.xlu0 %2939 }
 0x218   : > { %v3276_v20 = vld [vmem:[#allocation2 + $0x40] sm:$0xff]  ;;  %v3339_v40 = vrot.slane %v3279_v53, 1  ;;  %v3164_v26 = vpop.permute.xlu1 %3163 }
 0x219   : > { %v3335_v7 = vrot.slane %v3276_v20, 1  ;;  %v3213_v44 = vsel %vm356_vm13, %v3211_v21, %v3164_v26 }
 0x21a   : > { %v3277_v59 = vld [vmem:[#allocation2 + $0x48] sm:$0x3f]  ;;  %v3340_v30 = vsel %vm3322_vm2, %v3338_v27, %v3339_v40  ;;  %v5830_v41 = vmax.f32 %v3279_v53, %v3339_v40 }
 0x21b   : > { %v3336_v49 = vrot.slane %v3277_v59, 1  ;;  %v2947_v43 = vpop.permute.xlu0 %2946  ;;  %v5835_v15 = vmax.f32 %v3278_v17, %v3340_v30 }
 0x21c   : > { %v3173_v55 = vpop.permute.xlu1 %3172 }
 0x21d   : > { %v3337_v33 = vsel %vm3322_vm2, %v3335_v7, %v3336_v49  ;;  %v3397_v34 = vmax.f32 %v3277_v59, %v3336_v49 }
 0x21e   : > { %v3396_v3 = vmax.f32 %v3276_v20, %v3337_v33 }
 0x21f   : > { %v3430_v60 = vmax.f32 %v5741_v51, %v3397_v34  ;;  %v3432_v54 = vmax.f32 %v3397_v34, %v5830_v41  ;;  %v2956_v13 = vpop.permute.xlu0 %2955  ;;  %v2988_v51 = vsel %vm344_vm9, %v2986_v9, %v5807_v6  ;;  %vm6052_vm9 = vcmask 424960  }
 0x220   : > { %v3429_v14 = vmax.f32 %v5746_v37, %v3396_v3  ;;  %v3431_v63 = vmax.f32 %v3396_v3, %v5835_v15  ;;  %v3176_v39 = vpop.permute.xlu1 %3175  ;;  %v2990_v31 = vsel %vm6050_vm7, %v2988_v51, %v2924_v23  ;;  %v3215_v6 = vsel %vm6052_vm9, %v3213_v44, %v3173_v55  ;;  %vm6057_vm4 = vmmov %vm6052_vm9 }
 0x221   : > { %v4002_v4 = vpack.c.bf16 %v3430_v60, %v3430_v60  ;;  %v4004_v52 = vpack.c.bf16 %v3432_v54, %v3432_v54  ;;  %v2992_v56 = vsel %vm6051_vm3, %v2990_v31, %v2927_v0  ;;  %v3217_v23 = vsel %vm6055_vm1, %v3215_v6, %v3176_v39  ;;  %vm6061_vm7 = vmmov %vm6058_vm10 }
 0x222   : > { %v4001_v12 = vpack.c.bf16 %v3429_v14, %v3429_v14  ;;  %v4003_v37 = vpack.c.bf16 %v3431_v63, %v3431_v63  ;;  %v2994_v28 = vsel %vm353_vm12, %v2992_v56, %v2940_v18  ;;  %vm6062_vm12 = vcmask 128000   ;;  %vm6064_vm3 = vmmov %vm6054_vm0 }
 0x223   : > { %v3571_v29 = vsel %vm5619_vm15, %v4002_v4, %v3570_v11  ;;  %v3575_v2 = vsel %vm5619_vm15, %v4004_v52, %v3574_v5  ;;  %v2959_v45 = vpop.permute.xlu0 %2958  ;;  %v2996_v19 = vsel %vm356_vm13, %v2994_v28, %v2947_v43  ;;  %vm6063_vm13 = vmmov %vm6062_vm12  ;;  %v3578_v11 = vld [vmem:[%s5594_s22 + $0x2c] sm:$0x7]  ;;  %v3582_v5 = vld [vmem:[%s5594_s22 + $0x34] sm:$0x7] }
 0x224   : > { %3569 = vst.msk [vmem:[%s5594_s22 + $0x18] sm:$0xf] %vm6053_vm8, %v4001_v12  ;;  %3572 = vst [vmem:[%s5594_s22 + $0x1c] sm:$0x7] %v3571_v29  ;;  %v3189_v25 = vpop.permute.xlu1 %3188  ;;  %v2998_v0 = vsel %vm6057_vm4, %v2996_v19, %v2956_v13 }
 0x225   : > { %3573 = vst.msk [vmem:[%s5594_s22 + $0x20] sm:$0xf] %vm6054_vm0, %v4003_v37  ;;  %3576 = vst [vmem:[%s5594_s22 + $0x24] sm:$0x7] %v3575_v2  ;;  %v3219_v62 = vsel %vm6056_vm14, %v3217_v23, %v3189_v25  ;;  %v3000_v1 = vsel %vm6059_vm11, %v2998_v0, %v2959_v45 }
 0x226   : > { %4256 = vmatmul.mubr.msk.bf16.vlgmr.msra.gmra.mrb[24].mxu1 %vm6058_vm10, %v3219_v62  ;;  %vm6065_vm9 = vmmov %vm6054_vm0 }
 0x227   : > { %v2972_v17 = vpop.permute.xlu0 %2971  ;;  %vm6066_vm8 = vmmov %vm6062_vm12 }
 0x228   : > { %v3002_v53 = vsel %vm6060_vm6, %v3000_v1, %v2972_v17  ;;  %vm6067_vm0 = vmmov %vm6066_vm8 }
 0x229   : > { %4244 = vmatmul.mubr.msk.bf16.vlgmr.msra.gmra.mrb[24].mxu0 %vm6061_vm7, %v3002_v53  ;;  %vm6068_vm1 = vmmov %vm6064_vm3 }
 0x22a   : > { %vm6069_vm14 = vmmov %vm6068_vm1 }
 0x22b   : > { %vm6070_vm4 = vmmov %vm6067_vm0 }
 0x22c   : > { %vm6071_vm10 = vmmov %vm6067_vm0 }
 0x22d   : > { %vm6072_vm11 = vmmov %vm6068_vm1 }
 0x22e   : > { %vm6073_vm6 = vmmov %vm6068_vm1 }
 0x22f   : > { %vm6074_vm7 = vmmov %vm6067_vm0 }
 0x245   : > { %v1954_v8 = vpop.f32.mrb[12].mxu1 }
 0x246   : > { %v1955_v18 = vadd.f32 %v5492_v46, %v1954_v8  ;;  %v4185_v48 = vpop.f32.mrb[13].mxu1 }
 0x247   : > { %v1957_v20 = vpop.f32.mrb[14].mxu1 }
 0x248   : > { %v1961_v40 = vmax.f32 %v1955_v18, 0.0  ;;  %v1737_v26 = vpop.f32.mrb[12].mxu0  ;;  %v1958_v36 = vadd.f32 %v5492_v46, %v1957_v20  ;;  %v4186_v35 = vpop.f32.mrb[15].mxu1 }
 0x249   : > { %v1738_v27 = vadd.f32 %v5492_v46, %v1737_v26  ;;  %v4173_v57 = vpop.f32.mrb[13].mxu0 }
 0x24a   : > { %1964 = vst.msk [vmem:[#allocation2 + $0x70] sm:$0xff] %vm332_vm5, %v1961_v40  ;;  %v1962_v42 = vmax.f32 %v1958_v36, 0.0  ;;  %v1740_v59 = vpop.f32.mrb[14].mxu0 }
 0x24b   : > { %v1744_v24 = vmax.f32 %v1738_v27, 0.0  ;;  %v1741_v7 = vadd.f32 %v5492_v46, %v1740_v59  ;;  %v4174_v30 = vpop.f32.mrb[15].mxu0 }
 0x24c   : > { %1965 = vst.msk [vmem:[#allocation2 + $0x78] sm:$0x3f] %vm6062_vm12, %v1962_v42  ;;  %v3590_v30 = vld [vmem:[%s5594_s22 + $0x44] sm:$0x7]  ;;  %vm6075_vm12 = vmmov %vm6067_vm0 }
 0x24d   : > { %1747 = vst.msk [vmem:[#allocation2 + $0x60] sm:$0xff] %vm332_vm5, %v1744_v24  ;;  %v1745_v49 = vmax.f32 %v1741_v7, 0.0  ;;  %v3586_v7 = vld [vmem:[%s5594_s22 + $0x3c] sm:$0x7] }
 0x24f   : > { %1748 = vst.msk [vmem:[#allocation2 + $0x68] sm:$0x3f] %vm6063_vm13, %v1745_v49 }
 0x251   : > { %v3282_v43 = vld [vmem:[#allocation2 + $0x70] sm:$0xff] }
 0x252   : > { %v3344_v61 = vrot.slane %v3282_v43, 1 }
 0x253   : > { %v3283_v50 = vld [vmem:[#allocation2 + $0x78] sm:$0x3f] }
 0x254   : > { %v3280_v32 = vld [vmem:[#allocation2 + $0x60] sm:$0xff]  ;;  %v3345_v55 = vrot.slane %v3283_v50, 1 }
 0x255   : > { %v3341_v34 = vrot.slane %v3280_v32, 1 }
 0x256   : > { %v3281_v33 = vld [vmem:[#allocation2 + $0x68] sm:$0x3f]  ;;  %v3346_v58 = vsel %vm3322_vm2, %v3344_v61, %v3345_v55  ;;  %v3403_v3 = vmax.f32 %v3283_v50, %v3345_v55 }
 0x257   : > { %v3342_v10 = vrot.slane %v3281_v33, 1  ;;  %v3402_v60 = vmax.f32 %v3282_v43, %v3346_v58 }
 0x259   : > { %v3343_v47 = vsel %vm3322_vm2, %v3341_v34, %v3342_v10  ;;  %v3401_v38 = vmax.f32 %v3281_v33, %v3342_v10  ;;  %v5923_v34 = vld [vmem:[%s5974_s2] ss:$0 sm:$0xff] }
 0x25a   : > { %v3400_v54 = vmax.f32 %v3280_v32, %v3343_v47 }
 0x25b   : > { %v3434_v13 = vmax.f32 %v5830_v41, %v3401_v38  ;;  %v3436_v9 = vmax.f32 %v3401_v38, %v3403_v3 }
 0x25c   : > { %v3433_v14 = vmax.f32 %v5835_v15, %v3400_v54  ;;  %v3435_v63 = vmax.f32 %v3400_v54, %v3402_v60 }
 0x25d   : > { %v4006_v16 = vpack.c.bf16 %v3434_v13, %v3434_v13  ;;  %v4008_v39 = vpack.c.bf16 %v3436_v9, %v3436_v9 }
 0x25e   : > { %v4005_v51 = vpack.c.bf16 %v3433_v14, %v3433_v14  ;;  %v4007_v4 = vpack.c.bf16 %v3435_v63, %v3435_v63 }
 0x25f   : > { %v3579_v52 = vsel %vm5619_vm15, %v4006_v16, %v3578_v11  ;;  %v3583_v21 = vsel %vm5619_vm15, %v4008_v39, %v3582_v5 }
 0x260   : > { %3577 = vst.msk [vmem:[%s5594_s22 + $0x28] sm:$0xf] %vm6064_vm3, %v4005_v51  ;;  %3580 = vst [vmem:[%s5594_s22 + $0x2c] sm:$0x7] %v3579_v52 }
 0x261   : > { %3581 = vst.msk [vmem:[%s5594_s22 + $0x30] sm:$0xf] %vm6065_vm9, %v4007_v4  ;;  %3584 = vst [vmem:[%s5594_s22 + $0x34] sm:$0x7] %v3583_v21 }
 0x281   : > { %v2388_v41 = vpop.f32.mrb[16].mxu1 }
 0x282   : > { %v2389_v15 = vadd.f32 %v5492_v46, %v2388_v41  ;;  %v4209_v12 = vpop.f32.mrb[17].mxu1 }
 0x283   : > { %v2391_v37 = vpop.f32.mrb[18].mxu1 }
 0x284   : > { %v2395_v31 = vmax.f32 %v2389_v15, 0.0  ;;  %v2171_v44 = vpop.f32.mrb[16].mxu0  ;;  %v2392_v29 = vadd.f32 %v5492_v46, %v2391_v37  ;;  %v4210_v2 = vpop.f32.mrb[19].mxu1 }
 0x285   : > { %v2172_v56 = vadd.f32 %v5492_v46, %v2171_v44  ;;  %v4197_v6 = vpop.f32.mrb[17].mxu0 }
 0x286   : > { %2398 = vst.msk [vmem:[#allocation2 + $0x90] sm:$0xff] %vm332_vm5, %v2395_v31  ;;  %v2396_v45 = vmax.f32 %v2392_v29, 0.0  ;;  %v2174_v28 = vpop.f32.mrb[18].mxu0 }
 0x287   : > { %v2178_v23 = vmax.f32 %v2172_v56, 0.0  ;;  %v2175_v25 = vadd.f32 %v5492_v46, %v2174_v28  ;;  %v4198_v19 = vpop.f32.mrb[19].mxu0 }
 0x288   : > { %2399 = vst.msk [vmem:[#allocation2 + $0x98] sm:$0x3f] %vm6066_vm8, %v2396_v45  ;;  %v3594_v19 = vld [vmem:[%s5594_s22 + $0x4c] sm:$0x7] }
 0x289   : > { %2181 = vst.msk [vmem:[#allocation2 + $0x80] sm:$0xff] %vm332_vm5, %v2178_v23  ;;  %v2179_v62 = vmax.f32 %v2175_v25, 0.0 }
 0x28b   : > { %2182 = vst.msk [vmem:[#allocation2 + $0x88] sm:$0x3f] %vm6067_vm0, %v2179_v62  ;;  %v3598_v62 = vld [vmem:[%s5594_s22 + $0x54] sm:$0x7] }
 0x28d   : > { %v3286_v0 = vld [vmem:[#allocation2 + $0x90] sm:$0xff] }
 0x28e   : > { %v3350_v8 = vrot.slane %v3286_v0, 1 }
 0x28f   : > { %v3287_v1 = vld [vmem:[#allocation2 + $0x98] sm:$0x3f] }
 0x290   : > { %v3284_v17 = vld [vmem:[#allocation2 + $0x80] sm:$0xff]  ;;  %v3351_v53 = vrot.slane %v3287_v1, 1 }
 0x291   : > { %v3347_v48 = vrot.slane %v3284_v17, 1 }
 0x292   : > { %v3285_v18 = vld [vmem:[#allocation2 + $0x88] sm:$0x3f]  ;;  %v3352_v20 = vsel %vm3322_vm2, %v3350_v8, %v3351_v53  ;;  %v3407_v40 = vmax.f32 %v3287_v1, %v3351_v53 }
 0x293   : > { %v3348_v46 = vrot.slane %v3285_v18, 1  ;;  %v3406_v35 = vmax.f32 %v3286_v0, %v3352_v20 }
 0x295   : > { %v3349_v26 = vsel %vm3322_vm2, %v3347_v48, %v3348_v46  ;;  %v3405_v36 = vmax.f32 %v3285_v18, %v3348_v46 }
 0x296   : > { %v3404_v27 = vmax.f32 %v3284_v17, %v3349_v26 }
 0x297   : > { %v3438_v57 = vmax.f32 %v3403_v3, %v3405_v36  ;;  %v3440_v42 = vmax.f32 %v3405_v36, %v3407_v40 }
 0x298   : > { %v3437_v59 = vmax.f32 %v3402_v60, %v3404_v27  ;;  %v3439_v24 = vmax.f32 %v3404_v27, %v3406_v35 }
 0x299   : > { %v4010_v49 = vpack.c.bf16 %v3438_v57, %v3438_v57  ;;  %v4012_v43 = vpack.c.bf16 %v3440_v42, %v3440_v42 }
 0x29a   : > { %v4009_v50 = vpack.c.bf16 %v3437_v59, %v3437_v59  ;;  %v4011_v32 = vpack.c.bf16 %v3439_v24, %v3439_v24 }
 0x29b   : > { %v3587_v55 = vsel %vm5619_vm15, %v4010_v49, %v3586_v7  ;;  %v3591_v61 = vsel %vm5619_vm15, %v4012_v43, %v3590_v30 }
 0x29c   : > { %3585 = vst.msk [vmem:[%s5594_s22 + $0x38] sm:$0xf] %vm6068_vm1, %v4009_v50  ;;  %3588 = vst [vmem:[%s5594_s22 + $0x3c] sm:$0x7] %v3587_v55 }
 0x29d   : > { %3589 = vst.msk [vmem:[%s5594_s22 + $0x40] sm:$0xf] %vm6069_vm14, %v4011_v32  ;;  %3592 = vst [vmem:[%s5594_s22 + $0x44] sm:$0x7] %v3591_v61 }
 0x2bd   : > { %v2822_v33 = vpop.f32.mrb[20].mxu1 }
 0x2be   : > { %v2823_v58 = vadd.f32 %v5923_v34, %v2822_v33  ;;  %v4233_v10 = vpop.f32.mrb[21].mxu1 }
 0x2bf   : > { %v2825_v3 = vpop.f32.mrb[22].mxu1 }
 0x2c0   : > { %v2829_v47 = vmax.f32 %v2823_v58, 0.0  ;;  %v2605_v38 = vpop.f32.mrb[20].mxu0  ;;  %v2826_v60 = vadd.f32 %v5923_v34, %v2825_v3  ;;  %v4234_v54 = vpop.f32.mrb[23].mxu1 }
 0x2c1   : > { %v2606_v13 = vadd.f32 %v5923_v34, %v2605_v38  ;;  %v4221_v9 = vpop.f32.mrb[21].mxu0 }
 0x2c2   : > { %2832 = vst.msk [vmem:[#allocation2 + $0xb0] sm:$0xff] %vm332_vm5, %v2829_v47  ;;  %v2830_v14 = vmax.f32 %v2826_v60, 0.0  ;;  %v2608_v63 = vpop.f32.mrb[22].mxu0 }
 0x2c3   : > { %v2612_v11 = vmax.f32 %v2606_v13, 0.0  ;;  %v2609_v5 = vadd.f32 %v5923_v34, %v2608_v63  ;;  %v4222_v16 = vpop.f32.mrb[23].mxu0 }
 0x2c4   : > { %2833 = vst.msk [vmem:[#allocation2 + $0xb8] sm:$0x3f] %vm6070_vm4, %v2830_v14  ;;  %v3606_v16 = vld [vmem:[%s5594_s22 + $0x64] sm:$0x7] }
 0x2c5   : > { %2615 = vst.msk [vmem:[#allocation2 + $0xa0] sm:$0xff] %vm332_vm5, %v2612_v11  ;;  %v2613_v39 = vmax.f32 %v2609_v5, 0.0  ;;  %v3602_v5 = vld [vmem:[%s5594_s22 + $0x5c] sm:$0x7] }
 0x2c7   : > { %2616 = vst.msk [vmem:[#allocation2 + $0xa8] sm:$0x3f] %vm6071_vm10, %v2613_v39 }
 0x2c9   : > { %v3290_v51 = vld [vmem:[#allocation2 + $0xb0] sm:$0xff] }
 0x2ca   : > { %v3356_v41 = vrot.slane %v3290_v51, 1 }
 0x2cb   : > { %v3291_v4 = vld [vmem:[#allocation2 + $0xb8] sm:$0x3f] }
 0x2cc   : > { %v3288_v52 = vld [vmem:[#allocation2 + $0xa0] sm:$0xff]  ;;  %v3357_v21 = vrot.slane %v3291_v4, 1 }
 0x2cd   : > { %v3353_v12 = vrot.slane %v3288_v52, 1 }
 0x2ce   : > { %v3289_v15 = vld [vmem:[#allocation2 + $0xa8] sm:$0x3f]  ;;  %v3358_v37 = vsel %vm3322_vm2, %v3356_v41, %v3357_v21  ;;  %v3411_v44 = vmax.f32 %v3291_v4, %v3357_v21 }
 0x2cf   : > { %v3354_v31 = vrot.slane %v3289_v15, 1  ;;  %v3410_v56 = vmax.f32 %v3290_v51, %v3358_v37 }
 0x2d1   : > { %v3355_v29 = vsel %vm3322_vm2, %v3353_v12, %v3354_v31  ;;  %v3409_v2 = vmax.f32 %v3289_v15, %v3354_v31 }
 0x2d2   : > { %v3408_v6 = vmax.f32 %v3288_v52, %v3355_v29 }
 0x2d3   : > { %v3442_v45 = vmax.f32 %v3407_v40, %v3409_v2  ;;  %v3444_v28 = vmax.f32 %v3409_v2, %v3411_v44 }
 0x2d4   : > { %v3441_v23 = vmax.f32 %v3406_v35, %v3408_v6  ;;  %v3443_v25 = vmax.f32 %v3408_v6, %v3410_v56 }
 0x2d5   : > { %v4014_v0 = vpack.c.bf16 %v3442_v45, %v3442_v45  ;;  %v4016_v1 = vpack.c.bf16 %v3444_v28, %v3444_v28 }
 0x2d6   : > { %v4013_v17 = vpack.c.bf16 %v3441_v23, %v3441_v23  ;;  %v4015_v53 = vpack.c.bf16 %v3443_v25, %v3443_v25 }
 0x2d7   : > { %v3595_v8 = vsel %vm5619_vm15, %v4014_v0, %v3594_v19  ;;  %v3599_v18 = vsel %vm5619_vm15, %v4016_v1, %v3598_v62 }
 0x2d8   : > { %3593 = vst.msk [vmem:[%s5594_s22 + $0x48] sm:$0xf] %vm6072_vm11, %v4013_v17  ;;  %3596 = vst [vmem:[%s5594_s22 + $0x4c] sm:$0x7] %v3595_v8 }
 0x2d9   : > { %3597 = vst.msk [vmem:[%s5594_s22 + $0x50] sm:$0xf] %vm6073_vm6, %v4015_v53  ;;  %3600 = vst [vmem:[%s5594_s22 + $0x54] sm:$0x7] %v3599_v18 }
 0x2f9   : > { %v3256_v48 = vpop.f32.mrb[24].mxu1 }
 0x2fa   : > { %v3257_v20 = vadd.f32 %v5923_v34, %v3256_v48  ;;  %v4257_v46 = vpop.f32.mrb[25].mxu1 }
 0x2fb   : > { %v3259_v40 = vpop.f32.mrb[26].mxu1 }
 0x2fc   : > { %v3263_v26 = vmax.f32 %v3257_v20, 0.0  ;;  %v3039_v36 = vpop.f32.mrb[24].mxu0  ;;  %v3260_v35 = vadd.f32 %v5923_v34, %v3259_v40  ;;  %v4258_v27 = vpop.f32.mrb[27].mxu1 }
 0x2fd   : > { %v3040_v57 = vadd.f32 %v5923_v34, %v3039_v36  ;;  %v4245_v42 = vpop.f32.mrb[25].mxu0 }
 0x2fe   : > { %3266 = vst.msk [vmem:[#allocation2 + $0xd0] sm:$0xff] %vm332_vm5, %v3263_v26  ;;  %v3264_v59 = vmax.f32 %v3260_v35, 0.0  ;;  %v3042_v24 = vpop.f32.mrb[26].mxu0 }
 0x2ff   : > { %v3046_v7 = vmax.f32 %v3040_v57, 0.0  ;;  %v3043_v30 = vadd.f32 %v5923_v34, %v3042_v24  ;;  %v4246_v49 = vpop.f32.mrb[27].mxu0 }
 0x300   : > { %3267 = vst.msk [vmem:[#allocation2 + $0xd8] sm:$0x3f] %vm6074_vm7, %v3264_v59 }
 0x301   : > { %3049 = vst.msk [vmem:[#allocation2 + $0xc0] sm:$0xff] %vm332_vm5, %v3046_v7  ;;  %v3047_v43 = vmax.f32 %v3043_v30, 0.0  ;;  %vm6076_vm5 = vmmov %vm6068_vm1 }
 0x303   : > { %3050 = vst.msk [vmem:[#allocation2 + $0xc8] sm:$0x3f] %vm6075_vm12, %v3047_v43 }
 0x305   : > { %v3294_v50 = vld [vmem:[#allocation2 + $0xd0] sm:$0xff] }
 0x306   : > { %v3416_v33 = vrot.slane %v3294_v50, 1 }
 0x307   : > { %v3295_v32 = vld [vmem:[#allocation2 + $0xd8] sm:$0x3f] }
 0x308   : > { %v3292_v55 = vld [vmem:[#allocation2 + $0xc0] sm:$0xff]  ;;  %v3417_v61 = vrot.slane %v3295_v32, 1 }
 0x309   : > { %v3359_v10 = vrot.slane %v3292_v55, 1 }
 0x30a   : > { %v3293_v58 = vld [vmem:[#allocation2 + $0xc8] sm:$0x3f]  ;;  %v3418_v3 = vsel %vm3322_vm2, %v3416_v33, %v3417_v61  ;;  %v3422_v47 = vmax.f32 %v3295_v32, %v3417_v61 }
 0x30b   : > { %v3360_v34 = vrot.slane %v3293_v58, 1  ;;  %v3421_v54 = vmax.f32 %v3294_v50, %v3418_v3 }
 0x30d   : > { %v3361_v38 = vsel %vm3322_vm2, %v3359_v10, %v3360_v34  ;;  %v3413_v60 = vmax.f32 %v3293_v58, %v3360_v34  ;;  %vm6077_vm2 = vmmov %vm6068_vm1 }
 0x30e   : > { %v3412_v13 = vmax.f32 %v3292_v55, %v3361_v38 }
 0x30f   : > { %v3446_v9 = vmax.f32 %v3411_v44, %v3413_v60  ;;  %v3448_v14 = vmax.f32 %v3413_v60, %v3422_v47 }
 0x310   : > { %v3445_v63 = vmax.f32 %v3410_v56, %v3412_v13  ;;  %v3447_v11 = vmax.f32 %v3412_v13, %v3421_v54 }
 0x311   : > { %v4018_v39 = vpack.c.bf16 %v3446_v9, %v3446_v9  ;;  %v4020_v51 = vpack.c.bf16 %v3448_v14, %v3448_v14 }
 0x312   : > { %v4017_v4 = vpack.c.bf16 %v3445_v63, %v3445_v63  ;;  %v4019_v52 = vpack.c.bf16 %v3447_v11, %v3447_v11 }
 0x313   : > { %v3603_v21 = vsel %vm5619_vm15, %v4018_v39, %v3602_v5  ;;  %v3607_v41 = vsel %vm5619_vm15, %v4020_v51, %v3606_v16 }
 0x314   : > { %3601 = vst.msk [vmem:[%s5594_s22 + $0x58] sm:$0xf] %vm6076_vm5, %v4017_v4  ;;  %3604 = vst [vmem:[%s5594_s22 + $0x5c] sm:$0x7] %v3603_v21 }
 0x315   : > { %3605 = vst.msk [vmem:[%s5594_s22 + $0x60] sm:$0xf] %vm6077_vm2, %v4019_v52  ;;  %3608 = vst [vmem:[%s5594_s22 + $0x64] sm:$0x7] %v3607_v41 }
 0x316 PF: > { %s13_s12 = sadd.s32 1, %s4429_s12  }
 0x317   : > { %p10_p4 = scmp.ge.s32.totalorder %s13_s12, 4  }
 0x319   :  { %12 = sbr.rel (!%p10_p4) target bundleno = 1 (0x1), region = 91 }

</bundles_post_ra>
